<compile_context>
chip_gen: v5e
topology: v5e:2x2
jax: 0.10.0
libtpu: 0.0.40
codegen_flags: <defaults>
</compile_context>

<pallas_src>
import functools
import math

import jax
import jax.numpy as jnp
from jax.experimental import pallas as pl
from jax.experimental.pallas import tpu as pltpu

EPS = 1e-12                  # reference repo's custom LayerNorm eps
NEG_INF = -10000.0           # matches masked_fill(mask == 0, -10000)
DEFAULT_KEY_TILE = 512       # online-softmax key tile (degenerates to 1 tile at toy S)


# ----------------------------------------------------------------------------
# Small helpers
# ----------------------------------------------------------------------------
def _round_up(n, m):
    return ((n + m - 1) // m) * m


def _pick_batch_block(batch, seq, target_rows=256):
    """Batch elements per grid step so the flattened matmuls see ~target rows."""
    bb = max(1, min(batch, target_rows // max(seq, 1)))
    while batch % bb:
        bb -= 1
    return bb


@functools.lru_cache(maxsize=None)
def _vmem_limit_bytes():
    # generation-aware scoped-VMEM budget: ~75% of physical, capped at 96 MiB
    try:
        cap = int(pltpu.get_tpu_info().vmem_capacity_bytes)
    except Exception:
        return 48 * 1024 * 1024          # safe on every generation
    return min(int(cap * 3 // 4), 96 * 1024 * 1024)


# ----------------------------------------------------------------------------
# In-kernel building blocks (pure functions on VMEM values)
# ----------------------------------------------------------------------------
def _attention(qh, kh, vh, mask, key_tile):
    """Online-softmax attention for one batch element.

    qh [H,Sq,dh] bf16, kh/vh [H,Sk,dh] bf16, mask [Sq,Sk] bool (True = keep).
    Loops over key tiles with running (m, l, acc) so at most one [H,Sq,tk]
    score tile is live (flash-style); masked scores use -10000, so fully
    masked rows stay finite.
    """
    H, Sq, dh = qh.shape
    Sk = kh.shape[1]
    tk = Sk if Sk <= key_tile else key_tile
    assert Sk % tk == 0, "pad Sk to a multiple of key_tile"  # TODO(synk): ragged tail tile

    m_i = jnp.full((H, Sq, 1), -jnp.inf, dtype=jnp.float32)
    l_i = jnp.zeros((H, Sq, 1), dtype=jnp.float32)
    acc = jnp.zeros((H, Sq, dh), dtype=jnp.float32)
    for t in range(Sk // tk):                        # static unroll
        lo = t * tk
        k_t = jax.lax.slice_in_dim(kh, lo, lo + tk, axis=1)
        v_t = jax.lax.slice_in_dim(vh, lo, lo + tk, axis=1)
        msk = jax.lax.slice_in_dim(mask, lo, lo + tk, axis=1)
        s = jax.lax.dot_general(qh, k_t, (((2,), (2,)), ((0,), (0,))),
                                preferred_element_type=jnp.float32)   # [H,Sq,tk]
        s = jnp.where(msk[None, :, :], s, NEG_INF)
        m_new = jnp.maximum(m_i, jnp.max(s, axis=-1, keepdims=True))
        alpha = jnp.exp(m_i - m_new)
        p = jnp.exp(s - m_new)
        l_i = alpha * l_i + jnp.sum(p, axis=-1, keepdims=True)
        acc = alpha * acc + jax.lax.dot_general(
            p.astype(jnp.bfloat16), v_t, (((2,), (1,)), ((0,), (0,))),
            preferred_element_type=jnp.float32)
        m_i = m_new
    # denom >= 1 after max-subtraction, approx reciprocal is safe (EUP slot)
    return acc * pl.reciprocal(l_i, approx=True)     # [H,Sq,dh] f32


def _mha_block(x_q2, x_kv2, dims, mask_fn,
               wq, bq, wk, bk, wv, bv, wo, bo, *, n_head, key_tile):
    """Multi-head attention over a block of BB batch elements.

    x_q2 [BB*Sq, D] / x_kv2 [BB*Sk, D]; projections and the output matmul run
    on the flattened slab (M = BB*S rows on the MXU); the attention
    contractions stay per batch element (static unroll).  1/sqrt(dh) is
    already folded into wq/bq at init.  mask_fn(b) -> [Sq, Sk] bool.
    """
    BB, Sq, Sk = dims
    D = x_q2.shape[-1]
    H = n_head
    dh = D // H

    q = jnp.dot(x_q2.astype(jnp.bfloat16), wq, preferred_element_type=jnp.float32) + bq
    k = jnp.dot(x_kv2.astype(jnp.bfloat16), wk, preferred_element_type=jnp.float32) + bk
    v = jnp.dot(x_kv2.astype(jnp.bfloat16), wv, preferred_element_type=jnp.float32) + bv
    qb = q.astype(jnp.bfloat16)
    kb = k.astype(jnp.bfloat16)
    vb = v.astype(jnp.bfloat16)

    ctxs = []
    for b in range(BB):                              # static unroll over the batch block
        qh = qb[b * Sq:(b + 1) * Sq].reshape(Sq, H, dh).transpose(1, 0, 2)
        kh = kb[b * Sk:(b + 1) * Sk].reshape(Sk, H, dh).transpose(1, 0, 2)
        vh = vb[b * Sk:(b + 1) * Sk].reshape(Sk, H, dh).transpose(1, 0, 2)
        ctx = _attention(qh, kh, vh, mask_fn(b), key_tile)        # [H,Sq,dh] f32
        ctxs.append(ctx.transpose(1, 0, 2).reshape(Sq, D))
    ctx2 = jnp.concatenate(ctxs, axis=0) if BB > 1 else ctxs[0]   # [BB*Sq, D]

    return jnp.dot(ctx2.astype(jnp.bfloat16), wo,
                   preferred_element_type=jnp.float32) + bo


def _layer_norm(h, g, b, eps):
    # single pass: sum and sum-of-squares reductions overlap on the XLU
    inv_d = 1.0 / h.shape[-1]
    mu = jnp.sum(h, axis=-1, keepdims=True) * inv_d
    ex2 = jnp.sum(h * h, axis=-1, keepdims=True) * inv_d
    var = jnp.maximum(ex2 - mu * mu, 0.0)
    return (h - mu) * jax.lax.rsqrt(var + eps) * g + b


def _ffn(h, w1, b1, w2, b2):
    f = jnp.dot(h.astype(jnp.bfloat16), w1, preferred_element_type=jnp.float32) + b1
    f = jnp.maximum(f, 0.0)
    return jnp.dot(f.astype(jnp.bfloat16), w2,
                   preferred_element_type=jnp.float32) + b2


# ----------------------------------------------------------------------------
# Fused stack kernels: one grid step = (batch block, layer)
# ----------------------------------------------------------------------------
def _encoder_stack_kernel(
    x_ref, vcol_ref, vrow_ref,
    wq_ref, bq_ref, wk_ref, bk_ref, wv_ref, bv_ref, wo_ref, bo_ref,
    g1_ref, be1_ref, w1_ref, b1_ref, w2_ref, b2_ref, g2_ref, be2_ref,
    o_ref, h_ref, *, n_head, eps, key_tile,
):
    layer = pl.program_id(1)
    BB, S, D = x_ref.shape

    @pl.when(layer == 0)            # load bf16 input into the resident f32 scratch
    def _():
        h_ref[...] = x_ref[...].reshape(BB * S, D).astype(jnp.float32)

    h = h_ref[...]                                   # [BB*S, D] f32
    vcol = vcol_ref[...]                             # [BB, S, 1]
    vrow = vrow_ref[...]                             # [BB, 1, S]
    # reference: src_mask = make_pad_mask(src, src) = q_valid & k_valid
    mask_fn = lambda b: (vcol[b] > 0.5) & (vrow[b] > 0.5)        # [S,S] bool

    attn = _mha_block(h, h, (BB, S, S), mask_fn,
                      wq_ref[0], bq_ref[0], wk_ref[0], bk_ref[0],
                      wv_ref[0], bv_ref[0], wo_ref[0], bo_ref[0],
                      n_head=n_head, key_tile=key_tile)
    h1 = _layer_norm(attn + h, g1_ref[0], be1_ref[0], eps)
    f = _ffn(h1, w1_ref[0], b1_ref[0], w2_ref[0], b2_ref[0])
    out = _layer_norm(f + h1, g2_ref[0], be2_ref[0], eps)

    h_ref[...] = out

    @pl.when(layer == pl.num_programs(1) - 1)
    def _():
        o_ref[...] = out.reshape(BB, S, D).astype(o_ref.dtype)


def _decoder_stack_kernel(
    dec_ref, enc_ref, tcol_ref, trow_ref, srow_ref,
    wq1_ref, bq1_ref, wk1_ref, bk1_ref, wv1_ref, bv1_ref, wo1_ref, bo1_ref,
    g1_ref, be1_ref,
    wq2_ref, bq2_ref, wk2_ref, bk2_ref, wv2_ref, bv2_ref, wo2_ref, bo2_ref,
    g2_ref, be2_ref,
    w1_ref, b1_ref, w2_ref, b2_ref, g3_ref, be3_ref,
    o_ref, h_ref, *, n_head, eps, key_tile,
):
    layer = pl.program_id(1)
    BB, St, D = dec_ref.shape
    Ss = enc_ref.shape[1]

    @pl.when(layer == 0)
    def _():
        h_ref[...] = dec_ref[...].reshape(BB * St, D).astype(jnp.float32)

    h = h_ref[...]                                   # [BB*St, D] f32
    enc = enc_ref[...].reshape(BB * Ss, D)           # bf16, VMEM-resident across layers
    tcol = tcol_ref[...]                             # [BB, St, 1]
    trow = trow_ref[...]                             # [BB, 1, St]
    srow = srow_ref[...]                             # [BB, 1, Ss]

    causal = (jax.lax.broadcasted_iota(jnp.int32, (St, St), 0) >=
              jax.lax.broadcasted_iota(jnp.int32, (St, St), 1))
    t_mask = lambda b: ((tcol[b] > 0.5) & (trow[b] > 0.5)) & causal   # pad & causal
    s_mask = lambda b: (tcol[b] > 0.5) & (srow[b] > 0.5)              # trg(q) & src(k)

    a1 = _mha_block(h, h, (BB, St, St), t_mask,
                    wq1_ref[0], bq1_ref[0], wk1_ref[0], bk1_ref[0],
                    wv1_ref[0], bv1_ref[0], wo1_ref[0], bo1_ref[0],
                    n_head=n_head, key_tile=key_tile)
    h1 = _layer_norm(a1 + h, g1_ref[0], be1_ref[0], eps)

    a2 = _mha_block(h1, enc, (BB, St, Ss), s_mask,
                    wq2_ref[0], bq2_ref[0], wk2_ref[0], bk2_ref[0],
                    wv2_ref[0], bv2_ref[0], wo2_ref[0], bo2_ref[0],
                    n_head=n_head, key_tile=key_tile)
    h2 = _layer_norm(a2 + h1, g2_ref[0], be2_ref[0], eps)

    f = _ffn(h2, w1_ref[0], b1_ref[0], w2_ref[0], b2_ref[0])
    out = _layer_norm(f + h2, g3_ref[0], be3_ref[0], eps)

    h_ref[...] = out

    @pl.when(layer == pl.num_programs(1) - 1)
    def _():
        o_ref[...] = out.reshape(BB, St, D).astype(o_ref.dtype)


def _lm_head_kernel(x_ref, w_ref, b_ref, o_ref):
    B, S, D = x_ref.shape
    x = x_ref[...].reshape(B * S, D)                 # bf16 decoder activations
    y = jnp.dot(x, w_ref[...], preferred_element_type=jnp.float32) + b_ref[...]
    o_ref[...] = y.reshape(B, S, -1).astype(o_ref.dtype)


# ----------------------------------------------------------------------------
# pallas_call wrappers
# ----------------------------------------------------------------------------
_ENC_PARAM_ORDER = ("wq", "bq", "wk", "bk", "wv", "bv", "wo", "bo",
                    "g1", "be1", "w1", "b1", "w2", "b2", "g2", "be2")
_DEC_PARAM_ORDER = ("wq1", "bq1", "wk1", "bk1", "wv1", "bv1", "wo1", "bo1",
                    "g1", "be1",
                    "wq2", "bq2", "wk2", "bk2", "wv2", "bv2", "wo2", "bo2",
                    "g2", "be2",
                    "w1", "b1", "w2", "b2", "g3", "be3")


def _act_spec(array, bb):
    # constant along the layer axis -> no re-DMA; single buffer saves VMEM
    shape = (bb,) + array.shape[1:]
    return pl.BlockSpec(shape, lambda b, l: (b, 0, 0), pipeline_mode=pl.Buffered(1))


def _w_spec(array):
    # stacked [L, ...]; varies along the layer axis -> default double buffer
    # gives us weight prefetch for layer l+1 under layer l compute.
    shape = (1,) + array.shape[1:]
    return pl.BlockSpec(shape, lambda b, l: (l, 0, 0))


def _stack_params():
    return pltpu.CompilerParams(
        dimension_semantics=("parallel", "arbitrary"),
        vmem_limit_bytes=_vmem_limit_bytes())


def encoder_stack_forward(x, s_col, s_row, p, *, n_head,
                          key_tile=DEFAULT_KEY_TILE, eps=EPS):
    B, S, D = x.shape
    L = p["wq"].shape[0]
    BB = _pick_batch_block(B, S)
    weights = [p[k] for k in _ENC_PARAM_ORDER]

    in_specs = ([_act_spec(x, BB), _act_spec(s_col, BB), _act_spec(s_row, BB)]
                + [_w_spec(w) for w in weights])
    kernel = functools.partial(_encoder_stack_kernel, n_head=n_head, eps=eps,
                               key_tile=key_tile)
    return pl.pallas_call(
        kernel,
        out_shape=jax.ShapeDtypeStruct((B, S, D), jnp.bfloat16),
        grid_spec=pltpu.PrefetchScalarGridSpec(
            num_scalar_prefetch=0,
            grid=(B // BB, L),                       # layer axis last ("arbitrary")
            in_specs=in_specs,
            out_specs=pl.BlockSpec((BB, S, D), lambda b, l: (b, 0, 0)),
            scratch_shapes=[pltpu.VMEM((BB * S, D), jnp.float32)]),
        compiler_params=_stack_params(),
    )(x, s_col, s_row, *weights)


def decoder_stack_forward(dec, enc, t_col, t_row, s_row, p, *, n_head,
                          key_tile=DEFAULT_KEY_TILE, eps=EPS):
    B, St, D = dec.shape
    L = p["wq1"].shape[0]
    BB = _pick_batch_block(B, St)
    weights = [p[k] for k in _DEC_PARAM_ORDER]

    in_specs = ([_act_spec(dec, BB), _act_spec(enc, BB),
                 _act_spec(t_col, BB), _act_spec(t_row, BB), _act_spec(s_row, BB)]
                + [_w_spec(w) for w in weights])
    kernel = functools.partial(_decoder_stack_kernel, n_head=n_head, eps=eps,
                               key_tile=key_tile)
    return pl.pallas_call(
        kernel,
        out_shape=jax.ShapeDtypeStruct((B, St, D), jnp.bfloat16),
        grid_spec=pltpu.PrefetchScalarGridSpec(
            num_scalar_prefetch=0,
            grid=(B // BB, L),
            in_specs=in_specs,
            out_specs=pl.BlockSpec((BB, St, D), lambda b, l: (b, 0, 0)),
            scratch_shapes=[pltpu.VMEM((BB * St, D), jnp.float32)]),
        compiler_params=_stack_params(),
    )(dec, enc, t_col, t_row, s_row, *weights)


def lm_head_forward(x, w, b):
    """Final linear head; vocab dim pre-padded to a multiple of 128 (lane-dense)."""
    B, S, D = x.shape
    Vp = w.shape[1]
    vt = 512 if (Vp > 512 and Vp % 512 == 0) else Vp       # V-tile grid axis
    return pl.pallas_call(
        _lm_head_kernel,
        out_shape=jax.ShapeDtypeStruct((B, S, Vp), jnp.float32),
        grid_spec=pltpu.PrefetchScalarGridSpec(
            num_scalar_prefetch=0, grid=(Vp // vt,),
            in_specs=[pl.BlockSpec((B, S, D), lambda v: (0, 0, 0),
                                   pipeline_mode=pl.Buffered(1)),
                      pl.BlockSpec((D, vt), lambda v: (0, v)),
                      pl.BlockSpec((1, vt), lambda v: (0, v))],
            out_specs=pl.BlockSpec((B, S, vt), lambda v: (0, 0, v))),
        compiler_params=pltpu.CompilerParams(
            dimension_semantics=("parallel",),
            vmem_limit_bytes=_vmem_limit_bytes()),
    )(x, w, b)


# ----------------------------------------------------------------------------
# Parameters (deterministic, synthetic) and plain-JAX glue (embedding gather)
# ----------------------------------------------------------------------------
def sinusoidal_pos_encoding(max_len, d_model):
    pos = jnp.arange(max_len, dtype=jnp.float32)[:, None]
    i2 = jnp.arange(0, d_model, 2, dtype=jnp.float32)
    div = jnp.power(10000.0, i2 / d_model)
    pe = jnp.zeros((max_len, d_model), dtype=jnp.float32)
    pe = pe.at[:, 0::2].set(jnp.sin(pos / div))
    pe = pe.at[:, 1::2].set(jnp.cos(pos / div))
    return pe


def _stack_layers(layers):
    return {k: jnp.stack([lyr[k] for lyr in layers], axis=0) for k in layers[0]}


def init_params(key, *, enc_vocab, dec_vocab, d_model, ffn_hidden,
                n_layer, n_head, max_len, pad):
    dh = d_model // n_head
    q_scale = 1.0 / math.sqrt(dh)     # folded into wq (and bq) at init

    keys = jax.random.split(key, 4 + 16 * n_layer)
    kit = iter(keys)

    def dense(shape, scale=1.0):      # matmul weights stored bf16
        return (jax.random.normal(next(kit), shape, jnp.float32) * 0.02 * scale
                ).astype(jnp.bfloat16)

    zeros = lambda n: jnp.zeros((1, n), jnp.float32)
    ones = lambda n: jnp.ones((1, n), jnp.float32)

    enc_tok = jax.random.normal(next(kit), (enc_vocab, d_model), jnp.float32) * 0.02
    enc_tok = enc_tok.at[pad].set(0.0)               # padding_idx row is zero
    dec_tok = jax.random.normal(next(kit), (dec_vocab, d_model), jnp.float32) * 0.02
    dec_tok = dec_tok.at[pad].set(0.0)
    pos = sinusoidal_pos_encoding(max_len, d_model)

    enc_layers = []
    for _ in range(n_layer):
        enc_layers.append({
            "wq": dense((d_model, d_model), q_scale), "bq": zeros(d_model),
            "wk": dense((d_model, d_model)), "bk": zeros(d_model),
            "wv": dense((d_model, d_model)), "bv": zeros(d_model),
            "wo": dense((d_model, d_model)), "bo": zeros(d_model),
            "g1": ones(d_model), "be1": zeros(d_model),
            "w1": dense((d_model, ffn_hidden)), "b1": zeros(ffn_hidden),
            "w2": dense((ffn_hidden, d_model)), "b2": zeros(d_model),
            "g2": ones(d_model), "be2": zeros(d_model),
        })

    dec_layers = []
    for _ in range(n_layer):
        dec_layers.append({
            "wq1": dense((d_model, d_model), q_scale), "bq1": zeros(d_model),
            "wk1": dense((d_model, d_model)), "bk1": zeros(d_model),
            "wv1": dense((d_model, d_model)), "bv1": zeros(d_model),
            "wo1": dense((d_model, d_model)), "bo1": zeros(d_model),
            "g1": ones(d_model), "be1": zeros(d_model),
            "wq2": dense((d_model, d_model), q_scale), "bq2": zeros(d_model),
            "wk2": dense((d_model, d_model)), "bk2": zeros(d_model),
            "wv2": dense((d_model, d_model)), "bv2": zeros(d_model),
            "wo2": dense((d_model, d_model)), "bo2": zeros(d_model),
            "g2": ones(d_model), "be2": zeros(d_model),
            "w1": dense((d_model, ffn_hidden)), "b1": zeros(ffn_hidden),
            "w2": dense((ffn_hidden, d_model)), "b2": zeros(d_model),
            "g3": ones(d_model), "be3": zeros(d_model),
        })

    # LM head padded to a lane-dense (multiple of 128) output dim
    v_pad = _round_up(dec_vocab, 128)
    fc_w_raw = dense((d_model, dec_vocab))
    fc_w = jnp.zeros((d_model, v_pad), jnp.bfloat16).at[:, :dec_vocab].set(fc_w_raw)
    fc_b = jnp.zeros((1, v_pad), jnp.float32)

    return {"enc_tok": enc_tok, "dec_tok": dec_tok, "pos": pos,
            "enc": _stack_layers(enc_layers), "dec": _stack_layers(dec_layers),
            "fc_w": fc_w, "fc_b": fc_b, "dec_vocab": dec_vocab}


def embed(tokens, tok_emb, pos_emb):
    # TODO(synk): the token-embedding gather stays in plain JAX (no clean
    # BlockSpec form); dropout is identity (eval-mode forward).
    S = tokens.shape[1]
    return (tok_emb[tokens] + pos_emb[None, :S, :]).astype(jnp.bfloat16)


# ----------------------------------------------------------------------------
# Full Transformer forward
# ----------------------------------------------------------------------------
def transformer_forward(src, trg, params, *, n_head, src_pad, trg_pad,
                        key_tile=DEFAULT_KEY_TILE):
    # Validity vectors replace the O(B*S^2) HBM masks; masks rebuilt in-kernel.
    src_valid = (src != src_pad).astype(jnp.float32)   # [B, Ss]
    trg_valid = (trg != trg_pad).astype(jnp.float32)   # [B, St]
    s_col = src_valid[:, :, None]
    s_row = src_valid[:, None, :]
    t_col = trg_valid[:, :, None]
    t_row = trg_valid[:, None, :]

    # ---- Encoder stack (one fused pallas_call) ----
    x = embed(src, params["enc_tok"], params["pos"])
    enc = encoder_stack_forward(x, s_col, s_row, params["enc"],
                                n_head=n_head, key_tile=key_tile)

    # ---- Decoder stack (one fused pallas_call) ----
    y = embed(trg, params["dec_tok"], params["pos"])
    dec = decoder_stack_forward(y, enc, t_col, t_row, s_row, params["dec"],
                                n_head=n_head, key_tile=key_tile)

    # ---- Final linear head (padded V, sliced back outside the kernel) ----
    logits = lm_head_forward(dec, params["fc_w"], params["fc_b"])
    return logits[:, :, :params["dec_vocab"]]


if __name__ == "__main__":
    B, S_SRC, S_TRG = 2, 16, 8
    D, H, F = 128, 4, 256                # D=128 keeps activations lane-dense
    ENC_VOCAB, DEC_VOCAB = 50, 60
    MAX_LEN, PAD, N_LAYER = 32, 0, 2

    key = jax.random.PRNGKey(0)
    k_src, k_trg, k_param = jax.random.split(key, 3)

    src = jax.random.randint(k_src, (B, S_SRC), 1, ENC_VOCAB, dtype=jnp.int32)
    src = src.at[:, -3:].set(PAD)        # padding to exercise the pad mask
    trg = jax.random.randint(k_trg, (B, S_TRG), 1, DEC_VOCAB, dtype=jnp.int32)
    trg = trg.at[:, -2:].set(PAD)

    params = init_params(k_param, enc_vocab=ENC_VOCAB, dec_vocab=DEC_VOCAB,
                         d_model=D, ffn_hidden=F, n_layer=N_LAYER,
                         n_head=H, max_len=MAX_LEN, pad=PAD)

    out = transformer_forward(src, trg, params, n_head=H,
                              src_pad=PAD, trg_pad=PAD)
    out = jax.block_until_ready(out)

    assert out.shape == (B, S_TRG, DEC_VOCAB)
    assert bool(jnp.all(jnp.isfinite(out)))
    print("KERNEL_OK")
</pallas_src>

<mosaic_0001>
module attributes {stable_mosaic.version = 11 : i64} {
  func.func @_encoder_stack_kernel(%arg0: i32, %arg1: i32, %arg2: memref<2x16x128xbf16, #tpu.memory_space<vmem>>, %arg3: memref<2x16x1xf32, #tpu.memory_space<vmem>>, %arg4: memref<2x1x16xf32, #tpu.memory_space<vmem>>, %arg5: memref<1x128x128xbf16, #tpu.memory_space<vmem>>, %arg6: memref<1x1x128xf32, #tpu.memory_space<vmem>>, %arg7: memref<1x128x128xbf16, #tpu.memory_space<vmem>>, %arg8: memref<1x1x128xf32, #tpu.memory_space<vmem>>, %arg9: memref<1x128x128xbf16, #tpu.memory_space<vmem>>, %arg10: memref<1x1x128xf32, #tpu.memory_space<vmem>>, %arg11: memref<1x128x128xbf16, #tpu.memory_space<vmem>>, %arg12: memref<1x1x128xf32, #tpu.memory_space<vmem>>, %arg13: memref<1x1x128xf32, #tpu.memory_space<vmem>>, %arg14: memref<1x1x128xf32, #tpu.memory_space<vmem>>, %arg15: memref<1x128x256xbf16, #tpu.memory_space<vmem>>, %arg16: memref<1x1x256xf32, #tpu.memory_space<vmem>>, %arg17: memref<1x256x128xbf16, #tpu.memory_space<vmem>>, %arg18: memref<1x1x128xf32, #tpu.memory_space<vmem>>, %arg19: memref<1x1x128xf32, #tpu.memory_space<vmem>>, %arg20: memref<1x1x128xf32, #tpu.memory_space<vmem>>, %arg21: memref<2x16x128xbf16, #tpu.memory_space<vmem>>, %arg22: memref<32x128xf32, #tpu.memory_space<vmem>>) attributes {dimension_semantics = [#tpu.dimension_semantics<parallel>, #tpu.dimension_semantics<arbitrary>], iteration_bounds = array<i64: 1, 2>, scalar_prefetch = 0 : i64, scratch_operands = 1 : i64, tpu.core_type = #tpu.core_type<tc>, window_params = [{pipeline_mode = #tpu.pipeline_mode<synchronous>, transform_indices = @transform_0, window_bounds = array<i64: 2, 16, 128>}, {pipeline_mode = #tpu.pipeline_mode<synchronous>, transform_indices = @transform_1, window_bounds = array<i64: 2, 16, 1>}, {pipeline_mode = #tpu.pipeline_mode<synchronous>, transform_indices = @transform_2, window_bounds = array<i64: 2, 1, 16>}, {transform_indices = @transform_3, window_bounds = array<i64: 1, 128, 128>}, {transform_indices = @transform_4, window_bounds = array<i64: 1, 1, 128>}, {transform_indices = @transform_5, window_bounds = array<i64: 1, 128, 128>}, {transform_indices = @transform_6, window_bounds = array<i64: 1, 1, 128>}, {transform_indices = @transform_7, window_bounds = array<i64: 1, 128, 128>}, {transform_indices = @transform_8, window_bounds = array<i64: 1, 1, 128>}, {transform_indices = @transform_9, window_bounds = array<i64: 1, 128, 128>}, {transform_indices = @transform_10, window_bounds = array<i64: 1, 1, 128>}, {transform_indices = @transform_11, window_bounds = array<i64: 1, 1, 128>}, {transform_indices = @transform_12, window_bounds = array<i64: 1, 1, 128>}, {transform_indices = @transform_13, window_bounds = array<i64: 1, 128, 256>}, {transform_indices = @transform_14, window_bounds = array<i64: 1, 1, 256>}, {transform_indices = @transform_15, window_bounds = array<i64: 1, 256, 128>}, {transform_indices = @transform_16, window_bounds = array<i64: 1, 1, 128>}, {transform_indices = @transform_17, window_bounds = array<i64: 1, 1, 128>}, {transform_indices = @transform_18, window_bounds = array<i64: 1, 1, 128>}, {transform_indices = @transform_19, window_bounds = array<i64: 2, 16, 128>}]} {
    %c0_i32 = arith.constant 0 : i32
    %0 = arith.cmpi eq, %arg1, %c0_i32 : i32
    %1 = arith.extui %0 : i1 to i32
    %c0_i32_0 = arith.constant 0 : i32
    %2 = arith.cmpi ne, %1, %c0_i32_0 : i32
    scf.if %2 {
      %c0_97 = arith.constant 0 : index
      %c0_98 = arith.constant 0 : index
      %c0_99 = arith.constant 0 : index
      %230 = vector.load %arg2[%c0_97, %c0_98, %c0_99] : memref<2x16x128xbf16, #tpu.memory_space<vmem>>, vector<2x16x128xbf16>
      %231 = vector.shape_cast %230 : vector<2x16x128xbf16> to vector<32x128xbf16>
      %232 = arith.extf %231 : vector<32x128xbf16> to vector<32x128xf32>
      %c0_100 = arith.constant 0 : index
      %c0_101 = arith.constant 0 : index
      %233 = vector.load %arg22[%c0_100, %c0_101] : memref<32x128xf32, #tpu.memory_space<vmem>>, vector<32x128xf32>
      tpu.vector_store %arg22[%c0_100, %c0_101], %232 {strides = array<i32>} : memref<32x128xf32, #tpu.memory_space<vmem>>, vector<32x128xf32>,
    } else {
    }
    %c0 = arith.constant 0 : index
    %c0_1 = arith.constant 0 : index
    %3 = vector.load %arg22[%c0, %c0_1] : memref<32x128xf32, #tpu.memory_space<vmem>>, vector<32x128xf32>
    %c0_2 = arith.constant 0 : index
    %c0_3 = arith.constant 0 : index
    %c0_4 = arith.constant 0 : index
    %4 = vector.load %arg3[%c0_2, %c0_3, %c0_4] : memref<2x16x1xf32, #tpu.memory_space<vmem>>, vector<2x16x1xf32>
    %c0_5 = arith.constant 0 : index
    %c0_6 = arith.constant 0 : index
    %c0_7 = arith.constant 0 : index
    %5 = vector.load %arg4[%c0_5, %c0_6, %c0_7] : memref<2x1x16xf32, #tpu.memory_space<vmem>>, vector<2x1x16xf32>
    %c0_8 = arith.constant 0 : index
    %c0_9 = arith.constant 0 : index
    %c0_10 = arith.constant 0 : index
    %6 = vector.load %arg5[%c0_8, %c0_9, %c0_10] : memref<1x128x128xbf16, #tpu.memory_space<vmem>>, vector<1x128x128xbf16>
    %7 = vector.shape_cast %6 : vector<1x128x128xbf16> to vector<128x128xbf16>
    %c0_11 = arith.constant 0 : index
    %c0_12 = arith.constant 0 : index
    %c0_13 = arith.constant 0 : index
    %8 = vector.load %arg6[%c0_11, %c0_12, %c0_13] : memref<1x1x128xf32, #tpu.memory_space<vmem>>, vector<1x1x128xf32>
    %9 = vector.shape_cast %8 : vector<1x1x128xf32> to vector<1x128xf32>
    %c0_14 = arith.constant 0 : index
    %c0_15 = arith.constant 0 : index
    %c0_16 = arith.constant 0 : index
    %10 = vector.load %arg7[%c0_14, %c0_15, %c0_16] : memref<1x128x128xbf16, #tpu.memory_space<vmem>>, vector<1x128x128xbf16>
    %11 = vector.shape_cast %10 : vector<1x128x128xbf16> to vector<128x128xbf16>
    %c0_17 = arith.constant 0 : index
    %c0_18 = arith.constant 0 : index
    %c0_19 = arith.constant 0 : index
    %12 = vector.load %arg8[%c0_17, %c0_18, %c0_19] : memref<1x1x128xf32, #tpu.memory_space<vmem>>, vector<1x1x128xf32>
    %13 = vector.shape_cast %12 : vector<1x1x128xf32> to vector<1x128xf32>
    %c0_20 = arith.constant 0 : index
    %c0_21 = arith.constant 0 : index
    %c0_22 = arith.constant 0 : index
    %14 = vector.load %arg9[%c0_20, %c0_21, %c0_22] : memref<1x128x128xbf16, #tpu.memory_space<vmem>>, vector<1x128x128xbf16>
    %15 = vector.shape_cast %14 : vector<1x128x128xbf16> to vector<128x128xbf16>
    %c0_23 = arith.constant 0 : index
    %c0_24 = arith.constant 0 : index
    %c0_25 = arith.constant 0 : index
    %16 = vector.load %arg10[%c0_23, %c0_24, %c0_25] : memref<1x1x128xf32, #tpu.memory_space<vmem>>, vector<1x1x128xf32>
    %17 = vector.shape_cast %16 : vector<1x1x128xf32> to vector<1x128xf32>
    %c0_26 = arith.constant 0 : index
    %c0_27 = arith.constant 0 : index
    %c0_28 = arith.constant 0 : index
    %18 = vector.load %arg11[%c0_26, %c0_27, %c0_28] : memref<1x128x128xbf16, #tpu.memory_space<vmem>>, vector<1x128x128xbf16>
    %19 = vector.shape_cast %18 : vector<1x128x128xbf16> to vector<128x128xbf16>
    %c0_29 = arith.constant 0 : index
    %c0_30 = arith.constant 0 : index
    %c0_31 = arith.constant 0 : index
    %20 = vector.load %arg12[%c0_29, %c0_30, %c0_31] : memref<1x1x128xf32, #tpu.memory_space<vmem>>, vector<1x1x128xf32>
    %21 = vector.shape_cast %20 : vector<1x1x128xf32> to vector<1x128xf32>
    %22 = arith.truncf %3 : vector<32x128xf32> to vector<32x128xbf16>
    %cst = arith.constant dense<0.000000e+00> : vector<32x128xf32>
    %23 = tpu.matmul %22, %7, %cst {dimension_numbers = #tpu.dot_dimension_numbers<[1], [0], [0], [1], [0, 0, 1, 1], [], []>} : vector<32x128xbf16>, vector<128x128xbf16>, vector<32x128xf32> -> vector<32x128xf32>
    %24 = vector.broadcast %9 : vector<1x128xf32> to vector<32x128xf32>
    %25 = arith.addf %23, %24 : vector<32x128xf32>
    %26 = arith.truncf %3 : vector<32x128xf32> to vector<32x128xbf16>
    %cst_32 = arith.constant dense<0.000000e+00> : vector<32x128xf32>
    %27 = tpu.matmul %26, %11, %cst_32 {dimension_numbers = #tpu.dot_dimension_numbers<[1], [0], [0], [1], [0, 0, 1, 1], [], []>} : vector<32x128xbf16>, vector<128x128xbf16>, vector<32x128xf32> -> vector<32x128xf32>
    %28 = vector.broadcast %13 : vector<1x128xf32> to vector<32x128xf32>
    %29 = arith.addf %27, %28 : vector<32x128xf32>
    %30 = arith.truncf %3 : vector<32x128xf32> to vector<32x128xbf16>
    %cst_33 = arith.constant dense<0.000000e+00> : vector<32x128xf32>
    %31 = tpu.matmul %30, %15, %cst_33 {dimension_numbers = #tpu.dot_dimension_numbers<[1], [0], [0], [1], [0, 0, 1, 1], [], []>} : vector<32x128xbf16>, vector<128x128xbf16>, vector<32x128xf32> -> vector<32x128xf32>
    %32 = vector.broadcast %17 : vector<1x128xf32> to vector<32x128xf32>
    %33 = arith.addf %31, %32 : vector<32x128xf32>
    %34 = arith.truncf %25 : vector<32x128xf32> to vector<32x128xbf16>
    %35 = arith.truncf %29 : vector<32x128xf32> to vector<32x128xbf16>
    %36 = arith.truncf %33 : vector<32x128xf32> to vector<32x128xbf16>
    %37 = vector.extract_strided_slice %34 {offsets = [0, 0], sizes = [16, 128], strides = [1, 1]} : vector<32x128xbf16> to vector<16x128xbf16>
    %38 = vector.shape_cast %37 : vector<16x128xbf16> to vector<16x4x32xbf16>
    %39 = tpu.transpose %38, [1, 0, 2] : vector<16x4x32xbf16> -> vector<4x16x32xbf16>
    %40 = vector.extract_strided_slice %35 {offsets = [0, 0], sizes = [16, 128], strides = [1, 1]} : vector<32x128xbf16> to vector<16x128xbf16>
    %41 = vector.shape_cast %40 : vector<16x128xbf16> to vector<16x4x32xbf16>
    %42 = tpu.transpose %41, [1, 0, 2] : vector<16x4x32xbf16> -> vector<4x16x32xbf16>
    %43 = vector.extract_strided_slice %36 {offsets = [0, 0], sizes = [16, 128], strides = [1, 1]} : vector<32x128xbf16> to vector<16x128xbf16>
    %44 = vector.shape_cast %43 : vector<16x128xbf16> to vector<16x4x32xbf16>
    %45 = tpu.transpose %44, [1, 0, 2] : vector<16x4x32xbf16> -> vector<4x16x32xbf16>
    %46 = vector.extract_strided_slice %4 {offsets = [0, 0, 0], sizes = [1, 16, 1], strides = [1, 1, 1]} : vector<2x16x1xf32> to vector<1x16x1xf32>
    %47 = vector.shape_cast %46 : vector<1x16x1xf32> to vector<16x1xf32>
    %cst_34 = arith.constant 5.000000e-01 : f32
    %48 = vector.broadcast %cst_34 : f32 to vector<16x1xf32>
    %49 = arith.cmpf ogt, %47, %48 : vector<16x1xf32>
    %50 = vector.extract_strided_slice %5 {offsets = [0, 0, 0], sizes = [1, 1, 16], strides = [1, 1, 1]} : vector<2x1x16xf32> to vector<1x1x16xf32>
    %51 = vector.shape_cast %50 : vector<1x1x16xf32> to vector<1x16xf32>
    %cst_35 = arith.constant 5.000000e-01 : f32
    %52 = vector.broadcast %cst_35 : f32 to vector<1x16xf32>
    %53 = arith.cmpf ogt, %51, %52 : vector<1x16xf32>
    %54 = vector.broadcast %49 : vector<16x1xi1> to vector<16x16xi1>
    %55 = vector.broadcast %53 : vector<1x16xi1> to vector<16x16xi1>
    %56 = arith.andi %54, %55 : vector<16x16xi1>
    %cst_36 = arith.constant 0xFF800000 : f32
    %57 = vector.broadcast %cst_36 : f32 to vector<4x16x1xf32>
    %cst_37 = arith.constant 0.000000e+00 : f32
    %58 = vector.broadcast %cst_37 : f32 to vector<4x16x1xf32>
    %cst_38 = arith.constant 0.000000e+00 : f32
    %59 = vector.broadcast %cst_38 : f32 to vector<4x16x32xf32>
    %60 = vector.extract_strided_slice %42 {offsets = [0, 0, 0], sizes = [4, 16, 32], strides = [1, 1, 1]} : vector<4x16x32xbf16> to vector<4x16x32xbf16>
    %61 = vector.extract_strided_slice %45 {offsets = [0, 0, 0], sizes = [4, 16, 32], strides = [1, 1, 1]} : vector<4x16x32xbf16> to vector<4x16x32xbf16>
    %62 = vector.extract_strided_slice %56 {offsets = [0, 0], sizes = [16, 16], strides = [1, 1]} : vector<16x16xi1> to vector<16x16xi1>
    %cst_39 = arith.constant dense<0.000000e+00> : vector<4x16x16xf32>
    %63 = tpu.matmul %39, %60, %cst_39 {dimension_numbers = #tpu.dot_dimension_numbers<[2], [2], [1], [1], [0, 0, 0, 1, 1, 1], [0], [0]>} : vector<4x16x32xbf16>, vector<4x16x32xbf16>, vector<4x16x16xf32> -> vector<4x16x16xf32>
    %64 = vector.shape_cast %62 : vector<16x16xi1> to vector<1x16x16xi1>
    %cst_40 = arith.constant -1.000000e+04 : f32
    %65 = vector.shape_cast %64 : vector<1x16x16xi1> to vector<1x16x16xi1>
    %66 = vector.broadcast %65 : vector<1x16x16xi1> to vector<4x16x16xi1>
    %67 = vector.broadcast %cst_40 : f32 to vector<4x16x16xf32>
    %68 = arith.select %66, %63, %67 : vector<4x16x16xi1>, vector<4x16x16xf32>
    %cst_41 = arith.constant dense<0xFF800000> : vector<4x16xf32>
    %69 = vector.multi_reduction <maximumf>, %68, %cst_41 [2] : vector<4x16x16xf32> to vector<4x16xf32>
    %70 = vector.shape_cast %69 : vector<4x16xf32> to vector<4x16x1xf32>
    %71 = arith.maximumf %57, %70 : vector<4x16x1xf32>
    %72 = arith.subf %57, %71 : vector<4x16x1xf32>
    %73 = math.exp %72 : vector<4x16x1xf32>
    %74 = vector.broadcast %71 : vector<4x16x1xf32> to vector<4x16x16xf32>
    %75 = arith.subf %68, %74 : vector<4x16x16xf32>
    %76 = math.exp %75 : vector<4x16x16xf32>
    %77 = arith.mulf %73, %58 : vector<4x16x1xf32>
    %cst_42 = arith.constant dense<0.000000e+00> : vector<4x16xf32>
    %78 = vector.multi_reduction <add>, %76, %cst_42 [2] : vector<4x16x16xf32> to vector<4x16xf32>
    %79 = vector.shape_cast %78 : vector<4x16xf32> to vector<4x16x1xf32>
    %80 = arith.addf %77, %79 : vector<4x16x1xf32>
    %81 = vector.broadcast %73 : vector<4x16x1xf32> to vector<4x16x32xf32>
    %82 = arith.mulf %81, %59 : vector<4x16x32xf32>
    %83 = arith.truncf %76 : vector<4x16x16xf32> to vector<4x16x16xbf16>
    %cst_43 = arith.constant dense<0.000000e+00> : vector<4x16x32xf32>
    %84 = tpu.matmul %83, %61, %cst_43 {dimension_numbers = #tpu.dot_dimension_numbers<[2], [1], [1], [2], [0, 0, 0, 1, 1, 2], [0], [0]>} : vector<4x16x16xbf16>, vector<4x16x32xbf16>, vector<4x16x32xf32> -> vector<4x16x32xf32>
    %85 = arith.addf %82, %84 : vector<4x16x32xf32>
    %86 = tpu.reciprocal %80 {approx = true} : vector<4x16x1xf32> -> vector<4x16x1xf32>
    %87 = vector.broadcast %86 : vector<4x16x1xf32> to vector<4x16x32xf32>
    %88 = arith.mulf %85, %87 : vector<4x16x32xf32>
    %89 = tpu.transpose %88, [1, 0, 2] : vector<4x16x32xf32> -> vector<16x4x32xf32>
    %90 = vector.shape_cast %89 : vector<16x4x32xf32> to vector<16x128xf32>
    %91 = vector.extract_strided_slice %34 {offsets = [16, 0], sizes = [16, 128], strides = [1, 1]} : vector<32x128xbf16> to vector<16x128xbf16>
    %92 = vector.shape_cast %91 : vector<16x128xbf16> to vector<16x4x32xbf16>
    %93 = tpu.transpose %92, [1, 0, 2] : vector<16x4x32xbf16> -> vector<4x16x32xbf16>
    %94 = vector.extract_strided_slice %35 {offsets = [16, 0], sizes = [16, 128], strides = [1, 1]} : vector<32x128xbf16> to vector<16x128xbf16>
    %95 = vector.shape_cast %94 : vector<16x128xbf16> to vector<16x4x32xbf16>
    %96 = tpu.transpose %95, [1, 0, 2] : vector<16x4x32xbf16> -> vector<4x16x32xbf16>
    %97 = vector.extract_strided_slice %36 {offsets = [16, 0], sizes = [16, 128], strides = [1, 1]} : vector<32x128xbf16> to vector<16x128xbf16>
    %98 = vector.shape_cast %97 : vector<16x128xbf16> to vector<16x4x32xbf16>
    %99 = tpu.transpose %98, [1, 0, 2] : vector<16x4x32xbf16> -> vector<4x16x32xbf16>
    %100 = vector.extract_strided_slice %4 {offsets = [1, 0, 0], sizes = [1, 16, 1], strides = [1, 1, 1]} : vector<2x16x1xf32> to vector<1x16x1xf32>
    %101 = vector.shape_cast %100 : vector<1x16x1xf32> to vector<16x1xf32>
    %cst_44 = arith.constant 5.000000e-01 : f32
    %102 = vector.broadcast %cst_44 : f32 to vector<16x1xf32>
    %103 = arith.cmpf ogt, %101, %102 : vector<16x1xf32>
    %104 = vector.extract_strided_slice %5 {offsets = [1, 0, 0], sizes = [1, 1, 16], strides = [1, 1, 1]} : vector<2x1x16xf32> to vector<1x1x16xf32>
    %105 = vector.shape_cast %104 : vector<1x1x16xf32> to vector<1x16xf32>
    %cst_45 = arith.constant 5.000000e-01 : f32
    %106 = vector.broadcast %cst_45 : f32 to vector<1x16xf32>
    %107 = arith.cmpf ogt, %105, %106 : vector<1x16xf32>
    %108 = vector.broadcast %103 : vector<16x1xi1> to vector<16x16xi1>
    %109 = vector.broadcast %107 : vector<1x16xi1> to vector<16x16xi1>
    %110 = arith.andi %108, %109 : vector<16x16xi1>
    %cst_46 = arith.constant 0xFF800000 : f32
    %111 = vector.broadcast %cst_46 : f32 to vector<4x16x1xf32>
    %cst_47 = arith.constant 0.000000e+00 : f32
    %112 = vector.broadcast %cst_47 : f32 to vector<4x16x1xf32>
    %cst_48 = arith.constant 0.000000e+00 : f32
    %113 = vector.broadcast %cst_48 : f32 to vector<4x16x32xf32>
    %114 = vector.extract_strided_slice %96 {offsets = [0, 0, 0], sizes = [4, 16, 32], strides = [1, 1, 1]} : vector<4x16x32xbf16> to vector<4x16x32xbf16>
    %115 = vector.extract_strided_slice %99 {offsets = [0, 0, 0], sizes = [4, 16, 32], strides = [1, 1, 1]} : vector<4x16x32xbf16> to vector<4x16x32xbf16>
    %116 = vector.extract_strided_slice %110 {offsets = [0, 0], sizes = [16, 16], strides = [1, 1]} : vector<16x16xi1> to vector<16x16xi1>
    %cst_49 = arith.constant dense<0.000000e+00> : vector<4x16x16xf32>
    %117 = tpu.matmul %93, %114, %cst_49 {dimension_numbers = #tpu.dot_dimension_numbers<[2], [2], [1], [1], [0, 0, 0, 1, 1, 1], [0], [0]>} : vector<4x16x32xbf16>, vector<4x16x32xbf16>, vector<4x16x16xf32> -> vector<4x16x16xf32>
    %118 = vector.shape_cast %116 : vector<16x16xi1> to vector<1x16x16xi1>
    %cst_50 = arith.constant -1.000000e+04 : f32
    %119 = vector.shape_cast %118 : vector<1x16x16xi1> to vector<1x16x16xi1>
    %120 = vector.broadcast %119 : vector<1x16x16xi1> to vector<4x16x16xi1>
    %121 = vector.broadcast %cst_50 : f32 to vector<4x16x16xf32>
    %122 = arith.select %120, %117, %121 : vector<4x16x16xi1>, vector<4x16x16xf32>
    %cst_51 = arith.constant dense<0xFF800000> : vector<4x16xf32>
    %123 = vector.multi_reduction <maximumf>, %122, %cst_51 [2] : vector<4x16x16xf32> to vector<4x16xf32>
    %124 = vector.shape_cast %123 : vector<4x16xf32> to vector<4x16x1xf32>
    %125 = arith.maximumf %111, %124 : vector<4x16x1xf32>
    %126 = arith.subf %111, %125 : vector<4x16x1xf32>
    %127 = math.exp %126 : vector<4x16x1xf32>
    %128 = vector.broadcast %125 : vector<4x16x1xf32> to vector<4x16x16xf32>
    %129 = arith.subf %122, %128 : vector<4x16x16xf32>
    %130 = math.exp %129 : vector<4x16x16xf32>
    %131 = arith.mulf %127, %112 : vector<4x16x1xf32>
    %cst_52 = arith.constant dense<0.000000e+00> : vector<4x16xf32>
    %132 = vector.multi_reduction <add>, %130, %cst_52 [2] : vector<4x16x16xf32> to vector<4x16xf32>
    %133 = vector.shape_cast %132 : vector<4x16xf32> to vector<4x16x1xf32>
    %134 = arith.addf %131, %133 : vector<4x16x1xf32>
    %135 = vector.broadcast %127 : vector<4x16x1xf32> to vector<4x16x32xf32>
    %136 = arith.mulf %135, %113 : vector<4x16x32xf32>
    %137 = arith.truncf %130 : vector<4x16x16xf32> to vector<4x16x16xbf16>
    %cst_53 = arith.constant dense<0.000000e+00> : vector<4x16x32xf32>
    %138 = tpu.matmul %137, %115, %cst_53 {dimension_numbers = #tpu.dot_dimension_numbers<[2], [1], [1], [2], [0, 0, 0, 1, 1, 2], [0], [0]>} : vector<4x16x16xbf16>, vector<4x16x32xbf16>, vector<4x16x32xf32> -> vector<4x16x32xf32>
    %139 = arith.addf %136, %138 : vector<4x16x32xf32>
    %140 = tpu.reciprocal %134 {approx = true} : vector<4x16x1xf32> -> vector<4x16x1xf32>
    %141 = vector.broadcast %140 : vector<4x16x1xf32> to vector<4x16x32xf32>
    %142 = arith.mulf %139, %141 : vector<4x16x32xf32>
    %143 = tpu.transpose %142, [1, 0, 2] : vector<4x16x32xf32> -> vector<16x4x32xf32>
    %144 = vector.shape_cast %143 : vector<16x4x32xf32> to vector<16x128xf32>
    %145 = tpu.concatenate %90, %144 in 0 : vector<16x128xf32>, vector<16x128xf32> -> vector<32x128xf32>
    %146 = arith.truncf %145 : vector<32x128xf32> to vector<32x128xbf16>
    %cst_54 = arith.constant dense<0.000000e+00> : vector<32x128xf32>
    %147 = tpu.matmul %146, %19, %cst_54 {dimension_numbers = #tpu.dot_dimension_numbers<[1], [0], [0], [1], [0, 0, 1, 1], [], []>} : vector<32x128xbf16>, vector<128x128xbf16>, vector<32x128xf32> -> vector<32x128xf32>
    %148 = vector.broadcast %21 : vector<1x128xf32> to vector<32x128xf32>
    %149 = arith.addf %147, %148 : vector<32x128xf32>
    %150 = arith.addf %149, %3 : vector<32x128xf32>
    %c0_55 = arith.constant 0 : index
    %c0_56 = arith.constant 0 : index
    %c0_57 = arith.constant 0 : index
    %151 = vector.load %arg13[%c0_55, %c0_56, %c0_57] : memref<1x1x128xf32, #tpu.memory_space<vmem>>, vector<1x1x128xf32>
    %152 = vector.shape_cast %151 : vector<1x1x128xf32> to vector<1x128xf32>
    %c0_58 = arith.constant 0 : index
    %c0_59 = arith.constant 0 : index
    %c0_60 = arith.constant 0 : index
    %153 = vector.load %arg14[%c0_58, %c0_59, %c0_60] : memref<1x1x128xf32, #tpu.memory_space<vmem>>, vector<1x1x128xf32>
    %154 = vector.shape_cast %153 : vector<1x1x128xf32> to vector<1x128xf32>
    %cst_61 = arith.constant dense<0.000000e+00> : vector<32xf32>
    %155 = vector.multi_reduction <add>, %150, %cst_61 [1] : vector<32x128xf32> to vector<32xf32>
    %156 = vector.shape_cast %155 : vector<32xf32> to vector<32x1xf32>
    %cst_62 = arith.constant 7.812500e-03 : f32
    %157 = vector.broadcast %cst_62 : f32 to vector<32x1xf32>
    %158 = arith.mulf %156, %157 : vector<32x1xf32>
    %159 = arith.mulf %150, %150 : vector<32x128xf32>
    %cst_63 = arith.constant dense<0.000000e+00> : vector<32xf32>
    %160 = vector.multi_reduction <add>, %159, %cst_63 [1] : vector<32x128xf32> to vector<32xf32>
    %161 = vector.shape_cast %160 : vector<32xf32> to vector<32x1xf32>
    %cst_64 = arith.constant 7.812500e-03 : f32
    %162 = vector.broadcast %cst_64 : f32 to vector<32x1xf32>
    %163 = arith.mulf %161, %162 : vector<32x1xf32>
    %164 = arith.mulf %158, %158 : vector<32x1xf32>
    %165 = arith.subf %163, %164 : vector<32x1xf32>
    %cst_65 = arith.constant 0.000000e+00 : f32
    %166 = vector.broadcast %cst_65 : f32 to vector<32x1xf32>
    %167 = arith.maximumf %165, %166 : vector<32x1xf32>
    %168 = vector.broadcast %158 : vector<32x1xf32> to vector<32x128xf32>
    %169 = arith.subf %150, %168 : vector<32x128xf32>
    %cst_66 = arith.constant 9.99999996E-13 : f32
    %170 = vector.broadcast %cst_66 : f32 to vector<32x1xf32>
    %171 = arith.addf %167, %170 : vector<32x1xf32>
    %172 = math.rsqrt %171 : vector<32x1xf32>
    %173 = vector.broadcast %172 : vector<32x1xf32> to vector<32x128xf32>
    %174 = arith.mulf %169, %173 : vector<32x128xf32>
    %175 = vector.broadcast %152 : vector<1x128xf32> to vector<32x128xf32>
    %176 = arith.mulf %174, %175 : vector<32x128xf32>
    %177 = vector.broadcast %154 : vector<1x128xf32> to vector<32x128xf32>
    %178 = arith.addf %176, %177 : vector<32x128xf32>
    %c0_67 = arith.constant 0 : index
    %c0_68 = arith.constant 0 : index
    %c0_69 = arith.constant 0 : index
    %179 = vector.load %arg15[%c0_67, %c0_68, %c0_69] : memref<1x128x256xbf16, #tpu.memory_space<vmem>>, vector<1x128x256xbf16>
    %180 = vector.shape_cast %179 : vector<1x128x256xbf16> to vector<128x256xbf16>
    %c0_70 = arith.constant 0 : index
    %c0_71 = arith.constant 0 : index
    %c0_72 = arith.constant 0 : index
    %181 = vector.load %arg16[%c0_70, %c0_71, %c0_72] : memref<1x1x256xf32, #tpu.memory_space<vmem>>, vector<1x1x256xf32>
    %182 = vector.shape_cast %181 : vector<1x1x256xf32> to vector<1x256xf32>
    %c0_73 = arith.constant 0 : index
    %c0_74 = arith.constant 0 : index
    %c0_75 = arith.constant 0 : index
    %183 = vector.load %arg17[%c0_73, %c0_74, %c0_75] : memref<1x256x128xbf16, #tpu.memory_space<vmem>>, vector<1x256x128xbf16>
    %184 = vector.shape_cast %183 : vector<1x256x128xbf16> to vector<256x128xbf16>
    %c0_76 = arith.constant 0 : index
    %c0_77 = arith.constant 0 : index
    %c0_78 = arith.constant 0 : index
    %185 = vector.load %arg18[%c0_76, %c0_77, %c0_78] : memref<1x1x128xf32, #tpu.memory_space<vmem>>, vector<1x1x128xf32>
    %186 = vector.shape_cast %185 : vector<1x1x128xf32> to vector<1x128xf32>
    %187 = arith.truncf %178 : vector<32x128xf32> to vector<32x128xbf16>
    %cst_79 = arith.constant dense<0.000000e+00> : vector<32x256xf32>
    %188 = tpu.matmul %187, %180, %cst_79 {dimension_numbers = #tpu.dot_dimension_numbers<[1], [0], [0], [1], [0, 0, 1, 1], [], []>} : vector<32x128xbf16>, vector<128x256xbf16>, vector<32x256xf32> -> vector<32x256xf32>
    %189 = vector.broadcast %182 : vector<1x256xf32> to vector<32x256xf32>
    %190 = arith.addf %188, %189 : vector<32x256xf32>
    %cst_80 = arith.constant 0.000000e+00 : f32
    %191 = vector.broadcast %cst_80 : f32 to vector<32x256xf32>
    %192 = arith.maximumf %190, %191 : vector<32x256xf32>
    %193 = arith.truncf %192 : vector<32x256xf32> to vector<32x256xbf16>
    %cst_81 = arith.constant dense<0.000000e+00> : vector<32x128xf32>
    %194 = tpu.matmul %193, %184, %cst_81 {dimension_numbers = #tpu.dot_dimension_numbers<[1], [0], [0], [1], [0, 0, 1, 1], [], []>} : vector<32x256xbf16>, vector<256x128xbf16>, vector<32x128xf32> -> vector<32x128xf32>
    %195 = vector.broadcast %186 : vector<1x128xf32> to vector<32x128xf32>
    %196 = arith.addf %194, %195 : vector<32x128xf32>
    %197 = arith.addf %196, %178 : vector<32x128xf32>
    %c0_82 = arith.constant 0 : index
    %c0_83 = arith.constant 0 : index
    %c0_84 = arith.constant 0 : index
    %198 = vector.load %arg19[%c0_82, %c0_83, %c0_84] : memref<1x1x128xf32, #tpu.memory_space<vmem>>, vector<1x1x128xf32>
    %199 = vector.shape_cast %198 : vector<1x1x128xf32> to vector<1x128xf32>
    %c0_85 = arith.constant 0 : index
    %c0_86 = arith.constant 0 : index
    %c0_87 = arith.constant 0 : index
    %200 = vector.load %arg20[%c0_85, %c0_86, %c0_87] : memref<1x1x128xf32, #tpu.memory_space<vmem>>, vector<1x1x128xf32>
    %201 = vector.shape_cast %200 : vector<1x1x128xf32> to vector<1x128xf32>
    %cst_88 = arith.constant dense<0.000000e+00> : vector<32xf32>
    %202 = vector.multi_reduction <add>, %197, %cst_88 [1] : vector<32x128xf32> to vector<32xf32>
    %203 = vector.shape_cast %202 : vector<32xf32> to vector<32x1xf32>
    %cst_89 = arith.constant 7.812500e-03 : f32
    %204 = vector.broadcast %cst_89 : f32 to vector<32x1xf32>
    %205 = arith.mulf %203, %204 : vector<32x1xf32>
    %206 = arith.mulf %197, %197 : vector<32x128xf32>
    %cst_90 = arith.constant dense<0.000000e+00> : vector<32xf32>
    %207 = vector.multi_reduction <add>, %206, %cst_90 [1] : vector<32x128xf32> to vector<32xf32>
    %208 = vector.shape_cast %207 : vector<32xf32> to vector<32x1xf32>
    %cst_91 = arith.constant 7.812500e-03 : f32
    %209 = vector.broadcast %cst_91 : f32 to vector<32x1xf32>
    %210 = arith.mulf %208, %209 : vector<32x1xf32>
    %211 = arith.mulf %205, %205 : vector<32x1xf32>
    %212 = arith.subf %210, %211 : vector<32x1xf32>
    %cst_92 = arith.constant 0.000000e+00 : f32
    %213 = vector.broadcast %cst_92 : f32 to vector<32x1xf32>
    %214 = arith.maximumf %212, %213 : vector<32x1xf32>
    %215 = vector.broadcast %205 : vector<32x1xf32> to vector<32x128xf32>
    %216 = arith.subf %197, %215 : vector<32x128xf32>
    %cst_93 = arith.constant 9.99999996E-13 : f32
    %217 = vector.broadcast %cst_93 : f32 to vector<32x1xf32>
    %218 = arith.addf %214, %217 : vector<32x1xf32>
    %219 = math.rsqrt %218 : vector<32x1xf32>
    %220 = vector.broadcast %219 : vector<32x1xf32> to vector<32x128xf32>
    %221 = arith.mulf %216, %220 : vector<32x128xf32>
    %222 = vector.broadcast %199 : vector<1x128xf32> to vector<32x128xf32>
    %223 = arith.mulf %221, %222 : vector<32x128xf32>
    %224 = vector.broadcast %201 : vector<1x128xf32> to vector<32x128xf32>
    %225 = arith.addf %223, %224 : vector<32x128xf32>
    %c0_94 = arith.constant 0 : index
    %c0_95 = arith.constant 0 : index
    %226 = vector.load %arg22[%c0_94, %c0_95] : memref<32x128xf32, #tpu.memory_space<vmem>>, vector<32x128xf32>
    tpu.vector_store %arg22[%c0_94, %c0_95], %225 {strides = array<i32>} : memref<32x128xf32, #tpu.memory_space<vmem>>, vector<32x128xf32>,
    %c1_i32 = arith.constant 1 : i32
    %227 = arith.cmpi eq, %arg1, %c1_i32 : i32
    %228 = arith.extui %227 : i1 to i32
    %c0_i32_96 = arith.constant 0 : i32
    %229 = arith.cmpi ne, %228, %c0_i32_96 : i32
    scf.if %229 {
      %230 = vector.shape_cast %225 : vector<32x128xf32> to vector<2x16x128xf32>
      %231 = arith.truncf %230 : vector<2x16x128xf32> to vector<2x16x128xbf16>
      %c0_97 = arith.constant 0 : index
      %c0_98 = arith.constant 0 : index
      %c0_99 = arith.constant 0 : index
      %232 = vector.load %arg21[%c0_97, %c0_98, %c0_99] : memref<2x16x128xbf16, #tpu.memory_space<vmem>>, vector<2x16x128xbf16>
      tpu.vector_store %arg21[%c0_97, %c0_98, %c0_99], %231 {strides = array<i32>} : memref<2x16x128xbf16, #tpu.memory_space<vmem>>, vector<2x16x128xbf16>,
    } else {
    }
    return
  }
  func.func @transform_0(%arg0: i32, %arg1: i32) -> (i32, i32, i32) {
    %c0_i32 = arith.constant 0 : i32
    %c0_i32_0 = arith.constant 0 : i32
    %c0_i32_1 = arith.constant 0 : i32
    return %arg0, %c0_i32, %c0_i32_0 : i32, i32, i32
  }
  func.func @transform_1(%arg0: i32, %arg1: i32) -> (i32, i32, i32) {
    %c0_i32 = arith.constant 0 : i32
    %c0_i32_0 = arith.constant 0 : i32
    %c0_i32_1 = arith.constant 0 : i32
    return %arg0, %c0_i32, %c0_i32_0 : i32, i32, i32
  }
  func.func @transform_2(%arg0: i32, %arg1: i32) -> (i32, i32, i32) {
    %c0_i32 = arith.constant 0 : i32
    %c0_i32_0 = arith.constant 0 : i32
    %c0_i32_1 = arith.constant 0 : i32
    return %arg0, %c0_i32, %c0_i32_0 : i32, i32, i32
  }
  func.func @transform_3(%arg0: i32, %arg1: i32) -> (i32, i32, i32) {
    %c0_i32 = arith.constant 0 : i32
    %c0_i32_0 = arith.constant 0 : i32
    %c0_i32_1 = arith.constant 0 : i32
    return %arg1, %c0_i32, %c0_i32_0 : i32, i32, i32
  }
  func.func @transform_4(%arg0: i32, %arg1: i32) -> (i32, i32, i32) {
    %c0_i32 = arith.constant 0 : i32
    %c0_i32_0 = arith.constant 0 : i32
    %c0_i32_1 = arith.constant 0 : i32
    return %arg1, %c0_i32, %c0_i32_0 : i32, i32, i32
  }
  func.func @transform_5(%arg0: i32, %arg1: i32) -> (i32, i32, i32) {
    %c0_i32 = arith.constant 0 : i32
    %c0_i32_0 = arith.constant 0 : i32
    %c0_i32_1 = arith.constant 0 : i32
    return %arg1, %c0_i32, %c0_i32_0 : i32, i32, i32
  }
  func.func @transform_6(%arg0: i32, %arg1: i32) -> (i32, i32, i32) {
    %c0_i32 = arith.constant 0 : i32
    %c0_i32_0 = arith.constant 0 : i32
    %c0_i32_1 = arith.constant 0 : i32
    return %arg1, %c0_i32, %c0_i32_0 : i32, i32, i32
  }
  func.func @transform_7(%arg0: i32, %arg1: i32) -> (i32, i32, i32) {
    %c0_i32 = arith.constant 0 : i32
    %c0_i32_0 = arith.constant 0 : i32
    %c0_i32_1 = arith.constant 0 : i32
    return %arg1, %c0_i32, %c0_i32_0 : i32, i32, i32
  }
  func.func @transform_8(%arg0: i32, %arg1: i32) -> (i32, i32, i32) {
    %c0_i32 = arith.constant 0 : i32
    %c0_i32_0 = arith.constant 0 : i32
    %c0_i32_1 = arith.constant 0 : i32
    return %arg1, %c0_i32, %c0_i32_0 : i32, i32, i32
  }
  func.func @transform_9(%arg0: i32, %arg1: i32) -> (i32, i32, i32) {
    %c0_i32 = arith.constant 0 : i32
    %c0_i32_0 = arith.constant 0 : i32
    %c0_i32_1 = arith.constant 0 : i32
    return %arg1, %c0_i32, %c0_i32_0 : i32, i32, i32
  }
  func.func @transform_10(%arg0: i32, %arg1: i32) -> (i32, i32, i32) {
    %c0_i32 = arith.constant 0 : i32
    %c0_i32_0 = arith.constant 0 : i32
    %c0_i32_1 = arith.constant 0 : i32
    return %arg1, %c0_i32, %c0_i32_0 : i32, i32, i32
  }
  func.func @transform_11(%arg0: i32, %arg1: i32) -> (i32, i32, i32) {
    %c0_i32 = arith.constant 0 : i32
    %c0_i32_0 = arith.constant 0 : i32
    %c0_i32_1 = arith.constant 0 : i32
    return %arg1, %c0_i32, %c0_i32_0 : i32, i32, i32
  }
  func.func @transform_12(%arg0: i32, %arg1: i32) -> (i32, i32, i32) {
    %c0_i32 = arith.constant 0 : i32
    %c0_i32_0 = arith.constant 0 : i32
    %c0_i32_1 = arith.constant 0 : i32
    return %arg1, %c0_i32, %c0_i32_0 : i32, i32, i32
  }
  func.func @transform_13(%arg0: i32, %arg1: i32) -> (i32, i32, i32) {
    %c0_i32 = arith.constant 0 : i32
    %c0_i32_0 = arith.constant 0 : i32
    %c0_i32_1 = arith.constant 0 : i32
    return %arg1, %c0_i32, %c0_i32_0 : i32, i32, i32
  }
  func.func @transform_14(%arg0: i32, %arg1: i32) -> (i32, i32, i32) {
    %c0_i32 = arith.constant 0 : i32
    %c0_i32_0 = arith.constant 0 : i32
    %c0_i32_1 = arith.constant 0 : i32
    return %arg1, %c0_i32, %c0_i32_0 : i32, i32, i32
  }
  func.func @transform_15(%arg0: i32, %arg1: i32) -> (i32, i32, i32) {
    %c0_i32 = arith.constant 0 : i32
    %c0_i32_0 = arith.constant 0 : i32
    %c0_i32_1 = arith.constant 0 : i32
    return %arg1, %c0_i32, %c0_i32_0 : i32, i32, i32
  }
  func.func @transform_16(%arg0: i32, %arg1: i32) -> (i32, i32, i32) {
    %c0_i32 = arith.constant 0 : i32
    %c0_i32_0 = arith.constant 0 : i32
    %c0_i32_1 = arith.constant 0 : i32
    return %arg1, %c0_i32, %c0_i32_0 : i32, i32, i32
  }
  func.func @transform_17(%arg0: i32, %arg1: i32) -> (i32, i32, i32) {
    %c0_i32 = arith.constant 0 : i32
    %c0_i32_0 = arith.constant 0 : i32
    %c0_i32_1 = arith.constant 0 : i32
    return %arg1, %c0_i32, %c0_i32_0 : i32, i32, i32
  }
  func.func @transform_18(%arg0: i32, %arg1: i32) -> (i32, i32, i32) {
    %c0_i32 = arith.constant 0 : i32
    %c0_i32_0 = arith.constant 0 : i32
    %c0_i32_1 = arith.constant 0 : i32
    return %arg1, %c0_i32, %c0_i32_0 : i32, i32, i32
  }
  func.func @transform_19(%arg0: i32, %arg1: i32) -> (i32, i32, i32) {
    %c0_i32 = arith.constant 0 : i32
    %c0_i32_0 = arith.constant 0 : i32
    %c0_i32_1 = arith.constant 0 : i32
    return %arg0, %c0_i32, %c0_i32_0 : i32, i32, i32
  }
}

</mosaic_0001>

<bundles_post_ra>
// kernel: tpu_custom_call.1
= control target key start
LH: loop header
LB: loop body
LE: loop exit
PB: predicated region body
PF: predicated region fallthrough
CT: control target
= control target key end

     0   :  { %s7742_s0 = inlined_call_operand.vmem [shape: bf16[2,16,128], index: 0, kind: input, shape index: {}]   ;;  %s7743_s1 = inlined_call_operand.vmem [shape: f32[2,16,1], index: 1, kind: input, shape index: {}]   ;;  %s7744_s2 = inlined_call_operand.vmem [shape: f32[2,1,16], index: 2, kind: input, shape index: {}]   ;;  %s7745_s3 = inlined_call_operand.hbm [shape: bf16[2,128,128], index: 3, kind: input, shape index: {}]   ;;  %s7746_s4 = inlined_call_operand.vmem [shape: f32[2,1,128], index: 4, kind: input, shape index: {}]   ;;  %s7747_s5 = inlined_call_operand.hbm [shape: bf16[2,128,128], index: 5, kind: input, shape index: {}]   ;;  %s7748_s6 = inlined_call_operand.vmem [shape: f32[2,1,128], index: 6, kind: input, shape index: {}]   ;;  %s7749_s7 = inlined_call_operand.hbm [shape: bf16[2,128,128], index: 7, kind: input, shape index: {}]   ;;  %s7750_s8 = inlined_call_operand.vmem [shape: f32[2,1,128], index: 8, kind: input, shape index: {}]   ;;  %s7751_s9 = inlined_call_operand.hbm [shape: bf16[2,128,128], index: 9, kind: input, shape index: {}]   ;;  %s7752_s10 = inlined_call_operand.vmem [shape: f32[2,1,128], index: 10, kind: input, shape index: {}]   ;;  %s7753_s11 = inlined_call_operand.vmem [shape: f32[2,1,128], index: 11, kind: input, shape index: {}]   ;;  %s7754_s12 = inlined_call_operand.vmem [shape: f32[2,1,128], index: 12, kind: input, shape index: {}]   ;;  %s7755_s13 = inlined_call_operand.hbm [shape: bf16[2,128,256], index: 13, kind: input, shape index: {}]   ;;  %s7756_s14 = inlined_call_operand.vmem [shape: f32[2,1,256], index: 14, kind: input, shape index: {}]   ;;  %s7757_s15 = inlined_call_operand.hbm [shape: bf16[2,256,128], index: 15, kind: input, shape index: {}]   ;;  %s7758_s16 = inlined_call_operand.vmem [shape: f32[2,1,128], index: 16, kind: input, shape index: {}]   ;;  %s7759_s17 = inlined_call_operand.vmem [shape: f32[2,1,128], index: 17, kind: input, shape index: {}]   ;;  %s7760_s18 = inlined_call_operand.vmem [shape: f32[2,1,128], index: 18, kind: input, shape index: {}]   ;;  %s7761_s19 = inlined_call_operand.hbm [shape: bf16[2,16,128], index: 19, kind: output, shape index: {}]  }
   0x1   :  { %7773 = sst [smem:[#allocation28_spill]] %s7742_s0 }
   0x2   :  { %7774 = sst [smem:[#allocation29_spill]] %s7743_s1 }
   0x3   :  { %7775 = sst [smem:[#allocation30_spill]] %s7744_s2 }
   0x4   :  { %7776 = sst [smem:[#allocation31_spill]] %s7745_s3 }
   0x5   :  { %7777 = sst [smem:[#allocation32_spill]] %s7747_s5 }
   0x6   :  { %7778 = sst [smem:[#allocation33_spill]] %s7749_s7 }
   0x7   :  { %7779 = sst [smem:[#allocation34_spill]] %s7750_s8 }
   0x8   :  { %7780 = sst [smem:[#allocation35_spill]] %s7751_s9 }
   0x9   :  { %7781 = sst [smem:[#allocation36_spill]] %s7752_s10 }
   0xa   :  { %7782 = sst [smem:[#allocation37_spill]] %s7753_s11 }
   0xb   :  { %7783 = sst [smem:[#allocation38_spill]] %s7754_s12 }
   0xc   :  { %7784 = sst [smem:[#allocation39_spill]] %s7755_s13 }
   0xd   :  { %7785 = sst [smem:[#allocation40_spill]] %s7756_s14 }
   0xe   :  { %7786 = sst [smem:[#allocation41_spill]] %s7757_s15 }
   0xf   :  { %7787 = sst [smem:[#allocation42_spill]] %s7758_s16 }
  0x10   :  { %7788 = sst [smem:[#allocation43_spill]] %s7759_s17 }
  0x11   :  { %7789 = sst [smem:[#allocation44_spill]] %s7760_s18 }
  0x12   :  { %7790 = sst [smem:[#allocation45_spill]] %s7761_s19 }
  0x13   :  { %24 = vsyncpa [#allocation4], 0 }
  0x14   :  { %26 = vsyncpa [#allocation4 + $0x1], 0 }
  0x15   :  { %27 = vsyncpa [#allocation7], 0 }
  0x16   :  { %29 = vsyncpa [#allocation7 + $0x1], 0 }
  0x17   :  { %30 = vsyncpa [#allocation10], 0 }
  0x18   :  { %32 = vsyncpa [#allocation10 + $0x1], 0 }
  0x19   :  { %33 = vsyncpa [#allocation13], 0 }
  0x1a   :  { %35 = vsyncpa [#allocation13 + $0x1], 0 }
  0x1b   :  { %36 = vsyncpa [#allocation5], 0  ;;  %s6087_s0 = smov 0   ;;  %s6089_s30 = smov 0  }
  0x1c   :  { %s6091_s20 = smov 0   ;;  %s6093_s21 = smov 0  }
  0x1d   :  { %s6095_s1 = smov 0   ;;  %s6097_s22 = smov 0  }
  0x1e LB: > { %7791 = sst [smem:[#allocation20_spill]] %s5957_s30  ;;  %s6116_s2 = sadd.s32 4294967295, %s5973_s22   ;;  %s5973_s22 = sphi %s6097_s22, %s42_s22   ;;  %s5969_s1 = sphi %s6095_s1, %s7847_s1   ;;  %s5965_s21 = sphi %s6093_s21, %s7846_s21   ;;  %s5961_s20 = sphi %s6091_s20, %s7845_s20   ;;  %s5957_s30 = sphi %s6089_s30, %s7844_s30   ;;  %s5953_s0 = sphi %s6087_s0, %s7843_s0  }
  0x1f   : > { %7792 = sst [smem:[#allocation21_spill]] %s5961_s20  ;;  %s51_s23 = sadd.s32 1, %s5969_s1 }
  0x20   : > { %7793 = sst [smem:[#allocation22_spill]] %s5969_s1  ;;  %p52_p0 = scmp.ge.s32.totalorder %s51_s23, 2 }
  0x21   : > { %7794 = sst [smem:[#allocation23_spill]] %s5973_s22  ;;  %s139_s24 = sadd.s32 1, %s5961_s20 }
  0x22   : > { %7795 = sst [smem:[#allocation24_spill]] %s6116_s2  ;;  %p146_p1 = scmp.ne.s32.totalorder %s5961_s20, %s5957_s30 }
  0x23   : > { %p147_p2 = scmp.eq.s32.totalorder %s5973_s22, 0  ;;  %s7849_s23 = smov (%p52_p0, %s51_s23), 0 }
  0x24   : > { %7796 = sst [smem:[#allocation25_spill]] %s7849_s23  ;;  %p152_p4 = scmp.ne.s32.totalorder %s5957_s30, %s5953_s0 }
  0x25   : > { %p148_p3 = por %p147_p2, %p146_p1  ;;  %s136_s25 = ssub.s32 %s5969_s1, %s7849_s23 }
  0x26   : > { %p153_p5 = scmp.eq.s32.totalorder %s6116_s2, 0  ;;  %p137_p6 = scmp.eq.s32.totalorder %s136_s25, 0 }
  0x27   : > { %p5477_p8 = scmp.lt.s32.totalorder %s5973_s22, 2  ;;  %s6138_s27 = sand.u32 1, %s5961_s20  }
  0x28   : > { %p6129_p7 = por %p153_p5, %p152_p4  ;;  %s6141_s28 = sshll.u32 %s5969_s1, 6 }
  0x29   : > { %s6135_s26 = scalar_select %p137_p6, %s5961_s20, %s139_s24  }
  0x2a   : > { %s6144_s29 = sshll.u32 %s6138_s27, 6  ;;  %p6146_p9 = pnand %p5477_p8, %p148_p3 }
  0x2b   : > { %7798 = sst [smem:[#allocation26_spill]] %s6135_s26  ;;  %s648_s25 = sand.u32 1, %s5973_s22  }
  0x2c   : > { %s7800_s5 = sld [smem:[#allocation32_spill]]  ;;  %s652_s20 = scalar_lea.vmem [#allocation6], %s6144_s29 }
  0x2d   : > { %s660_s19 = sshll.u32 %s652_s20, 4  ;;  %p5066_p10 = scmp.ge.s32.totalorder %s5973_s22, 1  ;;  %s661_s19 = int_to_ptr.vmem [resolvable:$true] %s660_s19 }
  0x2e   : > { %s6157_s17 = scalar_lea.sflag [#allocation7], %s648_s25  ;;  %s7768_s14 = smov 64  }
  0x2f   : > { %s5976_s16 = smov 4   ;;  %p811_p11 = scmp.lt.s32.totalorder %s5973_s22, 3 }
  0x30   : > { %s7801_s9 = sld [smem:[#allocation35_spill]]  ;;  %s708_s12 = scalar_lea.vmem [#allocation9], %s6144_s29 }
  0x31   : > { %p6170_p12 = pnand %p5066_p10, %p811_p11  ;;  %s716_s11 = sshll.u32 %s708_s12, 4  ;;  %s717_s11 = int_to_ptr.vmem [resolvable:$true] %s716_s11 }
  0x32   : > { %s657_s26 = scalar_lea.hbm %s7800_s5, %s6141_s28  ;;  %s6175_s10 = scalar_lea.sflag [#allocation10], %s648_s25 }
  0x33   : > { %s658_s18 = sshll.u32 %s657_s26, 4  ;;  %s7803_s23 = sld [smem:[#allocation31_spill]]  ;;  %s659_s18 = int_to_ptr.hbm [resolvable:$true] %s658_s18 }
  0x34   : > { %5464 = dma.hbm_to_vmem [thread:$0]  (!%p6146_p9), %s659_s18, 1024, %s661_s19, %s6157_s17, %s7768_s14, %s7768_s14, %s5976_s16  }
  0x35   : > { %s621_s25 = scalar_lea.sflag [#allocation4], %s6138_s27  ;;  %s7804_s7 = sld [smem:[#allocation33_spill]] }
  0x36   : > { %s713_s26 = scalar_lea.hbm %s7801_s9, %s6141_s28  ;;  %s624_s9 = scalar_lea.vmem [#allocation3], %s6144_s29 }
  0x37   : > { %s714_s5 = sshll.u32 %s713_s26, 4  ;;  %s632_s12 = sshll.u32 %s624_s9, 4  ;;  %s715_s5 = int_to_ptr.hbm [resolvable:$true] %s714_s5  ;;  %s633_s12 = int_to_ptr.vmem [resolvable:$true] %s632_s12 }
  0x38   : > { %5470 = dma.hbm_to_vmem [thread:$0]  (!%p6146_p9), %s715_s5, 1024, %s717_s11, %s6175_s10, %s7768_s14, %s7768_s14, %s5976_s16  }
  0x39   : > { %s629_s20 = scalar_lea.hbm %s7803_s23, %s6141_s28  ;;  %s680_s18 = scalar_lea.vmem [#allocation8], %s6144_s29 }
  0x3a   : > { %s630_s26 = sshll.u32 %s629_s20, 4  ;;  %s688_s19 = sshll.u32 %s680_s18, 4  ;;  %s631_s26 = int_to_ptr.hbm [resolvable:$true] %s630_s26  ;;  %s689_s19 = int_to_ptr.vmem [resolvable:$true] %s688_s19 }
  0x3b   : > { %5461 = dma.hbm_to_vmem [thread:$0]  (!%p6146_p9), %s631_s26, 1024, %s633_s12, %s621_s25, %s7768_s14, %s7768_s14, %s5976_s16  }
  0x3c   : > { %s685_s5 = scalar_lea.hbm %s7804_s7, %s6141_s28  ;;  %s5060_s9 = sshll.u32 %s6138_s27, 7 }
  0x3d   : > { %s686_s11 = sshll.u32 %s685_s5, 4  ;;  %s5356_s23 = sshll.u32 %s5969_s1, 7  ;;  %s687_s11 = int_to_ptr.hbm [resolvable:$true] %s686_s11 }
  0x3e   : > { %5467 = dma.hbm_to_vmem [thread:$0]  (!%p6146_p9), %s687_s11, 1024, %s689_s19, %s6157_s17, %s7768_s14, %s7768_s14, %s5976_s16  }
  0x3f   : > { %s7805_s13 = sld [smem:[#allocation39_spill]]  ;;  %s748_s28 = scalar_lea.vmem [#allocation11], %s5060_s9 }
  0x40   : > { %s756_s12 = sshll.u32 %s748_s28, 4  ;;  %s5977_s29 = smov 128   ;;  %s757_s12 = int_to_ptr.vmem [resolvable:$true] %s756_s12 }
  0x41   : > { %s5978_s25 = smov 8   ;;  %s7806_s15 = sld [smem:[#allocation41_spill]] }
  0x42   : > { %s777_s11 = scalar_lea.vmem [#allocation12], %s5060_s9  ;;  %s774_s20 = scalar_lea.sflag [#allocation13], %s6138_s27 }
  0x43   : > { %s785_s19 = sshll.u32 %s777_s11, 4  ;;  %s7807_s26 = smov 64   ;;  %s786_s19 = int_to_ptr.vmem [resolvable:$true] %s785_s19 }
  0x45   : > { %s753_s8 = scalar_lea.hbm %s7805_s13, %s5356_s23 }
  0x46   : > { %s754_s22 = sshll.u32 %s753_s8, 4  ;;  %815 = sbr.rel (%p6170_p12) target bundleno = 2124 (0x84c), region = 96  ;;  %s755_s22 = int_to_ptr.hbm [resolvable:$true] %s754_s22 }
  0x47   : > { %5473 = dma.hbm_to_vmem [thread:$0]  (!%p6146_p9), %s755_s22, 2048, %s757_s12, %s6175_s10, %s5977_s29, %s5977_s29, %s5978_s25  }
  0x48   : > { %s782_s17 = scalar_lea.hbm %s7806_s15, %s5356_s23 }
  0x49   : > { %s783_s14 = sshll.u32 %s782_s17, 4  ;;  %s784_s14 = int_to_ptr.hbm [resolvable:$true] %s783_s14 }
  0x4a   : > { %5476 = dma.hbm_to_vmem [thread:$0]  (!%p6146_p9), %s784_s14, 2048, %s786_s19, %s774_s20, %s7807_s26, %s7807_s26, %s5976_s16  }
  0x4b   : > { %s817_s10 = sand.u32 1, %s5957_s30  }
  0x4c   : > { %s5067_s8 = sshll.u32 %s817_s10, 6  ;;  %s818_s22 = scalar_lea.sflag [#allocation4], %s817_s10 }
  0x4d   : > { %s6225_s23 = scalar_lea.vmem [#allocation3], %s5067_s8 }
  0x4e   : > { %5932 = dma.done.wait (%p6129_p7), %s818_s22, 1024  }
  0x4f   : > { %5934 = vsyncadd (%p6129_p7), %s818_s22, 4294966272  ;;  %s827_s27 = sand.u32 1, %s6116_s2   ;;  %s6232_s14 = scalar_lea.vmem [#allocation6], %s5067_s8 }
  0x50   : > { %s828_s0 = scalar_lea.sflag [#allocation7], %s827_s27 }
  0x51   : > { %5936 = dma.done.wait (%p6129_p7), %s828_s0, 2048  }
  0x52   : > { %5938 = vsyncadd (%p6129_p7), %s828_s0, 4294965248  ;;  %s6238_s16 = scalar_lea.vmem [#allocation8], %s5067_s8  ;;  %s848_s24 = scalar_lea.sflag [#allocation10], %s827_s27 }
  0x53   : > { %s6240_s9 = scalar_lea.vmem [#allocation9], %s5067_s8 }
  0x54   : > { %5940 = dma.done.wait (%p6129_p7), %s848_s24, 3072  }
  0x55   : > { %5942 = vsyncadd (%p6129_p7), %s848_s24, 4294964224  ;;  %s5071_s28 = sshll.u32 %s817_s10, 7  ;;  %s868_s29 = scalar_lea.sflag [#allocation13], %s817_s10 }
  0x56   : > { %s6246_s12 = scalar_lea.vmem [#allocation11], %s5071_s28  ;;  %s6248_s25 = scalar_lea.vmem [#allocation12], %s5071_s28 }
  0x57   : > { %7808 = sst [smem:[#allocation27_spill]] %s6248_s25 }
  0x58   : > { %5944 = dma.done.wait (%p6129_p7), %s868_s29, 2048  }
  0x59   : > { %5946 = vsyncadd (%p6129_p7), %s868_s29, 4294965248  ;;  %p1013_p13 = scmp.lt.s32.totalorder %s5965_s21, 1  ;;  %s7809_s8 = sld [smem:[#allocation34_spill]] }
  0x5a   : > { %s7812_s3 = sld [smem:[#allocation38_spill]]  ;;  %p5074_p0 = scmp.ne.s32.totalorder %s5965_s21, 0 }
  0x5b   : > { %s6256_s5 = scalar_select %p1013_p13, %s5965_s21, 1 }
  0x5c   : > { %s7813_s20 = sld [smem:[#allocation42_spill]] }
  0x5d   : > { %s5073_s30 = sshll.u32 %s6256_s5, 1  ;;  %s7815_s24 = sld [smem:[#allocation43_spill]] }
  0x5e   : > { %s7816_s17 = sld [smem:[#allocation44_spill]] }
  0x5f   : > { %s6270_s22 = scalar_lea.vmem %s7809_s8, %s6256_s5  ;;  %s7814_s8 = sld [smem:[#allocation40_spill]] }
  0x60   : > { %s1030_s1 = scalar_lea.vmem %s7812_s3, %s6256_s5  ;;  %s7817_s3 = sld [smem:[#allocation28_spill]] (!%p5074_p0) }
  0x61   : > { %1049 = sbr.rel (%p5074_p0) target bundleno = 109 (0x6d), region = 124 }
  0x62   : > { %s1037_s2 = scalar_lea.vmem %s7813_s20, %s6256_s5 }
  0x63   : > { %s1040_s28 = scalar_lea.vmem %s7815_s24, %s6256_s5 }
  0x64   : > { %s1043_s7 = scalar_lea.vmem %s7816_s17, %s6256_s5 }
  0x65   : > { %s6292_s25 = scalar_lea.vmem %s7814_s8, %s5073_s30 }
  0x66   : > { %v5423_v0 = vld [vmem:[%s7817_s3] sm:$0xff]   ;;  %v5440_v1 = vld [vmem:[%s7817_s3 + $0x8] sm:$0xff]  }
  0x67   : > { %v5424_v2 = vunpack.c.l.bf16 %v5423_v0  ;;  %v5425_v3 = vunpack.c.h.bf16 %v5423_v0  ;;  %v5428_v4 = vunpack.c.l.bf16 %v5440_v1  ;;  %v5429_v5 = vunpack.c.h.bf16 %v5440_v1 }
  0x69   : > { %1058 = vst [vmem:[#allocation2 + $0x10] sm:$0xff] %v5424_v2 }
  0x6a   : > { %1059 = vst [vmem:[#allocation2] sm:$0xff] %v5425_v3 }
  0x6b   : > { %1060 = vst [vmem:[#allocation2 + $0x18] sm:$0xff] %v5428_v4 }
  0x6c   : > { %1061 = vst [vmem:[#allocation2 + $0x8] sm:$0xff] %v5429_v5 }
  0x6d PF: > { %v5365_v6 = vld [vmem:[%s6225_s23 + $0x38] sm:$0xff]  ;;  %v5364_v8 = vld [vmem:[%s6225_s23 + $0x30] sm:$0xff]  ;;  %v5363_v10 = vld [vmem:[%s6225_s23 + $0x28] sm:$0xff]  ;;  %s5979_s10 = smov 32   ;;  %s5980_s8 = smov 64   ;;  %v5982_v56 = vmov 0  }
  0x6e   : > { %v5373_v7 = vld [vmem:[%s6232_s14 + $0x38] sm:$0xff]  ;;  %1193 = vmatpush.bf16.msra.mxu0 %v5365_v6  ;;  %v5372_v9 = vld [vmem:[%s6232_s14 + $0x30] sm:$0xff]  ;;  %v5371_v11 = vld [vmem:[%s6232_s14 + $0x28] sm:$0xff]  ;;  %s5981_s27 = smov 96   ;;  %s7820_s29 = sld [smem:[#allocation29_spill]]  ;;  %5540 = vset.pattern.permute.xlu0 %v5982_v56  ;;  %vm1413_vm2 = vcmask 1047556  }
  0x6f   : > { %1263 = vmatpush.bf16.msra.mxu1 %v5373_v7  ;;  %v5381_v12 = vld [vmem:[%s6238_s16 + $0x38] sm:$0xff]  ;;  %v5362_v13 = vld [vmem:[%s6225_s23 + $0x20] sm:$0xff]  ;;  %v5380_v14 = vld [vmem:[%s6238_s16 + $0x30] sm:$0xff]  ;;  %5541 = vset.pattern.permute.xlu1 %v5982_v56  ;;  %vm2115_vm3 = vcmask 261120   ;;  %s7821_s20 = sld [smem:[#allocation30_spill]]  ;;  %vm2226_vm8 = vcmask 130048  }
  0x70   : > { %1333 = vmatpush.bf16.msra.mxu2 %v5381_v12  ;;  %v5370_v15 = vld [vmem:[%s6232_s14 + $0x20] sm:$0xff]  ;;  %v5379_v16 = vld [vmem:[%s6238_s16 + $0x28] sm:$0xff]  ;;  %v5361_v17 = vld [vmem:[%s6225_s23 + $0x18] sm:$0xff]  ;;  %5542 = vset.pattern.permute.xlu2 %v5982_v56  ;;  %s7831_s0 = sld [smem:[#allocation36_spill]]  ;;  %p5347_p1 = scmp.ne.s32.totalorder %s5965_s21, 1 }
  0x71   : > { %v5369_v18 = vld [vmem:[%s6232_s14 + $0x18] sm:$0xff]  ;;  %v5378_v19 = vld [vmem:[%s6238_s16 + $0x20] sm:$0xff]  ;;  %v5360_v20 = vld [vmem:[%s6225_s23 + $0x10] sm:$0xff]  ;;  %s7835_s17 = sld [smem:[#allocation27_spill]] }
  0x72   : > { %1194 = vmatpush.bf16.msra.mxu0 %v5364_v8  ;;  %v5368_v21 = vld [vmem:[%s6232_s14 + $0x10] sm:$0xff]  ;;  %v5377_v22 = vld [vmem:[%s6238_s16 + $0x18] sm:$0xff]  ;;  %v5359_v23 = vld [vmem:[%s6225_s23 + $0x8] sm:$0xff] }
  0x73   : > { %1264 = vmatpush.bf16.msra.mxu1 %v5372_v9  ;;  %v5367_v24 = vld [vmem:[%s6232_s14 + $0x8] sm:$0xff]  ;;  %v5376_v25 = vld [vmem:[%s6238_s16 + $0x10] sm:$0xff]  ;;  %v5358_v26 = vld [vmem:[%s6225_s23] sm:$0xff]  ;;  %v5983_v9 = vmov 1983009808  }
  0x74   : > { %1334 = vmatpush.bf16.msra.mxu2 %v5380_v14  ;;  %v5366_v27 = vld [vmem:[%s6232_s14] sm:$0xff]  ;;  %v1062_v28 = vld [vmem:[#allocation2 + $0x10] sm:$0xff]  ;;  %v5375_v30 = vld [vmem:[%s6238_s16 + $0x8] sm:$0xff]  ;;  %s7818_s14 = scalar_lea.vmem %s7748_s6, %s6256_s5 }
  0x75   : > { %v1063_v29 = vld [vmem:[#allocation2] sm:$0xff]  ;;  %v1064_v33 = vld [vmem:[#allocation2 + $0x18] sm:$0xff]  ;;  %v1065_v34 = vld [vmem:[#allocation2 + $0x8] sm:$0xff]  ;;  %s7822_s11 = smov %s7821_s20 }
  0x76   : > { %1195 = vmatpush.bf16.msra.mxu0 %v5363_v10  ;;  %v1140_v31 = vpack.c.bf16 %v1063_v29, %v1062_v28  ;;  %v5374_v32 = vld [vmem:[%s6238_s16] sm:$0xff]  ;;  %v1141_v35 = vpack.c.bf16 %v1065_v34, %v1064_v33  ;;  %s7819_s16 = scalar_lea.vmem %s7746_s4, %s6256_s5  ;;  %v1067_v60 = vld [vmem:[%s7820_s29 + $0x8] sm:$0xff]  ;;  %v1404_v10 = vunpack.c.l.s4 %v5983_v9  ;;  %s7832_s24 = scalar_lea.vmem %s7831_s0, %s6256_s5 }
  0x77   : > { %1265 = vmatpush.bf16.msra.mxu1 %v5371_v11  ;;  %v6338_v36 = vld [vmem:[%s7818_s14] ss:$0 sm:$0xff]  ;;  %vm2092_vm1 = vcmp.gt.f32.partialorder %v1067_v60, 0.5 }
  0x78   : > { %1335 = vmatpush.bf16.msra.mxu2 %v5379_v16  ;;  %v6345_v38 = vld [vmem:[%s7819_s16] ss:$0 sm:$0xff]  ;;  %v2095_v61 = vsel %vm2092_vm1, 1, %v5982_v56  ;;  %v6438_v11 = vunpack.c.0.s8 %v1404_v10 }
  0x79   : > { %v5575_v50 = vld [vmem:[%s6270_s22] ss:$0 sm:$0xff] }
  0x7a   : > { %1196 = vmatpush.bf16.msra.mxu0 %v5362_v13  ;;  %v1066_v54 = vld [vmem:[%s7820_s29] sm:$0xff]  ;;  %v5984_v13 = vmov 1934713408  }
  0x7b   : > { %1266 = vmatpush.bf16.msra.mxu1 %v5370_v15  ;;  %vm2091_vm0 = vcmp.gt.f32.partialorder %v1066_v54, 0.5  ;;  %v1418_v14 = vunpack.c.l.s4 %v5984_v13 }
  0x7c   : > { %1336 = vmatpush.bf16.msra.mxu2 %v5378_v19  ;;  %v2094_v58 = vsel %vm2091_vm0, 1, %v5982_v56 }
  0x7e   : > { %1197 = vmatpush.bf16.msra.mxu0 %v5361_v17 }
  0x7f   : > { %1267 = vmatpush.bf16.msra.mxu1 %v5369_v18 }
  0x80   : > { %1337 = vmatpush.bf16.msra.mxu2 %v5377_v22 }
  0x82   : > { %1198 = vmatpush.bf16.msra.mxu0 %v5360_v20 }
  0x83   : > { %1268 = vmatpush.bf16.msra.mxu1 %v5368_v21 }
  0x84   : > { %1338 = vmatpush.bf16.msra.mxu2 %v5376_v25  ;;  %v6443_v25 = vunpack.c.0.s8 %v1418_v14 }
  0x86   : > { %1199 = vmatpush.bf16.msra.mxu0 %v5359_v23 }
  0x87   : > { %1269 = vmatpush.bf16.msra.mxu1 %v5367_v24 }
  0x88   : > { %1339 = vmatpush.bf16.msra.mxu2 %v5375_v30 }
  0x8a   : > { %1200 = vmatpush.bf16.msra.mxu0 %v5358_v26 }
  0x8b   : > { %1270 = vmatpush.bf16.msra.mxu1 %v5366_v27 }
  0x8c   : > { %1340 = vmatpush.bf16.msra.mxu2 %v5374_v32 }
  0x8d   : > { %1201 = vmatmul.bf16.vlgmr.msra.gmra.mxu0 %v1140_v31 }
  0x8e   : > { %1271 = vmatmul.bf16.vlgmr.msra.gmra.mxu1 %v1140_v31 }
  0x8f   : > { %1341 = vmatmul.bf16.vlgmr.msra.gmra.mxu2 %v1140_v31 }
  0x9d   : > { %1206 = vmatmul.bf16.gmra.mxu0 %v1141_v35 }
  0x9e   : > { %1276 = vmatmul.bf16.gmra.mxu1 %v1141_v35 }
  0x9f   : > { %1346 = vmatmul.bf16.gmra.mxu2 %v1141_v35 }
 0x10a   : > { %v1202_v40 = vpop.f32.mrf.mxu0 }
 0x10b   : > { %v1272_v37 = vpop.f32.mrf.mxu1  ;;  %v1203_v42 = vadd.f32 %v6345_v38, %v1202_v40 }
 0x10c   : > { %v1273_v39 = vadd.f32 %v6338_v36, %v1272_v37 }
 0x10d   : > { %v6357_v44 = vpack.c.bf16 %v1203_v42, %v1203_v42 }
 0x10e   : > { %v6348_v41 = vpack.c.bf16 %v1273_v39, %v1273_v39 }
 0x10f   : > { %v1381_v34 = vshrl.u32 %v6357_v44, 16 }
 0x110   : > { %1617 = vrot.lane.b32.xlu2 %v6348_v41, %s5979_s10  ;;  %1613 = vrot.lane.b32.xlu1 %v6348_v41, %s5980_s8  ;;  %v1624_v21 = vshrl.u32 %v6348_v41, 16 }
 0x111   : > { %1609 = vrot.lane.b32.xlu0 %v6348_v41, %s5981_s27 }
 0x112   : > { %v1204_v47 = vpop.f32.mrf.mxu0  ;;  %v1342_v51 = vpop.f32.mrf.mxu2 }
 0x113   : > { %v1274_v43 = vpop.f32.mrf.mxu1  ;;  %v1205_v48 = vadd.f32 %v6345_v38, %v1204_v47  ;;  %v1343_v52 = vadd.f32 %v5575_v50, %v1342_v51 }
 0x114   : > { %v1275_v45 = vadd.f32 %v6338_v36, %v1274_v43 }
 0x115   : > { %v6369_v49 = vpack.c.bf16 %v1205_v48, %v1205_v48  ;;  %v6384_v53 = vpack.c.bf16 %v1343_v52, %v1343_v52 }
 0x116   : > { %v6360_v46 = vpack.c.bf16 %v1275_v45, %v1275_v45 }
 0x118   : > { %1615 = vrot.lane.b32.xlu1 %v6360_v46, %s5980_s8  ;;  %1370 = vrot.lane.b32.xlu2 %v6357_v44, %s5980_s8 }
 0x119   : > { %1611 = vrot.lane.b32.xlu0 %v6360_v46, %s5981_s27 }
 0x11a   : > { %v1344_v55 = vpop.f32.mrf.mxu2  ;;  %v1207_v1 = vpop.f32.mrf.mxu0 }
 0x11b   : > { %v1345_v57 = vadd.f32 %v5575_v50, %v1344_v55  ;;  %v1277_v62 = vpop.f32.mrf.mxu1  ;;  %v1208_v2 = vadd.f32 %v6345_v38, %v1207_v1 }
 0x11c   : > { %v1278_v63 = vadd.f32 %v6338_v36, %v1277_v62 }
 0x11d   : > { %v6397_v59 = vpack.c.bf16 %v1345_v57, %v1345_v57  ;;  %v6417_v3 = vpack.c.bf16 %v1208_v2, %v1208_v2 }
 0x11e   : > { %v6408_v0 = vpack.c.bf16 %v1278_v63, %v1278_v63  ;;  %v1636_v63 = vshrl.u32 %v6360_v46, 16 }
 0x120   : > { %1368 = vrot.lane.b32.xlu1 %v6369_v49, %s5981_s27  ;;  %1619 = vrot.lane.b32.xlu2 %v6360_v46, %s5979_s10 }
 0x121   : > { %1366 = vrot.lane.b32.xlu0 %v6357_v44, %s5981_s27 }
 0x122   : > { %v1209_v35 = vpop.f32.mrf.mxu0 }
 0x123   : > { %v1279_v5 = vpop.f32.mrf.mxu1  ;;  %v1210_v54 = vadd.f32 %v6345_v38, %v1209_v35 }
 0x124   : > { %v1280_v6 = vadd.f32 %v6338_v36, %v1279_v5 }
 0x126   : > { %v6428_v7 = vpack.c.bf16 %v1280_v6, %v1280_v6  ;;  %v1393_v6 = vshrl.u32 %v6369_v49, 16 }
 0x128   : > { %1374 = vrot.lane.b32.xlu1 %v6357_v44, %s5979_s10  ;;  %1376 = vrot.lane.b32.xlu2 %v6369_v49, %s5979_s10 }
 0x129   : > { %1372 = vrot.lane.b32.xlu0 %v6369_v49, %s5980_s8 }
 0x130   : > { %1851 = vrot.lane.b32.xlu2 %v6384_v53, %s5981_s27  ;;  %2100 = vperm.xlu1 %5541, %v2095_v61  }
 0x131   : > { %2097 = vperm.xlu0 %5540, %v2094_v58  }
 0x138   : > { %1855 = vrot.lane.b32.xlu2 %v6384_v53, %s5980_s8  ;;  %1859 = vrot.lane.b32.xlu1 %v6384_v53, %s5979_s10 }
 0x139   : > { %1857 = vrot.lane.b32.xlu0 %v6397_v59, %s5980_s8 }
 0x140   : > { %1861 = vrot.lane.b32.xlu2 %v6397_v59, %s5979_s10  ;;  %1853 = vrot.lane.b32.xlu1 %v6397_v59, %s5981_s27 }
 0x141   : > { %2972 = vrot.lane.b32.xlu0 %v6408_v0, %s5981_s27 }
 0x148   : > { %2976 = vrot.lane.b32.xlu2 %v6408_v0, %s5980_s8  ;;  %2980 = vrot.lane.b32.xlu1 %v6408_v0, %s5979_s10 }
 0x149   : > { %2730 = vrot.lane.b32.xlu0 %v6417_v3, %s5981_s27 }
 0x150   : > { %2974 = vrot.lane.b32.xlu1 %v6428_v7, %s5981_s27  ;;  %2982 = vrot.lane.b32.xlu2 %v6428_v7, %s5979_s10 }
 0x151   : > { %2734 = vrot.lane.b32.xlu0 %v6417_v3, %s5980_s8 }
 0x159   : > { %2978 = vrot.lane.b32.xlu0 %v6428_v7, %s5980_s8 }
 0x16a   : > { %v1618_v4 = vpop.permute.xlu2 %1617 }
 0x16b   : > { %v1631_v15 = vshrl.u32 %v1618_v4, 16 }
 0x172   : > { %v6436_v8 = vpop.permute.xlu2 %1370 }
 0x17a   : > { %v1620_v16 = vpop.permute.xlu2 %1619 }
 0x17b   : > { %v1643_v36 = vshrl.u32 %v1620_v16, 16 }
 0x182   : > { %v1614_v12 = vpop.permute.xlu1 %1613  ;;  %v6460_v58 = vpop.permute.xlu2 %1376 }
 0x183   : > { %v1629_v17 = vpack.i.b16 %v1618_v4, %v1614_v12  ;;  %v1630_v18 = vshrl.u32 %v1614_v12, 16  ;;  %v1610_v19 = vpop.permute.xlu0 %1609  ;;  %v1387_v4 = vshrl.u32 %v6436_v8, 16  ;;  %v1400_v10 = vshrl.u32 %v6460_v58, 16 }
 0x184   : > { %v1623_v20 = vpack.i.b16 %v1610_v19, %v6348_v41  ;;  %v1625_v22 = vshrl.u32 %v1610_v19, 16 }
 0x185   : > { %v1632_v23 = vpack.i.b16 %v1631_v15, %v1630_v18  ;;  %v1654_v24 = vperm.slane %v1629_v17, %v6438_v11 }
 0x186   : > { %v1626_v26 = vpack.i.b16 %v1625_v22, %v1624_v21  ;;  %v1649_v27 = vperm.slane %v1623_v20, %v6438_v11 }
 0x187   : > { %v1655_v28 = vrot.slane %v1654_v24, 4  ;;  %v1680_v29 = vperm.slane %v1632_v23, %v6438_v11 }
 0x188   : > { %v1657_v30 = vrot.slane %v1649_v27, 4  ;;  %v1675_v31 = vperm.slane %v1626_v26, %v6438_v11 }
 0x189   : > { %v1681_v32 = vrot.slane %v1680_v29, 4  ;;  %v1656_v33 = vsel %vm1413_vm2, %v1655_v28, %v1649_v27 }
 0x18a   : > { %v1658_v37 = vsel %vm1413_vm2, %v1654_v24, %v1657_v30  ;;  %v1662_v39 = vperm.slane %v1656_v33, %v6443_v25  ;;  %v1683_v40 = vrot.slane %v1675_v31, 4  ;;  %v1616_v41 = vpop.permute.xlu1 %1615 }
 0x18b   : > { %v1666_v42 = vperm.slane %v1658_v37, %v6443_v25  ;;  %v1682_v43 = vsel %vm1413_vm2, %v1681_v32, %v1675_v31  ;;  %v1641_v45 = vpack.i.b16 %v1620_v16, %v1616_v41  ;;  %v1642_v47 = vshrl.u32 %v1616_v41, 16  ;;  %v1612_v48 = vpop.permute.xlu0 %1611 }
 0x18c   : > { %v1667_v50 = vrot.slane %v1662_v39, 4  ;;  %v1684_v51 = vsel %vm1413_vm2, %v1680_v29, %v1683_v40  ;;  %v1635_v52 = vpack.i.b16 %v1612_v48, %v6360_v46  ;;  %v6458_v57 = vperm.slane %v1682_v43, %v6443_v25 }
 0x18d   : > { %v1669_v55 = vrot.slane %v1666_v42, 4  ;;  %v1644_v60 = vpack.i.b16 %v1643_v36, %v1642_v47  ;;  %v1706_v61 = vperm.slane %v1641_v45, %v6438_v11  ;;  %v1692_v62 = vperm.slane %v1684_v51, %v6443_v25 }
 0x18e   : > { %v1637_v1 = vshrl.u32 %v1612_v48, 16  ;;  %v1701_v2 = vperm.slane %v1635_v52, %v6438_v11  ;;  %v1668_v9 = vsel %vm1413_vm2, 0, %v1667_v50  ;;  %v1693_v14 = vrot.slane %v6458_v57, 4 }
 0x18f   : > { %v1670_v38 = vsel %vm1413_vm2, 0, %v1669_v55  ;;  %v1707_v5 = vrot.slane %v1706_v61, 4  ;;  %v1732_v12 = vperm.slane %v1644_v60, %v6438_v11  ;;  %v6474_v16 = vpack.c.bf16 %v1210_v54, %v1210_v54 }
 0x190   : > { %v1638_v13 = vpack.i.b16 %v1637_v1, %v1636_v63  ;;  %v1709_v15 = vrot.slane %v1701_v2, 4  ;;  %v1695_v17 = vrot.slane %v1692_v62, 4  ;;  %v1754_v18 = vrot.slane %v1670_v38, 4 }
 0x191   : > { %v1708_v46 = vsel %vm1413_vm2, %v1707_v5, %v1701_v2  ;;  %v1733_v19 = vrot.slane %v1732_v12, 4  ;;  %2732 = vrot.lane.b32.xlu1 %v6474_v16, %s5981_s27  ;;  %v1749_v42 = vsel %vm1413_vm2, %v1669_v55, %v1662_v39  ;;  %v6499_v47 = vsel %vm1413_vm2, 0, %v1693_v14 }
 0x192   : > { %v1714_v20 = vperm.slane %v1708_v46, %v6443_v25  ;;  %v1369_v21 = vpop.permute.xlu1 %1368  ;;  %v1710_v22 = vsel %vm1413_vm2, %v1706_v61, %v1709_v15  ;;  %v1727_v23 = vperm.slane %v1638_v13, %v6438_v11  ;;  %v6487_v37 = vsel %vm1413_vm2, 0, %v1695_v17 }
 0x193   : > { %v1392_v24 = vpack.i.b16 %v1369_v21, %v6369_v49  ;;  %v1394_v26 = vshrl.u32 %v1369_v21, 16  ;;  %v1367_v27 = vpop.permute.xlu0 %1366  ;;  %v1718_v28 = vperm.slane %v1710_v22, %v6443_v25  ;;  %v1755_v43 = vsel %vm1413_vm2, %v1754_v18, %v1668_v9 }
 0x194   : > { %v1719_v29 = vrot.slane %v1714_v20, 4  ;;  %v1380_v30 = vpack.i.b16 %v1367_v27, %v6357_v44  ;;  %v1382_v31 = vshrl.u32 %v1367_v27, 16  ;;  %v1734_v32 = vsel %vm1413_vm2, %v1733_v19, %v1727_v23 }
 0x195   : > { %v1735_v33 = vrot.slane %v1727_v23, 4  ;;  %v1395_v35 = vpack.i.b16 %v1394_v26, %v1393_v6  ;;  %v1459_v36 = vperm.slane %v1392_v24, %v6438_v11  ;;  %v1721_v49 = vrot.slane %v1718_v28, 4 }
 0x196   : > { %v6490_v40 = vperm.slane %v1734_v32, %v6443_v25  ;;  %v1383_v41 = vpack.i.b16 %v1382_v31, %v1381_v34  ;;  %v1406_v51 = vperm.slane %v1380_v30, %v6438_v11  ;;  %v1773_v34 = vrot.slane %v6487_v37, 4 }
 0x197   : > { %v1736_v44 = vsel %vm1413_vm2, %v1732_v12, %v1735_v33  ;;  %v6496_v45 = vperm.slane %v1395_v35, %v6438_v11  ;;  %v1722_v48 = vsel %vm1413_vm2, 0, %v1721_v49  ;;  %v1720_v39 = vsel %vm1413_vm2, 0, %v1719_v29 }
 0x198   : > { %v1744_v50 = vperm.slane %v1736_v44, %v6443_v25  ;;  %v1467_v52 = vrot.slane %v1459_v36, 4  ;;  %v1433_v54 = vperm.slane %v1383_v41, %v6438_v11  ;;  %v1745_v55 = vrot.slane %v6490_v40, 4 }
 0x199   : > { %v6511_v61 = vsel %vm1413_vm2, %v1721_v49, %v1714_v20  ;;  %v1759_v63 = vperm.slane %v1755_v43, %v6438_v11  ;;  %v1792_v1 = vrot.slane %v1722_v48, 4  ;;  %v1493_v2 = vrot.slane %v6496_v45, 4 }
 0x19a   : > { %v6508_v60 = vrot.slane %v1744_v50, 4  ;;  %v1375_v62 = vpop.permute.xlu1 %1374  ;;  %v1415_v9 = vrot.slane %v1406_v51, 4  ;;  %v1441_v46 = vrot.slane %v1433_v54, 4  ;;  %v1753_v19 = vperm.slane %v1749_v42, %v6438_v11 }
 0x19b   : > { %v1386_v38 = vpack.i.b16 %v1375_v62, %v6436_v8  ;;  %v1388_v5 = vshrl.u32 %v1375_v62, 16  ;;  %v1373_v6 = vpop.permute.xlu0 %1372  ;;  %v1760_v14 = vrot.slane %v1759_v63, 4  ;;  %v6524_v8 = vsel %vm1413_vm2, %v1695_v17, %v6458_v57 }
 0x19c   : > { %v1398_v12 = vpack.i.b16 %v6460_v58, %v1373_v6  ;;  %v1399_v13 = vshrl.u32 %v1373_v6, 16  ;;  %v1748_v20 = vsel %vm1413_vm2, 0, %v6508_v60  ;;  %v1793_v62 = vsel %vm1413_vm2, %v1792_v1, %v1720_v39 }
 0x19d   : > { %v1389_v15 = vpack.i.b16 %v1388_v5, %v1387_v4  ;;  %v1411_v18 = vperm.slane %v1386_v38, %v6438_v11  ;;  %v1761_v4 = vsel %vm1413_vm2, %v1760_v14, %v1753_v19 }
 0x19e   : > { %v1401_v21 = vpack.i.b16 %v1400_v10, %v1399_v13  ;;  %v1464_v22 = vperm.slane %v1398_v12, %v6438_v11  ;;  %v6549_v13 = vperm.slane %v1761_v4, %v6443_v25 }
 0x19f   : > { %v1412_v23 = vrot.slane %v1411_v18, 4  ;;  %v1416_v58 = vsel %vm1413_vm2, %v1411_v18, %v1415_v9  ;;  %v1438_v24 = vperm.slane %v1389_v15, %v6438_v11 }
 0x1a0   : > { %v1424_v26 = vperm.slane %v1416_v58, %v6443_v25  ;;  %v1465_v27 = vrot.slane %v1464_v22, 4  ;;  %v1468_v28 = vsel %vm1413_vm2, %v1464_v22, %v1467_v52  ;;  %v1490_v10 = vperm.slane %v1401_v21, %v6438_v11 }
 0x1a1   : > { %v1414_v29 = vsel %vm1413_vm2, %v1412_v23, %v1406_v51  ;;  %v1439_v30 = vrot.slane %v1438_v24, 4  ;;  %v1442_v57 = vsel %vm1413_vm2, %v1438_v24, %v1441_v46  ;;  %v1476_v17 = vperm.slane %v1468_v28, %v6443_v25 }
 0x1a2   : > { %v1420_v31 = vperm.slane %v1414_v29, %v6443_v25  ;;  %v1427_v32 = vrot.slane %v1424_v26, 4  ;;  %v1450_v33 = vperm.slane %v1442_v57, %v6443_v25  ;;  %v1466_v35 = vsel %vm1413_vm2, %v1465_v27, %v1459_v36 }
 0x1a3   : > { %v1440_v49 = vsel %vm1413_vm2, %v1439_v30, %v1433_v54  ;;  %v1472_v41 = vperm.slane %v1466_v35, %v6443_v25  ;;  %v1479_v42 = vrot.slane %v1476_v17, 4  ;;  %v1491_v43 = vrot.slane %v1490_v10, 4 }
 0x1a4   : > { %v1425_v44 = vrot.slane %v1420_v31, 4  ;;  %v1428_v48 = vsel %vm1413_vm2, 0, %v1427_v32  ;;  %v1446_v50 = vperm.slane %v1440_v49, %v6443_v25  ;;  %v1453_v51 = vrot.slane %v1450_v33, 4 }
 0x1a5   : > { %v1746_v52 = vsel %vm1413_vm2, 0, %v1745_v55  ;;  %v1507_v63 = vsel %vm1413_vm2, %v1427_v32, %v1420_v31  ;;  %v1512_v38 = vrot.slane %v1428_v48, 4  ;;  %v1811_v36 = vrot.slane %v1748_v20, 4 }
 0x1a6   : > { %v1426_v54 = vsel %vm1413_vm2, 0, %v1425_v44  ;;  %v1477_v5 = vrot.slane %v1472_v41, 4  ;;  %v1480_v6 = vsel %vm1413_vm2, 0, %v1479_v42  ;;  %v1451_v9 = vrot.slane %v1446_v50, 4 }
 0x1a7   : > { %v1454_v12 = vsel %vm1413_vm2, 0, %v1453_v51  ;;  %v1772_v55 = vperm.slane %v6524_v8, %v6438_v11  ;;  %v1511_v39 = vperm.slane %v1507_v63, %v6438_v11  ;;  %v1513_v1 = vsel %vm1413_vm2, %v1512_v38, %v1426_v54 }
 0x1a8   : > { %v1492_v14 = vsel %vm1413_vm2, %v1491_v43, %v6496_v45  ;;  %v1494_v46 = vsel %vm1413_vm2, %v1490_v10, %v1493_v2  ;;  %v1526_v15 = vsel %vm1413_vm2, %v1453_v51, %v1446_v50  ;;  %v1550_v20 = vrot.slane %v1480_v6, 4 }
 0x1a9   : > { %v1498_v18 = vperm.slane %v1492_v14, %v6443_v25  ;;  %v1502_v19 = vperm.slane %v1494_v46, %v6443_v25  ;;  %v1531_v21 = vrot.slane %v1454_v12, 4  ;;  %v1478_v22 = vsel %vm1413_vm2, 0, %v1477_v5 }
 0x1aa   : > { %v1774_v8 = vsel %vm1413_vm2, %v1773_v34, %v6499_v47  ;;  %v1797_v23 = vperm.slane %v1793_v62, %v6438_v11  ;;  %v1806_v24 = vsel %vm1413_vm2, %v6508_v60, %v6490_v40  ;;  %v1452_v4 = vsel %vm1413_vm2, 0, %v1451_v9 }
 0x1ab   : > { %v1503_v45 = vrot.slane %v1498_v18, 4  ;;  %v1505_v58 = vrot.slane %v1502_v19, 4  ;;  %v1778_v2 = vperm.slane %v1774_v8, %v6438_v11  ;;  %v1791_v26 = vperm.slane %v6511_v61, %v6438_v11 }
 0x1ac   : > { %v1798_v27 = vrot.slane %v1797_v23, 4  ;;  %v1812_v37 = vsel %vm1413_vm2, %v1811_v36, %v1746_v52  ;;  %v1545_v34 = vsel %vm1413_vm2, %v1479_v42, %v1472_v41  ;;  %v1551_v28 = vsel %vm1413_vm2, %v1550_v20, %v1478_v22 }
 0x1ad   : > { %v1506_v47 = vsel %vm1413_vm2, 0, %v1505_v58  ;;  %v1779_v10 = vrot.slane %v1778_v2, 4  ;;  %v1504_v29 = vsel %vm1413_vm2, 0, %v1503_v45  ;;  %v1810_v40 = vperm.slane %v1806_v24, %v6438_v11 }
 0x1ae   : > { %v1799_v30 = vsel %vm1413_vm2, %v1798_v27, %v1791_v26  ;;  %v1816_v60 = vperm.slane %v1812_v37, %v6438_v11  ;;  %v1569_v57 = vrot.slane %v1506_v47, 4  ;;  %v1828_v17 = vshrl.u32 %v6549_v13, 16 }
 0x1af   : > { %v1780_v61 = vsel %vm1413_vm2, %v1779_v10, %v1772_v55  ;;  %v1517_v31 = vperm.slane %v1513_v1, %v6438_v11  ;;  %v1532_v35 = vsel %vm1413_vm2, %v1531_v21, %v1452_v4  ;;  %v1555_v49 = vperm.slane %v1551_v28, %v6438_v11 }
 0x1b0   : > { %v1784_v32 = vperm.slane %v1780_v61, %v6443_v25  ;;  %v1817_v33 = vrot.slane %v1816_v60, 4  ;;  %v1803_v41 = vperm.slane %v1799_v30, %v6443_v25  ;;  %v1530_v43 = vperm.slane %v1526_v15, %v6438_v11 }
 0x1b1   : > { %v1518_v42 = vrot.slane %v1517_v31, 4  ;;  %v1536_v44 = vperm.slane %v1532_v35, %v6438_v11  ;;  %v1556_v52 = vrot.slane %v1555_v49, 4  ;;  %v1570_v36 = vsel %vm1413_vm2, %v1569_v57, %v1504_v29 }
 0x1b2   : > { %v1818_v48 = vsel %vm1413_vm2, %v1817_v33, %v1810_v40  ;;  %v1827_v50 = vpack.i.b16 %v1784_v32, %v6549_v13  ;;  %v1829_v51 = vshrl.u32 %v1784_v32, 16  ;;  %v1549_v54 = vperm.slane %v1545_v34, %v6438_v11 }
 0x1b3   : > { %v1822_v62 = vperm.slane %v1818_v48, %v6443_v25  ;;  %v1519_v63 = vsel %vm1413_vm2, %v1518_v42, %v1511_v39  ;;  %v1537_v38 = vrot.slane %v1536_v44, 4  ;;  %v1564_v5 = vsel %vm1413_vm2, %v1505_v58, %v1498_v18 }
 0x1b4   : > { %v1830_v6 = vpack.i.b16 %v1829_v51, %v1828_v17  ;;  %v1840_v12 = vshrl.u32 %v1803_v41, 16  ;;  %v2112_v14 = vunpack.c.l.b16 %v1827_v50  ;;  %v6600_v46 = vperm.slane %v1519_v63, %v6443_v25 }
 0x1b5   : > { %v1839_v9 = vpack.i.b16 %v1822_v62, %v1803_v41  ;;  %v1841_v55 = vshrl.u32 %v1822_v62, 16  ;;  %v1538_v1 = vsel %vm1413_vm2, %v1537_v38, %v1530_v43  ;;  %v1574_v15 = vperm.slane %v1570_v36, %v6438_v11  ;;  %v6625_v43 = vpop.permute.xlu0 %2097 }
 0x1b6   : > { %v6603_v39 = vperm.slane %v1538_v1, %v6443_v25  ;;  %v1557_v18 = vsel %vm1413_vm2, %v1556_v52, %v1549_v54  ;;  %v1766_v21 = vrot.slane %v6549_v13, 4  ;;  %v2139_v22 = vunpack.c.l.b16 %v1830_v6  ;;  %v6630_v6 = vpop.permute.xlu1 %2100 }
 0x1b7   : > { %v2113_v19 = vunpack.c.l.b16 %v1839_v9  ;;  %v1842_v20 = vpack.i.b16 %v1841_v55, %v1840_v12  ;;  %v1568_v8 = vperm.slane %v1564_v5, %v6438_v11  ;;  %v1575_v23 = vrot.slane %v1574_v15, 4  ;;  %v1852_v9 = vpop.permute.xlu2 %1851 }
 0x1b8   : > { %v1785_v45 = vrot.slane %v1784_v32, 4  ;;  %v1585_v24 = vpack.i.b16 %v6603_v39, %v6600_v46  ;;  %v1804_v4 = vrot.slane %v1803_v41, 4  ;;  %v6612_v26 = vperm.slane %v1557_v18, %v6443_v25 }
 0x1b9   : > { %v2114_v58 = vpack.c.b16 %v2113_v19, %v2112_v14  ;;  %v2140_v2 = vunpack.c.l.b16 %v1842_v20  ;;  %v1576_v27 = vsel %vm1413_vm2, %v1575_v23, %v1568_v8  ;;  %v1823_v47 = vrot.slane %v1822_v62, 4 }
 0x1ba   : > { %v1786_v37 = vsel %vm1413_vm2, 0, %v1785_v45  ;;  %v1580_v28 = vperm.slane %v1576_v27, %v6443_v25  ;;  %v1767_v10 = vsel %vm1413_vm2, 0, %v1766_v21  ;;  %v1805_v29 = vsel %vm1413_vm2, 0, %v1804_v4 }
 0x1bb   : > { %v2120_v13 = vsel %vm2115_vm3, %v2114_v58, 0  ;;  %v2141_v34 = vpack.c.b16 %v2140_v2, %v2139_v22  ;;  %v1824_v30 = vsel %vm1413_vm2, 0, %v1823_v47  ;;  %v1833_v40 = vpack.i.b16 %v1786_v37, %v1767_v10 }
 0x1bc   : > { %2129 = vmatpush.bf16.xpose.msra.mxu3 %v2120_v13  ;;  %v1597_v57 = vpack.i.b16 %v1580_v28, %v6612_v26  ;;  %v2109_v61 = vunpack.c.l.b16 %v1585_v24  ;;  %v1845_v17 = vpack.i.b16 %v1824_v30, %v1805_v29  ;;  %v1847_v42 = vshrl.u32 %v1824_v30, 16 }
 0x1bd   : > { %v2146_v60 = vsel %vm2115_vm3, %v2141_v34, 0  ;;  %v2165_v32 = vunpack.c.l.b16 %v1833_v40  ;;  %v1587_v44 = vshrl.u32 %v6603_v39, 16  ;;  %v1599_v48 = vshrl.u32 %v1580_v28, 16  ;;  %v6633_v14 = vpop.permute.xlu0 %1857 }
 0x1be   : > { %v2110_v31 = vunpack.c.l.b16 %v1597_v57  ;;  %v2166_v33 = vunpack.c.l.b16 %v1845_v17  ;;  %v1835_v50 = vshrl.u32 %v1786_v37, 16  ;;  %v1846_v51 = vshrl.u32 %v1805_v29, 16 }
 0x1bf   : > { %v1586_v52 = vshrl.u32 %v6600_v46, 16  ;;  %v1598_v62 = vshrl.u32 %v6612_v26, 16  ;;  %v1834_v63 = vshrl.u32 %v1767_v10, 16  ;;  %v1866_v12 = vshrl.u32 %v6384_v53, 16  ;;  %v1856_v13 = vpop.permute.xlu2 %1855 }
 0x1c0   : > { %v2111_v35 = vpack.c.b16 %v2110_v31, %v2109_v61  ;;  %v2167_v49 = vpack.c.b16 %v2166_v33, %v2165_v32  ;;  %v1848_v38 = vpack.i.b16 %v1847_v42, %v1846_v51  ;;  %v1867_v55 = vshrl.u32 %v1852_v9, 16 }
 0x1c1   : > { %v1588_v36 = vpack.i.b16 %v1587_v44, %v1586_v52  ;;  %v1600_v54 = vpack.i.b16 %v1599_v48, %v1598_v62  ;;  %v1836_v5 = vpack.i.b16 %v1835_v50, %v1834_v63  ;;  %v1543_v15 = vrot.slane %v6603_v39, 4 }
 0x1c2   : > { %v2172_v41 = vsel %vm2115_vm3, %v2167_v49, 0  ;;  %v2192_v1 = vunpack.c.l.b16 %v1848_v38  ;;  %v1865_v19 = vpack.i.b16 %v1852_v9, %v6384_v53  ;;  %v1524_v22 = vrot.slane %v6600_v46, 4 }
 0x1c3   : > { %5171 = vmatmul.msk.bf16.vlgmr.msra.gmra.mxu3 %vm2115_vm3, %v2111_v35  ;;  %v2136_v20 = vunpack.c.l.b16 %v1588_v36  ;;  %v2137_v18 = vunpack.c.l.b16 %v1600_v54  ;;  %v2191_v21 = vunpack.c.l.b16 %v1836_v5  ;;  %v1581_v8 = vrot.slane %v1580_v28, 4 }
 0x1c4   : > { %2155 = vmatpush.bf16.xpose.msrb.mxu3 %v2146_v60  ;;  %v1868_v23 = vpack.i.b16 %v1867_v55, %v1866_v12  ;;  %v1562_v45 = vrot.slane %v6612_v26, 4  ;;  %v1544_v2 = vsel %vm1413_vm2, 0, %v1543_v15  ;;  %v1891_v24 = vperm.slane %v1865_v19, %v6438_v11  ;;  %v1860_v26 = vpop.permute.xlu1 %1859 }
 0x1c5   : > { %v2193_v58 = vpack.c.b16 %v2192_v1, %v2191_v21  ;;  %v2138_v4 = vpack.c.b16 %v2137_v18, %v2136_v20  ;;  %v1525_v27 = vsel %vm1413_vm2, 0, %v1524_v22  ;;  %v1582_v39 = vsel %vm1413_vm2, 0, %v1581_v8  ;;  %v2973_v30 = vpop.permute.xlu0 %2972 }
 0x1c6   : > { %v1917_v53 = vperm.slane %v1868_v23, %v6438_v11  ;;  %v1563_v37 = vsel %vm1413_vm2, 0, %v1562_v45  ;;  %v1593_v47 = vshrl.u32 %v1544_v2, 16  ;;  %v1899_v34 = vrot.slane %v1891_v24, 4 }
 0x1c7   : > { %v2198_v46 = vsel %vm2115_vm3, %v2193_v58, 0  ;;  %v1873_v28 = vshrl.u32 %v1860_v26, 16  ;;  %v1871_v10 = vpack.i.b16 %v1860_v26, %v1856_v13  ;;  %v1872_v29 = vshrl.u32 %v1856_v13, 16  ;;  %v1862_v12 = vpop.permute.xlu2 %1861 }
 0x1c8   : > { %v1591_v40 = vpack.i.b16 %v1544_v2, %v1525_v27  ;;  %v1592_v60 = vshrl.u32 %v1525_v27, 16  ;;  %v1605_v57 = vshrl.u32 %v1582_v39, 16  ;;  %v1925_v61 = vrot.slane %v1917_v53, 4 }
 0x1c9   : > { %v1874_v17 = vpack.i.b16 %v1873_v28, %v1872_v29  ;;  %v1896_v31 = vperm.slane %v1871_v10, %v6438_v11  ;;  %v1603_v32 = vpack.i.b16 %v1582_v39, %v1563_v37  ;;  %v1604_v35 = vshrl.u32 %v1563_v37, 16 }
 0x1ca   : > { %v1594_v33 = vpack.i.b16 %v1593_v47, %v1592_v60  ;;  %v2162_v44 = vunpack.c.l.b16 %v1591_v40  ;;  %v2987_v50 = vshrl.u32 %v6408_v0, 16  ;;  %v2988_v62 = vshrl.u32 %v2973_v30, 16 }
 0x1cb   : > { %v1897_v49 = vrot.slane %v1896_v31, 4  ;;  %v1922_v42 = vperm.slane %v1874_v17, %v6438_v11  ;;  %v1606_v48 = vpack.i.b16 %v1605_v57, %v1604_v35  ;;  %v1878_v63 = vshrl.u32 %v6397_v59, 16 }
 0x1cc   : > { %2181 = vmatpush.bf16.xpose.msra.mxu3 %v2172_v41  ;;  %v1900_v41 = vsel %vm1413_vm2, %v1896_v31, %v1899_v34  ;;  %v2163_v38 = vunpack.c.l.b16 %v1603_v32  ;;  %v1884_v36 = vshrl.u32 %v6633_v14, 16  ;;  %v2188_v54 = vunpack.c.l.b16 %v1594_v33  ;;  %v1854_v9 = vpop.permute.xlu1 %1853 }
 0x1cd   : > { %v1923_v51 = vrot.slane %v1922_v42, 4  ;;  %v1926_v52 = vsel %vm1413_vm2, %v1922_v42, %v1925_v61  ;;  %v1908_v5 = vperm.slane %v1900_v41, %v6443_v25  ;;  %v1898_v55 = vsel %vm1413_vm2, %v1897_v49, %v1891_v24  ;;  %v6658_v20 = vpop.permute.xlu0 %2730 }
 0x1ce   : > { %v1877_v1 = vpack.i.b16 %v1854_v9, %v6397_v59  ;;  %v1879_v15 = vshrl.u32 %v1854_v9, 16  ;;  %v1883_v19 = vpack.i.b16 %v1862_v12, %v6633_v14  ;;  %v2189_v18 = vunpack.c.l.b16 %v1606_v48 }
 0x1cf   : > { %v1924_v21 = vsel %vm1413_vm2, %v1923_v51, %v1917_v53  ;;  %v1934_v22 = vperm.slane %v1926_v52, %v6443_v25  ;;  %v2986_v8 = vpack.i.b16 %v2973_v30, %v6408_v0  ;;  %v2989_v23 = vpack.i.b16 %v2988_v62, %v2987_v50  ;;  %v2977_v57 = vpop.permute.xlu2 %2976 }
 0x1d0   : > { %v1880_v45 = vpack.i.b16 %v1879_v15, %v1878_v63  ;;  %v1943_v58 = vperm.slane %v1877_v1, %v6438_v11  ;;  %v2164_v2 = vpack.c.b16 %v2163_v38, %v2162_v44  ;;  %v1904_v24 = vperm.slane %v1898_v55, %v6443_v25 }
 0x1d1   : > { %v1911_v59 = vrot.slane %v1908_v5, 4  ;;  %v6666_v14 = vperm.slane %v1924_v21, %v6443_v25  ;;  %v1948_v53 = vperm.slane %v1883_v19, %v6438_v11  ;;  %v6672_v0 = vrot.slane %v1934_v22, 4 }
 0x1d2   : > { %v1951_v27 = vrot.slane %v1943_v58, 4  ;;  %v1969_v39 = vperm.slane %v1880_v45, %v6438_v11  ;;  %v3012_v37 = vperm.slane %v2986_v8, %v6438_v11  ;;  %v3038_v26 = vperm.slane %v2989_v23, %v6438_v11 }
 0x1d3   : > { %5172 = vmatmul.msk.bf16.vlgmr.msrb.gmra.mxu3 %vm2115_vm3, %v2138_v4  ;;  %v1885_v4 = vshrl.u32 %v1862_v12, 16  ;;  %v1949_v34 = vrot.slane %v1948_v53, 4  ;;  %v1909_v10 = vrot.slane %v1904_v24, 4  ;;  %v1912_v29 = vsel %vm1413_vm2, 0, %v1911_v59 }
 0x1d4   : > { %2207 = vmatpush.bf16.xpose.msrb.mxu3 %v2198_v46  ;;  %v6670_v46 = vpack.c.b16 %v2189_v18, %v2188_v54  ;;  %v1977_v13 = vrot.slane %v1969_v39, 4  ;;  %v1952_v28 = vsel %vm1413_vm2, %v1948_v53, %v1951_v27  ;;  %v2981_v60 = vpop.permute.xlu1 %2980  ;;  %v1935_v61 = vrot.slane %v6666_v14, 4 }
 0x1d5   : > { %v1886_v47 = vpack.i.b16 %v1885_v4, %v1884_v36  ;;  %v1960_v30 = vperm.slane %v1952_v28, %v6443_v25  ;;  %v1950_v17 = vsel %vm1413_vm2, %v1949_v34, %v1943_v58  ;;  %v2994_v31 = vshrl.u32 %v2981_v60, 16  ;;  %v6683_v33 = vpop.permute.xlu0 %2734 }
 0x1d6   : > { %v2993_v32 = vshrl.u32 %v2977_v57, 16  ;;  %v6687_v35 = vsel %vm1413_vm2, 0, %v6672_v0  ;;  %v2992_v42 = vpack.i.b16 %v2981_v60, %v2977_v57  ;;  %v1956_v44 = vperm.slane %v1950_v17, %v6443_v25 }
 0x1d7   : > { %v1974_v40 = vperm.slane %v1886_v47, %v6438_v11  ;;  %v1963_v48 = vrot.slane %v1960_v30, 4  ;;  %v6693_v52 = vsel %vm1413_vm2, %v1911_v59, %v1904_v24  ;;  %v3020_v62 = vrot.slane %v3012_v37, 4  ;;  %v2983_v34 = vpop.permute.xlu2 %2982 }
 0x1d8   : > { %v2995_v51 = vpack.i.b16 %v2994_v31, %v2993_v32  ;;  %v2999_v38 = vshrl.u32 %v6428_v7, 16  ;;  %v1910_v36 = vsel %vm1413_vm2, 0, %v1909_v10  ;;  %v1996_v54 = vrot.slane %v1912_v29, 4 }
 0x1d9   : > { %v1975_v49 = vrot.slane %v1974_v40, 4  ;;  %v1978_v41 = vsel %vm1413_vm2, %v1974_v40, %v1977_v13  ;;  %v3046_v5 = vrot.slane %v3038_v26, 4  ;;  %v2015_v12 = vrot.slane %v6687_v35, 4 }
 0x1da   : > { %v1986_v50 = vperm.slane %v1978_v41, %v6443_v25  ;;  %v3017_v1 = vperm.slane %v2992_v42, %v6438_v11  ;;  %v3043_v15 = vperm.slane %v2995_v51, %v6438_v11  ;;  %v1936_v19 = vsel %vm1413_vm2, 0, %v1935_v61 }
 0x1db   : > { %v1976_v63 = vsel %vm1413_vm2, %v1975_v49, %v1969_v39  ;;  %v1961_v18 = vrot.slane %v1956_v44, 4  ;;  %v1964_v21 = vsel %vm1413_vm2, 0, %v1963_v48  ;;  %v1995_v22 = vperm.slane %v6693_v52, %v6438_v11 }
 0x1dc   : > { %v6699_v9 = vperm.slane %v1976_v63, %v6443_v25  ;;  %v6702_v55 = vrot.slane %v1986_v50, 4  ;;  %v6711_v8 = vsel %vm1413_vm2, %v1963_v48, %v1956_v44  ;;  %v3018_v23 = vrot.slane %v3017_v1, 4 }
 0x1dd   : > { %v3021_v45 = vsel %vm1413_vm2, %v3017_v1, %v3020_v62  ;;  %v3044_v58 = vrot.slane %v3043_v15, 4  ;;  %v3047_v4 = vsel %vm1413_vm2, %v3043_v15, %v3046_v5  ;;  %v2979_v40 = vpop.permute.xlu0 %2978  ;;  %v2034_v60 = vrot.slane %v1964_v21, 4 }
 0x1de   : > { %v1987_v24 = vrot.slane %v6699_v9, 4  ;;  %v3029_v59 = vperm.slane %v3021_v45, %v6443_v25  ;;  %v6720_v39 = vsel %vm1413_vm2, 0, %v6702_v55  ;;  %v3019_v53 = vsel %vm1413_vm2, %v3018_v23, %v3012_v37 }
 0x1df   : > { %v3045_v47 = vsel %vm1413_vm2, %v3044_v58, %v3038_v26  ;;  %v3025_v28 = vperm.slane %v3019_v53, %v6443_v25  ;;  %v3055_v29 = vperm.slane %v3047_v4, %v6443_v25  ;;  %v3004_v61 = vpack.i.b16 %v2983_v34, %v2979_v40 }
 0x1e0   : > { %v3032_v10 = vrot.slane %v3029_v59, 4  ;;  %v1962_v37 = vsel %vm1413_vm2, 0, %v1961_v18  ;;  %v3006_v17 = vshrl.u32 %v2983_v34, 16  ;;  %v1997_v26 = vsel %vm1413_vm2, %v1996_v54, %v1910_v36 }
 0x1e1   : > { %v2010_v31 = vsel %vm1413_vm2, %v6672_v0, %v6666_v14  ;;  %v1988_v32 = vsel %vm1413_vm2, 0, %v1987_v24  ;;  %v2053_v35 = vrot.slane %v6720_v39, 4  ;;  %v3030_v42 = vrot.slane %v3025_v28, 4 }
 0x1e2   : > { %v6739_v44 = vsel %vm1413_vm2, 0, %v3032_v10  ;;  %v6741_v48 = vrot.slane %v3055_v29, 4  ;;  %v3005_v50 = vshrl.u32 %v2979_v40, 16  ;;  %v3069_v0 = vperm.slane %v3004_v61, %v6438_v11 }
 0x1e3   : > { %5173 = vmatmul.msk.bf16.vlgmr.msra.gmra.mxu3 %vm2115_vm3, %v2164_v2  ;;  %v2975_v2 = vpop.permute.xlu1 %2974  ;;  %v2001_v52 = vperm.slane %v1997_v26, %v6438_v11  ;;  %v2014_v63 = vperm.slane %v2010_v31, %v6438_v11  ;;  %v2035_v36 = vsel %vm1413_vm2, %v2034_v60, %v1962_v37  ;;  %v6754_v15 = vsel %vm1413_vm2, %v3032_v10, %v3025_v28 }
 0x1e4   : > { %v2998_v27 = vpack.i.b16 %v2975_v2, %v6428_v7  ;;  %v3000_v13 = vshrl.u32 %v2975_v2, 16  ;;  %v6728_v7 = vperm.slane %v3045_v47, %v6443_v25  ;;  %v3007_v62 = vpack.i.b16 %v3006_v17, %v3005_v50 }
 0x1e5   : > { %v3070_v54 = vrot.slane %v3069_v0, 4  ;;  %v2002_v1 = vrot.slane %v2001_v52, 4  ;;  %v2039_v23 = vperm.slane %v2035_v36, %v6438_v11  ;;  %v2033_v59 = vperm.slane %v6711_v8, %v6438_v11 }
 0x1e6   : > { %v3064_v30 = vperm.slane %v2998_v27, %v6438_v11  ;;  %v3001_v57 = vpack.i.b16 %v3000_v13, %v2999_v38  ;;  %v3056_v51 = vrot.slane %v6728_v7, 4  ;;  %v2016_v38 = vsel %vm1413_vm2, %v2015_v12, %v1936_v19 }
 0x1e7   : > { %v3095_v21 = vperm.slane %v3007_v62, %v6438_v11  ;;  %v6761_v12 = vsel %vm1413_vm2, 0, %v6741_v48  ;;  %v2003_v45 = vsel %vm1413_vm2, %v2002_v1, %v1995_v22  ;;  %v2048_v4 = vsel %vm1413_vm2, %v6702_v55, %v6699_v9 }
 0x1e8   : > { %v3072_v49 = vrot.slane %v3064_v30, 4  ;;  %v3090_v41 = vperm.slane %v3001_v57, %v6438_v11  ;;  %v3071_v19 = vsel %vm1413_vm2, %v3070_v54, %v3064_v30  ;;  %v2007_v39 = vperm.slane %v2003_v45, %v6443_v25 }
 0x1e9   : > { %v3096_v2 = vrot.slane %v3095_v21, 4  ;;  %v2040_v47 = vrot.slane %v2039_v23, 4  ;;  %v3031_v13 = vsel %vm1413_vm2, 0, %v3030_v42  ;;  %v3117_v22 = vrot.slane %v6739_v44, 4 }
 0x1ea   : > { %v3098_v14 = vrot.slane %v3090_v41, 4  ;;  %v3073_v5 = vsel %vm1413_vm2, %v3069_v0, %v3072_v49  ;;  %v3077_v34 = vperm.slane %v3071_v19, %v6443_v25  ;;  %v3057_v8 = vsel %vm1413_vm2, 0, %v3056_v51 }
 0x1eb   : > { %v3081_v18 = vperm.slane %v3073_v5, %v6443_v25  ;;  %v3097_v28 = vsel %vm1413_vm2, %v3096_v2, %v3090_v41  ;;  %v3136_v10 = vrot.slane %v6761_v12, 4  ;;  %v2041_v29 = vsel %vm1413_vm2, %v2040_v47, %v2033_v59 }
 0x1ec   : > { %v3099_v24 = vsel %vm1413_vm2, %v3095_v21, %v3098_v14  ;;  %v2052_v30 = vperm.slane %v2048_v4, %v6438_v11  ;;  %v2054_v40 = vsel %vm1413_vm2, %v2053_v35, %v1988_v32  ;;  %v2070_v60 = vshrl.u32 %v2007_v39, 16 }
 0x1ed   : > { %v3084_v27 = vrot.slane %v3081_v18, 4  ;;  %v3107_v9 = vperm.slane %v3099_v24, %v6443_v25  ;;  %v6788_v61 = vperm.slane %v3097_v28, %v6443_v25  ;;  %v2045_v37 = vperm.slane %v2041_v29, %v6443_v25 }
 0x1ee   : > { %v2058_v17 = vperm.slane %v2054_v40, %v6438_v11  ;;  %v3082_v26 = vrot.slane %v3077_v34, 4  ;;  %v2008_v41 = vrot.slane %v2007_v39, 4  ;;  %v3118_v23 = vsel %vm1413_vm2, %v3117_v22, %v3031_v13 }
 0x1ef   : > { %v6785_v57 = vsel %vm1413_vm2, 0, %v3084_v27  ;;  %v6793_v31 = vsel %vm1413_vm2, %v3084_v27, %v3077_v34  ;;  %v3110_v42 = vrot.slane %v3107_v9, 4  ;;  %v2046_v0 = vrot.slane %v2045_v37, 4 }
 0x1f0   : > { %v2059_v44 = vrot.slane %v2058_v17, 4  ;;  %v3155_v50 = vrot.slane %v6785_v57, 4  ;;  %v2009_v14 = vsel %vm1413_vm2, 0, %v2008_v41  ;;  %v3108_v52 = vrot.slane %v6788_v61, 4 }
 0x1f1   : > { %v2082_v54 = vshrl.u32 %v2045_v37, 16  ;;  %v2047_v5 = vsel %vm1413_vm2, 0, %v2046_v0  ;;  %v3116_v59 = vperm.slane %v6754_v15, %v6438_v11  ;;  %v3122_v4 = vperm.slane %v3118_v23, %v6438_v11 }
 0x1f2   : > { %v2060_v62 = vsel %vm1413_vm2, %v2059_v44, %v2052_v30  ;;  %v2088_v24 = vshrl.u32 %v2047_v5, 16  ;;  %v3131_v13 = vsel %vm1413_vm2, %v6741_v48, %v6728_v7  ;;  %v3137_v22 = vsel %vm1413_vm2, %v3136_v10, %v3057_v8 }
 0x1f3   : > { %5174 = vmatmul.msk.bf16.vlgmr.msrb.gmra.mxu3 %vm2115_vm3, %v6670_v46  ;;  %v2020_v46 = vperm.slane %v2016_v38, %v6438_v11  ;;  %v2076_v38 = vshrl.u32 %v2009_v14, 16  ;;  %v2064_v36 = vperm.slane %v2060_v62, %v6443_v25  ;;  %v3083_v9 = vsel %vm1413_vm2, 0, %v3082_v26 }
 0x1f4   : > { %v3123_v15 = vrot.slane %v3122_v4, 4  ;;  %v3141_v41 = vperm.slane %v3137_v22, %v6438_v11  ;;  %v3109_v7 = vsel %vm1413_vm2, 0, %v3108_v52  ;;  %v3156_v44 = vsel %vm1413_vm2, %v3155_v50, %v3083_v9 }
 0x1f5   : > { %v2021_v58 = vrot.slane %v2020_v46, 4  ;;  %v3111_v46 = vsel %vm1413_vm2, 0, %v3110_v42  ;;  %v2081_v12 = vpack.i.b16 %v2064_v36, %v2045_v37  ;;  %v2083_v19 = vshrl.u32 %v2064_v36, 16 }
 0x1f6   : > { %v3174_v30 = vrot.slane %v3111_v46, 4  ;;  %v3124_v17 = vsel %vm1413_vm2, %v3123_v15, %v3116_v59  ;;  %v3142_v26 = vrot.slane %v3141_v41, 4  ;;  %vm2102_vm6 = vcmp.eq.s32.totalorder %v6625_v43, 1 }
 0x1f7   : > { %v2022_v53 = vsel %vm1413_vm2, %v2021_v58, %v2014_v63  ;;  %v2065_v58 = vrot.slane %v2064_v36, 4  ;;  %v2353_v27 = vunpack.c.l.b16 %v2081_v12  ;;  %v3128_v10 = vperm.slane %v3124_v17, %v6443_v25 }
 0x1f8   : > { %v2026_v55 = vperm.slane %v2022_v53, %v6443_v25  ;;  %v3175_v52 = vsel %vm1413_vm2, %v3174_v30, %v3109_v7  ;;  %vm2103_vm9 = vcmp.eq.s32.totalorder %v6630_v6, 1 }
 0x1f9   : > { %v2066_v53 = vsel %vm1413_vm2, 0, %v2065_v58  ;;  %v3129_v62 = vrot.slane %v3128_v10, 4 }
 0x1fa   : > { %v2071_v49 = vshrl.u32 %v2026_v55, 16  ;;  %v2069_v32 = vpack.i.b16 %v2026_v55, %v2007_v39  ;;  %v2027_v35 = vrot.slane %v2026_v55, 4  ;;  %v2084_v39 = vpack.i.b16 %v2083_v19, %v2082_v54 }
 0x1fb   : > { %v2087_v34 = vpack.i.b16 %v2066_v53, %v2047_v5  ;;  %v2089_v28 = vshrl.u32 %v2066_v53, 16 }
 0x1fc   : > { %v2072_v51 = vpack.i.b16 %v2071_v49, %v2070_v60  ;;  %v2028_v63 = vsel %vm1413_vm2, 0, %v2027_v35  ;;  %v2352_v18 = vunpack.c.l.b16 %v2069_v32  ;;  %v2379_v29 = vunpack.c.l.b16 %v2084_v39 }
 0x1fd   : > { %v2075_v1 = vpack.i.b16 %v2028_v63, %v2009_v14  ;;  %v2077_v21 = vshrl.u32 %v2028_v63, 16  ;;  %v2090_v40 = vpack.i.b16 %v2089_v28, %v2088_v24  ;;  %v2405_v60 = vunpack.c.l.b16 %v2087_v34 }
 0x1fe   : > { %v2378_v45 = vunpack.c.l.b16 %v2072_v51  ;;  %v2354_v55 = vpack.c.b16 %v2353_v27, %v2352_v18  ;;  %v3135_v49 = vperm.slane %v3131_v13, %v6438_v11  ;;  %v3169_v32 = vsel %vm1413_vm2, %v3110_v42, %v6788_v61 }
 0x1ff   : > { %v2078_v2 = vpack.i.b16 %v2077_v21, %v2076_v38  ;;  %v2404_v47 = vunpack.c.l.b16 %v2075_v1  ;;  %v2431_v8 = vunpack.c.l.b16 %v2090_v40  ;;  %v3154_v51 = vperm.slane %v6793_v31, %v6438_v11 }
 0x200   : > { %2366 = vmatpush.bf16.msrb.mxu1 %v2354_v55  ;;  %v2380_v37 = vpack.c.b16 %v2379_v29, %v2378_v45  ;;  %v3160_v14 = vperm.slane %v3156_v44, %v6438_v11  ;;  %v3143_v0 = vsel %vm1413_vm2, %v3142_v26, %v3135_v49  ;;  %v3173_v50 = vperm.slane %v3169_v32, %v6438_v11  ;;  %v1070_v32 = vld [vmem:[%s7821_s20] sm:$0x1] }
 0x201   : > { %v2430_v57 = vunpack.c.l.b16 %v2078_v2  ;;  %v2406_v48 = vpack.c.b16 %v2405_v60, %v2404_v47  ;;  %v3147_v63 = vperm.slane %v3143_v0, %v6443_v25  ;;  %v3179_v61 = vperm.slane %v3175_v52, %v6438_v11 }
 0x202   : > { %v3161_v38 = vrot.slane %v3160_v14, 4  ;;  %v3130_v42 = vsel %vm1413_vm2, 0, %v3129_v62  ;;  %vm2093_vm4 = vcmp.gt.f32.partialorder %v1070_v32, 0.5 }
 0x203   : > { %2418 = vmatpush.bf16.msrb.mxu2 %v2406_v48  ;;  %v2432_v35 = vpack.c.b16 %v2431_v8, %v2430_v57  ;;  %v3180_v31 = vrot.slane %v3179_v61, 4  ;;  %v3148_v54 = vrot.slane %v3147_v63, 4  ;;  %v3190_v1 = vpack.i.b16 %v3147_v63, %v3128_v10 }
 0x204   : > { %2392 = vmatpush.bf16.msra.mxu1 %v2380_v37  ;;  %v3162_v36 = vsel %vm1413_vm2, %v3161_v38, %v3154_v51  ;;  %v3197_v21 = vshrl.u32 %v3130_v42, 16  ;;  %v3191_v37 = vshrl.u32 %v3128_v10, 16  ;;  %v3192_v17 = vshrl.u32 %v3147_v63, 16 }
 0x205   : > { %2444 = vmatpush.bf16.msra.mxu3 %v2432_v35  ;;  %v3166_v5 = vperm.slane %v3162_v36, %v6443_v25  ;;  %v3181_v46 = vsel %vm1413_vm2, %v3180_v31, %v3173_v50  ;;  %v3149_v18 = vsel %vm1413_vm2, 0, %v3148_v54  ;;  %v3475_v2 = vunpack.c.l.b16 %v3190_v1 }
 0x206   : > { %v3185_v23 = vperm.slane %v3181_v46, %v6443_v25  ;;  %v3198_v19 = vshrl.u32 %v3149_v18, 16  ;;  %v3196_v45 = vpack.i.b16 %v3149_v18, %v3130_v42  ;;  %v3193_v7 = vpack.i.b16 %v3192_v17, %v3191_v37 }
 0x207   : > { %v3167_v12 = vrot.slane %v3166_v5, 4  ;;  %v3203_v49 = vshrl.u32 %v3166_v5, 16  ;;  %v2104_v35 = vsel %vm2093_vm4, 1, %v5982_v56 }
 0x208   : > { %v3202_v58 = vpack.i.b16 %v3185_v23, %v3166_v5  ;;  %v3186_v59 = vrot.slane %v3185_v23, 4  ;;  %v3199_v4 = vpack.i.b16 %v3198_v19, %v3197_v21  ;;  %v3527_v34 = vunpack.c.l.b16 %v3196_v45 }
 0x209   : > { %v3168_v24 = vsel %vm1413_vm2, 0, %v3167_v12  ;;  %v3204_v41 = vshrl.u32 %v3185_v23, 16  ;;  %v3501_v8 = vunpack.c.l.b16 %v3193_v7  ;;  %v2105_v51 = vperm.slane %v2104_v35, 0 }
 0x20a   : > { %v3209_v27 = vshrl.u32 %v3168_v24, 16  ;;  %v3476_v39 = vunpack.c.l.b16 %v3202_v58  ;;  %v3187_v53 = vsel %vm1413_vm2, 0, %v3186_v59  ;;  %v3553_v55 = vunpack.c.l.b16 %v3199_v4 }
 0x20b   : > { %v3208_v47 = vpack.i.b16 %v3187_v53, %v3168_v24  ;;  %v3210_v28 = vshrl.u32 %v3187_v53, 16  ;;  %v3205_v48 = vpack.i.b16 %v3204_v41, %v3203_v49  ;;  %vm2106_vm5 = vcmp.eq.s32.totalorder %v2105_v51, 1  ;;  %v6904_v24 = vpop.permute.xlu1 %2732 }
 0x20c   : > { %v3477_v13 = vpack.c.b16 %v3476_v39, %v3475_v2  ;;  %vm6847_vm7 = vmand %vm2102_vm6, %vm2106_vm5  ;;  %v2744_v35 = vpack.i.b16 %v6658_v20, %v6417_v3  ;;  %vm2725_vm6 = vcmask 785408  }
 0x20d   : > { %v3528_v22 = vunpack.c.l.b16 %v3208_v47  ;;  %v3211_v9 = vpack.i.b16 %v3210_v28, %v3209_v27  ;;  %v3502_v26 = vunpack.c.l.b16 %v3205_v48  ;;  %vm6855_vm10 = vmand %vm2103_vm9, %vm2106_vm5  ;;  %v1068_v28 = vld [vmem:[%s7820_s29 + $0x10] sm:$0xff]  ;;  %v2745_v48 = vshrl.u32 %v6417_v3, 16 }
 0x20e   : > { %v3482_v29 = vsel %vm2115_vm3, %v3477_v13, 0  ;;  %v1347_v13 = vpop.f32.mrf.mxu2  ;;  %vm3454_vm11 = vcmp.gt.f32.partialorder %v1068_v28, 0.5  ;;  %vm2722_vm5 = vcmask 523264  }
 0x20f   : > { %3491 = vmatpush.bf16.xpose.msrb.mxu0 %v3482_v29  ;;  %v3529_v15 = vpack.c.b16 %v3528_v22, %v3527_v34  ;;  %v3554_v30 = vunpack.c.l.b16 %v3211_v9  ;;  %v6840_v44 = vpack.c.b16 %v3502_v26, %v3501_v8  ;;  %v5694_v22 = vld [vmem:[%s6270_s22] ss:$0 sm:$0xff]  ;;  %v2746_v8 = vshrl.u32 %v6658_v20, 16 }
 0x210   : > { %v1348_v9 = vadd.f32 %v5694_v22, %v1347_v13 }
 0x211   : > { %v3534_v40 = vsel %vm2115_vm3, %v3529_v15, 0  ;;  %v3555_v60 = vpack.c.b16 %v3554_v30, %v3553_v55  ;;  %v3457_v55 = vsel %vm3454_vm11, 1, %v5982_v56  ;;  %v3508_v26 = vsel %vm2115_vm3, %v6840_v44, 0 }
 0x212   : > { %3543 = vmatpush.bf16.xpose.msra.mxu2 %v3534_v40  ;;  %v6921_v15 = vpack.c.bf16 %v1348_v9, %v1348_v9  ;;  %v2747_v51 = vpack.i.b16 %v2746_v8, %v2745_v48 }
 0x213   : > { %v3560_v57 = vsel %vm2115_vm3, %v3555_v60, 0  ;;  %v1069_v60 = vld [vmem:[%s7820_s29 + $0x18] sm:$0xff] }
 0x214   : > { %3569 = vmatpush.bf16.xpose.msrb.mxu3 %v3560_v57  ;;  %vm3455_vm12 = vcmp.gt.f32.partialorder %v1069_v60, 0.5 }
 0x215   : > { %v3458_v17 = vsel %vm3455_vm12, 1, %v5982_v56 }
 0x216   : > { %v1349_v49 = vpop.f32.mrf.mxu2 }
 0x217   : > { %v1350_v7 = vadd.f32 %v5694_v22, %v1349_v49  ;;  %v2757_v49 = vshrl.u32 %v6474_v16, 16 }
 0x219   : > { %v6938_v32 = vpack.c.bf16 %v1350_v7, %v1350_v7  ;;  %v2758_v7 = vshrl.u32 %v6904_v24, 16 }
 0x246   : > { %v2131_v14 = vpop.f32.mrf.mxu3 }
 0x247   : > { %v2218_v0 = vsel %vm6847_vm7, %v2131_v14, -10000.0 }
 0x248   : > { %v2227_v52 = vsel %vm2226_vm8, %v2218_v0, -inf }
 0x249   : > { %2228 = vmax.xlane.f32.xlu0 %v2227_v52  ;;  %v2751_v52 = vshrl.u32 %v6683_v33, 16 }
 0x24e   : > { %v2133_v63 = vpop.f32.mrf.mxu3 }
 0x24f   : > { %v2219_v43 = vsel %vm6855_vm10, %v2133_v63, -10000.0  ;;  %v2796_v63 = vperm.slane %v2747_v51, %v6438_v11 }
 0x250   : > { %v2230_v38 = vsel %vm2226_vm8, %v2219_v43, -inf }
 0x251   : > { %2231 = vmax.xlane.f32.xlu1 %v2230_v38 }
 0x256   : > { %v2157_v50 = vpop.f32.mrf.mxu3 }
 0x257   : > { %v6898_v58 = vsel %vm6847_vm7, %v2157_v50, -10000.0 }
 0x258   : > { %v2233_v2 = vsel %vm2226_vm8, %v6898_v58, -inf }
 0x25d   : > { %2740 = vrot.lane.b32.xlu0 %v6474_v16, %s5979_s10 }
 0x25e   : > { %v2159_v61 = vpop.f32.mrf.mxu3 }
 0x25f   : > { %v6892_v19 = vsel %vm6855_vm10, %v2159_v61, -10000.0  ;;  %v2804_v61 = vrot.slane %v2796_v63, 4 }
 0x260   : > { %v2236_v45 = vsel %vm2226_vm8, %v6892_v19, -inf }
 0x266   : > { %v2183_v42 = vpop.f32.mrf.mxu3 }
 0x267   : > { %v6866_v6 = vsel %vm6847_vm7, %v2183_v42, -10000.0 }
 0x268   : > { %v2239_v36 = vsel %vm2226_vm8, %v6866_v6, -inf }
 0x269   : > { %2240 = vmax.xlane.f32.xlu2 %v2239_v36 }
 0x26a   : > { %2738 = vrot.lane.b32.xlu1 %v6417_v3, %s5979_s10 }
 0x26e   : > { %v2185_v31 = vpop.f32.mrf.mxu3 }
 0x26f   : > { %v6874_v54 = vsel %vm6855_vm10, %v2185_v31, -10000.0 }
 0x270   : > { %v2242_v5 = vsel %vm2226_vm8, %v6874_v54, -inf }
 0x271   : > { %2243 = vmax.xlane.f32.xlu2 %v2242_v5 }
 0x276   : > { %v2209_v1 = vpop.f32.mrf.mxu3 }
 0x277   : > { %v6880_v46 = vsel %vm6847_vm7, %v2209_v1, -10000.0 }
 0x278   : > { %v2245_v18 = vsel %vm2226_vm8, %v6880_v46, -inf }
 0x279   : > { %2246 = vmax.xlane.f32.xlu2 %v2245_v18 }
 0x27e   : > { %v2211_v21 = vpop.f32.mrf.mxu3 }
 0x27f   : > { %v6886_v23 = vsel %vm6855_vm10, %v2211_v21, -10000.0 }
 0x280   : > { %v2248_v12 = vsel %vm2226_vm8, %v6886_v23, -inf }
 0x281   : > { %2249 = vmax.xlane.f32.xlu2 %v2248_v12 }
 0x287   : > { %2237 = vmax.xlane.f32.xlu0 %v2236_v45 }
 0x294   : > { %2234 = vmax.xlane.f32.xlu1 %v2233_v2 }
 0x299   : > { %2736 = vrot.lane.b32.xlu2 %v6474_v16, %s5980_s8 }
 0x29b   : > { %3220 = vrot.lane.b32.xlu0 %v6938_v32, %s5980_s8 }
 0x2a1   : > { %3460 = vperm.xlu2 %5542, %v3457_v55  }
 0x2a9   : > { %3463 = vperm.xlu2 %5542, %v3458_v17  }
 0x2ad   : > { %3218 = vrot.lane.b32.xlu1 %v6921_v15, %s5980_s8 }
 0x2b1   : > { %3214 = vrot.lane.b32.xlu2 %v6921_v15, %s5981_s27 }
 0x2b9   : > { %3216 = vrot.lane.b32.xlu2 %v6938_v32, %s5981_s27 }
 0x2bc   : > { %v6906_v59 = vpop.xlane.xlu0 %2228 }
 0x2bd   : > { %v2275_v4 = vsub.f32 %v2218_v0, %v6906_v59  ;;  %v2770_v0 = vperm.slane %v2744_v35, %v6438_v11 }
 0x2bf   : > { %v2283_v27 = vmul.f32 1.442695, %v2275_v4  ;;  %v2778_v20 = vrot.slane %v2770_v0, 4 }
 0x2c1   : > { %5582 = vpow2.f32 %v2283_v27  ;;  %3222 = vrot.lane.b32.xlu2 %v6921_v15, %s5979_s10 }
 0x2c4   : > { %v6909_v39 = vpop.xlane.xlu1 %2231 }
 0x2c5   : > { %v2276_v53 = vsub.f32 %v2219_v43, %v6909_v39 }
 0x2c7   : > { %v2285_v47 = vmul.f32 1.442695, %v2276_v53  ;;  %v6912_v34 = vpop.eup %5582 }
 0x2c8   : > { %v2339_v29 = vpack.c.bf16 %v6912_v34, %v6912_v34 }
 0x2c9   : > { %5584 = vpow2.f32 %v2285_v47  ;;  %3224 = vrot.lane.b32.xlu2 %v6938_v32, %s5979_s10 }
 0x2ca   : > { %v2349_v57 = vunpack.c.l.b16 %v2339_v29 }
 0x2cf   : > { %v6923_v30 = vpop.eup %5584 }
 0x2d0   : > { %v2340_v40 = vpack.c.bf16 %v6923_v30, %v6923_v30 }
 0x2d2   : > { %v2350_v37 = vunpack.c.l.b16 %v2340_v40 }
 0x2d4   : > { %v2351_v41 = vpack.c.b16 %v2350_v37, %v2349_v57 }
 0x2d6   : > { %5175 = vmatmul.msk.bf16.vlgmr.msrb.gmra.mxu1 %vm2226_vm8, %v2351_v41 }
 0x2d7   : > { %3517 = vmatpush.bf16.xpose.msrb.mxu1 %v3508_v26 }
 0x2dc   : > { %v2739_v10 = vpop.permute.xlu1 %2738  ;;  %v6944_v14 = vpop.xlane.xlu2 %2240 }
 0x2dd   : > { %v2750_v44 = vpack.i.b16 %v2739_v10, %v6683_v33  ;;  %v2752_v62 = vshrl.u32 %v2739_v10, 16  ;;  %v2279_v3 = vsub.f32 %v6866_v6, %v6944_v14 }
 0x2df   : > { %v2753_v43 = vpack.i.b16 %v2752_v62, %v2751_v52  ;;  %v2775_v38 = vperm.slane %v2750_v44, %v6438_v11  ;;  %v2291_v33 = vmul.f32 1.442695, %v2279_v3  ;;  %v2756_v52 = vpack.i.b16 %v6904_v24, %v6474_v16  ;;  %v2741_v44 = vpop.permute.xlu0 %2740 }
 0x2e1   : > { %v2801_v50 = vperm.slane %v2753_v43, %v6438_v11  ;;  %v2776_v42 = vrot.slane %v2775_v38, 4  ;;  %v2779_v36 = vsel %vm1413_vm2, %v2775_v38, %v2778_v20  ;;  %5586 = vpow2.f32 %v2291_v33 }
 0x2e2   : > { %v2787_v6 = vperm.slane %v2779_v36, %v6443_v25  ;;  %v2759_v43 = vpack.i.b16 %v2758_v7, %v2757_v49  ;;  %v2822_v20 = vperm.slane %v2756_v52, %v6438_v11 }
 0x2e3   : > { %v2802_v5 = vrot.slane %v2801_v50, 4  ;;  %v2805_v1 = vsel %vm1413_vm2, %v2801_v50, %v2804_v61  ;;  %v2777_v21 = vsel %vm1413_vm2, %v2776_v42, %v2770_v0  ;;  %v2764_v42 = vshrl.u32 %v2741_v44, 16 }
 0x2e4   : > { %v6957_v31 = vpop.xlane.xlu2 %2243  ;;  %v2813_v45 = vperm.slane %v2805_v1, %v6443_v25  ;;  %v2783_v4 = vperm.slane %v2777_v21, %v6443_v25  ;;  %v2790_v27 = vrot.slane %v2787_v6, 4  ;;  %v2848_v24 = vperm.slane %v2759_v43, %v6438_v11 }
 0x2e5   : > { %v2280_v18 = vsub.f32 %v6874_v54, %v6957_v31  ;;  %v2803_v2 = vsel %vm1413_vm2, %v2802_v5, %v2796_v63  ;;  %v2830_v21 = vrot.slane %v2822_v20, 4 }
 0x2e6   : > { %v2809_v53 = vperm.slane %v2803_v2, %v6443_v25  ;;  %v2816_v54 = vrot.slane %v2813_v45, 4  ;;  %v2788_v22 = vrot.slane %v2783_v4, 4  ;;  %v2791_v9 = vsel %vm1413_vm2, 0, %v2790_v27 }
 0x2e7   : > { %v2293_v12 = vmul.f32 1.442695, %v2280_v18  ;;  %v6972_v28 = vpop.eup %5586  ;;  %v2875_v57 = vrot.slane %v2791_v9, 4  ;;  %v2870_v16 = vsel %vm1413_vm2, %v2790_v27, %v2783_v4  ;;  %v2856_v27 = vrot.slane %v2848_v24, 4 }
 0x2e8   : > { %v2814_v55 = vrot.slane %v2809_v53, 4  ;;  %v2817_v29 = vsel %vm1413_vm2, 0, %v2816_v54  ;;  %v2343_v40 = vpack.c.bf16 %v6972_v28, %v6972_v28  ;;  %v2789_v17 = vsel %vm1413_vm2, 0, %v2788_v22 }
 0x2e9   : > { %5588 = vpow2.f32 %v2293_v12  ;;  %v2894_v41 = vrot.slane %v2817_v29, 4  ;;  %v2876_v51 = vsel %vm1413_vm2, %v2875_v57, %v2789_v17  ;;  %v2889_v36 = vsel %vm1413_vm2, %v2816_v54, %v2809_v53 }
 0x2ea   : > { %v2815_v48 = vsel %vm1413_vm2, 0, %v2814_v55  ;;  %v2401_v26 = vunpack.c.l.b16 %v2343_v40  ;;  %v2880_v38 = vperm.slane %v2876_v51, %v6438_v11  ;;  %v2874_v1 = vperm.slane %v2870_v16, %v6438_v11 }
 0x2eb   : > { %v2895_v62 = vsel %vm1413_vm2, %v2894_v41, %v2815_v48 }
 0x2ec   : > { %v6970_v47 = vpop.xlane.xlu2 %2246  ;;  %v2899_v3 = vperm.slane %v2895_v62, %v6438_v11  ;;  %v2881_v50 = vrot.slane %v2880_v38, 4 }
 0x2ed   : > { %v2281_v13 = vsub.f32 %v6880_v46, %v6970_v47 }
 0x2ee   : > { %v2900_v6 = vrot.slane %v2899_v3, 4  ;;  %v2882_v53 = vsel %vm1413_vm2, %v2881_v50, %v2874_v1 }
 0x2ef   : > { %v6982_v60 = vpop.eup %5588  ;;  %v2295_v37 = vmul.f32 1.442695, %v2281_v13  ;;  %v2893_v13 = vperm.slane %v2889_v36, %v6438_v11 }
 0x2f0   : > { %v2344_v46 = vpack.c.bf16 %v6982_v60, %v6982_v60 }
 0x2f1   : > { %5590 = vpow2.f32 %v2295_v37  ;;  %v2901_v37 = vsel %vm1413_vm2, %v2900_v6, %v2893_v13 }
 0x2f2   : > { %v2402_v35 = vunpack.c.l.b16 %v2344_v46 }
 0x2f4   : > { %v6990_v8 = vpop.xlane.xlu2 %2249  ;;  %v2403_v0 = vpack.c.b16 %v2402_v35, %v2401_v26 }
 0x2f5   : > { %v2282_v10 = vsub.f32 %v6886_v23, %v6990_v8 }
 0x2f6   : > { %5177 = vmatmul.msk.bf16.vlgmr.msrb.gmra.mxu2 %vm2226_vm8, %v2403_v0 }
 0x2f7   : > { %v2297_v63 = vmul.f32 1.442695, %v2282_v10  ;;  %v7003_v23 = vpop.eup %5590  ;;  %v7036_v10 = vperm.slane %v2901_v37, %v6443_v25 }
 0x2f8   : > { %v2345_v18 = vpack.c.bf16 %v7003_v23, %v7003_v23 }
 0x2f9   : > { %5592 = vpow2.f32 %v2297_v63 }
 0x2fa   : > { %v7012_v12 = vpop.xlane.xlu0 %2237  ;;  %v2427_v29 = vunpack.c.l.b16 %v2345_v18 }
 0x2fb   : > { %v2278_v40 = vsub.f32 %v6892_v19, %v7012_v12  ;;  %v7033_v19 = vperm.slane %v2882_v53, %v6443_v25 }
 0x2fc   : > { %v2737_v61 = vpop.permute.xlu2 %2736 }
 0x2fd   : > { %v2762_v33 = vpack.i.b16 %v2741_v44, %v2737_v61  ;;  %v2763_v5 = vshrl.u32 %v2737_v61, 16  ;;  %v2289_v63 = vmul.f32 1.442695, %v2278_v40 }
 0x2ff   : > { %v2765_v45 = vpack.i.b16 %v2764_v42, %v2763_v5  ;;  %v2827_v2 = vperm.slane %v2762_v33, %v6438_v11  ;;  %v7015_v4 = vpop.eup %5592  ;;  %v2887_v33 = vrot.slane %v7033_v19, 4  ;;  %v2906_v5 = vrot.slane %v7036_v10, 4 }
 0x300   : > { %v2346_v54 = vpack.c.bf16 %v7015_v4, %v7015_v4  ;;  %5594 = vpow2.f32 %v2289_v63 }
 0x301   : > { %v2828_v22 = vrot.slane %v2827_v2, 4  ;;  %v2831_v9 = vsel %vm1413_vm2, %v2827_v2, %v2830_v21  ;;  %v2853_v55 = vperm.slane %v2765_v45, %v6438_v11 }
 0x302   : > { %v2839_v57 = vperm.slane %v2831_v9, %v6443_v25  ;;  %v2428_v17 = vunpack.c.l.b16 %v2346_v54 }
 0x303   : > { %v2829_v46 = vsel %vm1413_vm2, %v2828_v22, %v2822_v20  ;;  %v2854_v49 = vrot.slane %v2853_v55, 4  ;;  %v2857_v41 = vsel %vm1413_vm2, %v2853_v55, %v2856_v27  ;;  %v2907_v22 = vsel %vm1413_vm2, 0, %v2906_v5 }
 0x304   : > { %v2835_v7 = vperm.slane %v2829_v46, %v6443_v25  ;;  %v2842_v48 = vrot.slane %v2839_v57, 4  ;;  %v2865_v26 = vperm.slane %v2857_v41, %v6443_v25  ;;  %v2429_v51 = vpack.c.b16 %v2428_v17, %v2427_v29 }
 0x305   : > { %v2855_v35 = vsel %vm1413_vm2, %v2854_v49, %v2848_v24  ;;  %v2888_v55 = vsel %vm1413_vm2, 0, %v2887_v33  ;;  %v2948_v57 = vpack.i.b16 %v7036_v10, %v7033_v19  ;;  %v2956_v17 = vshrl.u32 %v2907_v22, 16 }
 0x306   : > { %v2840_v0 = vrot.slane %v2835_v7, 4  ;;  %v2843_v52 = vsel %vm1413_vm2, 0, %v2842_v48  ;;  %v2861_v44 = vperm.slane %v2855_v35, %v6443_v25  ;;  %v2868_v62 = vrot.slane %v2865_v26, 4  ;;  %5178 = vmatmul.msk.bf16.vlgmr.msra.gmra.mxu3 %vm2226_vm8, %v2429_v51  ;;  %v7063_v29 = vpop.eup %5594 }
 0x307   : > { %v2913_v43 = vrot.slane %v2843_v52, 4  ;;  %v7043_v16 = vpop.xlane.xlu1 %2234  ;;  %v2908_v24 = vsel %vm1413_vm2, %v2842_v48, %v2835_v7  ;;  %v2955_v46 = vshrl.u32 %v2888_v55, 16  ;;  %v2954_v48 = vpack.i.b16 %v2907_v22, %v2888_v55  ;;  %v7082_v22 = vpop.permute.xlu2 %3460 }
 0x308   : > { %v2841_v38 = vsel %vm1413_vm2, 0, %v2840_v0  ;;  %v2866_v3 = vrot.slane %v2861_v44, 4  ;;  %v2869_v20 = vsel %vm1413_vm2, 0, %v2868_v62  ;;  %v2927_v1 = vsel %vm1413_vm2, %v2868_v62, %v2861_v44 }
 0x309   : > { %v2914_v50 = vsel %vm1413_vm2, %v2913_v43, %v2841_v38  ;;  %v2932_v61 = vrot.slane %v2869_v20, 4  ;;  %v2277_v6 = vsub.f32 %v6898_v58, %v7043_v16  ;;  %v2912_v21 = vperm.slane %v2908_v24, %v6438_v11 }
 0x30a   : > { %v2867_v42 = vsel %vm1413_vm2, 0, %v2866_v3  ;;  %v2918_v36 = vperm.slane %v2914_v50, %v6438_v11  ;;  %v2931_v13 = vperm.slane %v2927_v1, %v6438_v11  ;;  %v2342_v26 = vpack.c.bf16 %v7063_v29, %v7063_v29 }
 0x30b   : > { %v2933_v18 = vsel %vm1413_vm2, %v2932_v61, %v2867_v42  ;;  %v2287_v27 = vmul.f32 1.442695, %v2277_v6  ;;  %v3472_v51 = vunpack.c.l.b16 %v2948_v57  ;;  %v2957_v44 = vpack.i.b16 %v2956_v17, %v2955_v46 }
 0x30c   : > { %v2919_v45 = vrot.slane %v2918_v36, 4  ;;  %v2937_v2 = vperm.slane %v2933_v18, %v6438_v11  ;;  %v3524_v20 = vunpack.c.l.b16 %v2954_v48  ;;  %v2376_v24 = vunpack.c.l.b16 %v2342_v26 }
 0x30d   : > { %5596 = vpow2.f32 %v2287_v27  ;;  %v3550_v5 = vunpack.c.l.b16 %v2957_v44  ;;  %vm3465_vm15 = vcmp.eq.s32.totalorder %v7082_v22, 1 }
 0x30e   : > { %v2920_v53 = vsel %vm1413_vm2, %v2919_v45, %v2912_v21  ;;  %v2938_v54 = vrot.slane %v2937_v2, 4  ;;  %v2950_v21 = vshrl.u32 %v7036_v10, 16  ;;  %v2949_v2 = vshrl.u32 %v7033_v19, 16 }
 0x30f   : > { %v2924_v9 = vperm.slane %v2920_v53, %v6443_v25 }
 0x310   : > { %v2939_v58 = vsel %vm1413_vm2, %v2938_v54, %v2931_v13  ;;  %v2951_v13 = vpack.i.b16 %v2950_v21, %v2949_v2 }
 0x311   : > { %v2943_v40 = vperm.slane %v2939_v58, %v6443_v25  ;;  %v2925_v37 = vrot.slane %v2924_v9, 4  ;;  %v2961_v45 = vshrl.u32 %v2924_v9, 16  ;;  %v7085_v58 = vpop.permute.xlu2 %3463 }
 0x312   : > { %v3498_v54 = vunpack.c.l.b16 %v2951_v13  ;;  %vm3466_vm1 = vcmp.eq.s32.totalorder %v7085_v58, 1 }
 0x313   : > { %v2960_v49 = vpack.i.b16 %v2943_v40, %v2924_v9  ;;  %v2926_v41 = vsel %vm1413_vm2, 0, %v2925_v37  ;;  %v2944_v7 = vrot.slane %v2943_v40, 4  ;;  %v7071_v35 = vpop.eup %5596  ;;  %v2962_v6 = vshrl.u32 %v2943_v40, 16 }
 0x314   : > { %v2341_v62 = vpack.c.bf16 %v7071_v35, %v7071_v35  ;;  %v2967_v43 = vshrl.u32 %v2926_v41, 16  ;;  %v2251_v37 = vsub.f32 -inf, %v6906_v59  ;;  %v3229_v40 = vshrl.u32 %v6921_v15, 16 }
 0x315   : > { %v3473_v0 = vunpack.c.l.b16 %v2960_v49  ;;  %v2945_v52 = vsel %vm1413_vm2, 0, %v2944_v7  ;;  %v2963_v27 = vpack.i.b16 %v2962_v6, %v2961_v45  ;;  %v2252_v7 = vsub.f32 -inf, %v6909_v39 }
 0x316   : > { %v2966_v63 = vpack.i.b16 %v2945_v52, %v2926_v41  ;;  %v2968_v38 = vshrl.u32 %v2945_v52, 16  ;;  %v2375_v50 = vunpack.c.l.b16 %v2341_v62  ;;  %v2259_v17 = vmul.f32 1.442695, %v2251_v37 }
 0x317   : > { %v3474_v3 = vpack.c.b16 %v3473_v0, %v3472_v51  ;;  %v3499_v53 = vunpack.c.l.b16 %v2963_v27  ;;  %v3241_v51 = vshrl.u32 %v6938_v32, 16 }
 0x318   : > { %v3525_v61 = vunpack.c.l.b16 %v2966_v63  ;;  %v2969_v42 = vpack.i.b16 %v2968_v38, %v2967_v43  ;;  %v2377_v36 = vpack.c.b16 %v2376_v24, %v2375_v50  ;;  %5598 = vpow2.f32 %v2259_v17  ;;  %v3221_v24 = vpop.permute.xlu0 %3220 }
 0x319   : > { %5179 = vmatmul.msk.bf16.vlgmr.msrb.gmra.mxu0 %vm2115_vm3, %v3474_v3  ;;  %v3500_v55 = vpack.c.b16 %v3499_v53, %v3498_v54  ;;  %v3215_v57 = vpop.permute.xlu2 %3214  ;;  %v3247_v6 = vshrl.u32 %v3221_v24, 16 }
 0x31a   : > { %v3526_v33 = vpack.c.b16 %v3525_v61, %v3524_v20  ;;  %v3551_v1 = vunpack.c.l.b16 %v2969_v42  ;;  %5176 = vmatmul.msk.bf16.vlgmr.msra.gmra.mxu1 %vm2226_vm8, %v2377_v36  ;;  %v3230_v10 = vshrl.u32 %v3215_v57, 16  ;;  %v3228_v19 = vpack.i.b16 %v3215_v57, %v6921_v15 }
 0x31b   : > { %v2261_v15 = vmul.f32 1.442695, %v2252_v7 }
 0x31c   : > { %5181 = vmatmul.msk.bf16.vlgmr.msra.gmra.mxu2 %vm2115_vm3, %v3526_v33  ;;  %v3552_v18 = vpack.c.b16 %v3551_v1, %v3550_v5  ;;  %v3231_v46 = vpack.i.b16 %v3230_v10, %v3229_v40  ;;  %v3254_v41 = vperm.slane %v3228_v19, %v6438_v11 }
 0x31d   : > { %5600 = vpow2.f32 %v2261_v15 }
 0x31e   : > { %5182 = vmatmul.msk.bf16.vlgmr.msrb.gmra.mxu3 %vm2115_vm3, %v3552_v18  ;;  %v3280_v48 = vperm.slane %v3231_v46, %v6438_v11  ;;  %v3262_v52 = vrot.slane %v3254_v41, 4  ;;  %v5599_v43 = vpop.eup %5598 }
 0x31f   : > { %v3219_v49 = vpop.permute.xlu1 %3218  ;;  %v7099_v36 = vmul.f32 0.0, %v5599_v43 }
 0x320   : > { %v3235_v26 = vshrl.u32 %v3219_v49, 16  ;;  %v3288_v38 = vrot.slane %v3280_v48, 4 }
 0x321   : > { %v3217_v9 = vpop.permute.xlu2 %3216 }
 0x322   : > { %v3240_v59 = vpack.i.b16 %v3217_v9, %v6938_v32  ;;  %v3242_v44 = vshrl.u32 %v3217_v9, 16 }
 0x323   : > { %v5601_v7 = vpop.eup %5600 }
 0x324   : > { %v3306_v39 = vperm.slane %v3240_v59, %v6438_v11  ;;  %v3243_v50 = vpack.i.b16 %v3242_v44, %v3241_v51 }
 0x326   : > { %v3314_v21 = vrot.slane %v3306_v39, 4  ;;  %v3332_v53 = vperm.slane %v3243_v50, %v6438_v11 }
 0x329   : > { %v3223_v0 = vpop.permute.xlu2 %3222 }
 0x32a   : > { %5180 = vmatmul.msk.bf16.vlgmr.msrb.gmra.mxu1 %vm2115_vm3, %v3500_v55  ;;  %v3236_v62 = vshrl.u32 %v3223_v0, 16  ;;  %v3234_v63 = vpack.i.b16 %v3223_v0, %v3219_v49  ;;  %v3340_v0 = vrot.slane %v3332_v53, 4 }
 0x32c   : > { %v3237_v3 = vpack.i.b16 %v3236_v62, %v3235_v26  ;;  %v3259_v20 = vperm.slane %v3234_v63, %v6438_v11 }
 0x32e   : > { %v3260_v61 = vrot.slane %v3259_v20, 4  ;;  %v3263_v42 = vsel %vm1413_vm2, %v3259_v20, %v3262_v52  ;;  %v3285_v32 = vperm.slane %v3237_v3, %v6438_v11 }
 0x32f   : > { %v3271_v33 = vperm.slane %v3263_v42, %v6443_v25 }
 0x330   : > { %v3261_v5 = vsel %vm1413_vm2, %v3260_v61, %v3254_v41  ;;  %v3286_v1 = vrot.slane %v3285_v32, 4  ;;  %v3289_v18 = vsel %vm1413_vm2, %v3285_v32, %v3288_v38 }
 0x331   : > { %v3267_v45 = vperm.slane %v3261_v5, %v6443_v25  ;;  %v3274_v2 = vrot.slane %v3271_v33, 4  ;;  %v3297_v27 = vperm.slane %v3289_v18, %v6443_v25  ;;  %v3225_v13 = vpop.permute.xlu2 %3224  ;;  %v7130_v18 = vmul.f32 0.0, %v5601_v7 }
 0x332   : > { %v3287_v54 = vsel %vm1413_vm2, %v3286_v1, %v3280_v48  ;;  %v3246_v55 = vpack.i.b16 %v3225_v13, %v3221_v24  ;;  %v3248_v57 = vshrl.u32 %v3225_v13, 16 }
 0x333   : > { %v3272_v37 = vrot.slane %v3267_v45, 4  ;;  %v3275_v40 = vsel %vm1413_vm2, 0, %v3274_v2  ;;  %v3293_v10 = vperm.slane %v3287_v54, %v6443_v25  ;;  %v3300_v9 = vrot.slane %v3297_v27, 4 }
 0x334   : > { %v3354_v19 = vsel %vm1413_vm2, %v3274_v2, %v3267_v45  ;;  %v3359_v46 = vrot.slane %v3275_v40, 4  ;;  %v3249_v49 = vpack.i.b16 %v3248_v57, %v3247_v6  ;;  %v3311_v41 = vperm.slane %v3246_v55, %v6438_v11 }
 0x335   : > { %v3273_v48 = vsel %vm1413_vm2, 0, %v3272_v37  ;;  %v3298_v51 = vrot.slane %v3293_v10, 4  ;;  %v3301_v59 = vsel %vm1413_vm2, 0, %v3300_v9  ;;  %v3358_v63 = vperm.slane %v3354_v19, %v6438_v11 }
 0x336   : > { %v3360_v52 = vsel %vm1413_vm2, %v3359_v46, %v3273_v48  ;;  %v3378_v44 = vrot.slane %v3301_v59, 4  ;;  %v3312_v43 = vrot.slane %v3311_v41, 4  ;;  %v3373_v38 = vsel %vm1413_vm2, %v3300_v9, %v3293_v10 }
 0x337   : > { %v3299_v62 = vsel %vm1413_vm2, 0, %v3298_v51  ;;  %v3364_v15 = vperm.slane %v3360_v52, %v6438_v11  ;;  %v3315_v20 = vsel %vm1413_vm2, %v3311_v41, %v3314_v21  ;;  %v3337_v24 = vperm.slane %v3249_v49, %v6438_v11 }
 0x338   : > { %v3379_v3 = vsel %vm1413_vm2, %v3378_v44, %v3299_v62  ;;  %v3313_v42 = vsel %vm1413_vm2, %v3312_v43, %v3306_v39  ;;  %v3323_v32 = vperm.slane %v3315_v20, %v6443_v25  ;;  %v3377_v6 = vperm.slane %v3373_v38, %v6438_v11 }
 0x339   : > { %v3365_v50 = vrot.slane %v3364_v15, 4  ;;  %v3383_v61 = vperm.slane %v3379_v3, %v6438_v11  ;;  %v3319_v33 = vperm.slane %v3313_v42, %v6443_v25  ;;  %v3338_v5 = vrot.slane %v3337_v24, 4 }
 0x33a   : > { %v3341_v1 = vsel %vm1413_vm2, %v3337_v24, %v3340_v0  ;;  %v3326_v45 = vrot.slane %v3323_v32, 4 }
 0x33b   : > { %v3349_v21 = vperm.slane %v3341_v1, %v6443_v25  ;;  %v3324_v27 = vrot.slane %v3319_v33, 4  ;;  %v3339_v13 = vsel %vm1413_vm2, %v3338_v5, %v3332_v53  ;;  %v3366_v39 = vsel %vm1413_vm2, %v3365_v50, %v3358_v63 }
 0x33c   : > { %v3384_v54 = vrot.slane %v3383_v61, 4  ;;  %v3327_v57 = vsel %vm1413_vm2, 0, %v3326_v45  ;;  %v3345_v37 = vperm.slane %v3339_v13, %v6443_v25  ;;  %v3392_v9 = vsel %vm1413_vm2, %v3326_v45, %v3319_v33 }
 0x33d   : > { %v3352_v40 = vrot.slane %v3349_v21, 4  ;;  %v3325_v10 = vsel %vm1413_vm2, 0, %v3324_v27  ;;  %v3370_v19 = vperm.slane %v3366_v39, %v6443_v25  ;;  %v3396_v59 = vperm.slane %v3392_v9, %v6438_v11 }
 0x33e   : > { %v3350_v46 = vrot.slane %v3345_v37, 4  ;;  %v3385_v48 = vsel %vm1413_vm2, %v3384_v54, %v3377_v6  ;;  %v2255_v13 = vsub.f32 -inf, %v6944_v14 }
 0x33f   : > { %v3353_v53 = vsel %vm1413_vm2, 0, %v3352_v40  ;;  %v3411_v41 = vsel %vm1413_vm2, %v3352_v40, %v3345_v37  ;;  %v3389_v52 = vperm.slane %v3385_v48, %v6443_v25  ;;  %v3371_v62 = vrot.slane %v3370_v19, 4 }
 0x340   : > { %v3416_v7 = vrot.slane %v3353_v53, 4  ;;  %v3351_v51 = vsel %vm1413_vm2, 0, %v3350_v46  ;;  %v3415_v15 = vperm.slane %v3411_v41, %v6438_v11  ;;  %v3433_v38 = vshrl.u32 %v3370_v19, 16 }
 0x341   : > { %v3434_v3 = vshrl.u32 %v3389_v52, 16  ;;  %v3372_v20 = vsel %vm1413_vm2, 0, %v3371_v62  ;;  %v3390_v24 = vrot.slane %v3389_v52, 4  ;;  %v3432_v42 = vpack.i.b16 %v3389_v52, %v3370_v19 }
 0x342   : > { %v3417_v44 = vsel %vm1413_vm2, %v3416_v7, %v3351_v51  ;;  %v3439_v1 = vshrl.u32 %v3372_v20, 16  ;;  %v2267_v41 = vmul.f32 1.442695, %v2255_v13 }
 0x343   : > { %v3421_v43 = vperm.slane %v3417_v44, %v6438_v11  ;;  %v3391_v33 = vsel %vm1413_vm2, 0, %v3390_v24  ;;  %v3435_v21 = vpack.i.b16 %v3434_v3, %v3433_v38  ;;  %v3713_v39 = vunpack.c.l.b16 %v3432_v42 }
 0x344   : > { %v3440_v6 = vshrl.u32 %v3391_v33, 16  ;;  %v3438_v54 = vpack.i.b16 %v3391_v33, %v3372_v20  ;;  %5602 = vpow2.f32 %v2267_v41  ;;  %v2257_v24 = vsub.f32 -inf, %v6970_v47 }
 0x345   : > { %v3422_v61 = vrot.slane %v3421_v43, 4  ;;  %v3739_v53 = vunpack.c.l.b16 %v3435_v21  ;;  %v2253_v21 = vsub.f32 -inf, %v7043_v16 }
 0x346   : > { %v3441_v9 = vpack.i.b16 %v3440_v6, %v3439_v1  ;;  %v3765_v48 = vunpack.c.l.b16 %v3438_v54  ;;  %v2271_v42 = vmul.f32 1.442695, %v2257_v24 }
 0x347   : > { %v3423_v5 = vsel %vm1413_vm2, %v3422_v61, %v3415_v15  ;;  %v2263_v13 = vmul.f32 1.442695, %v2253_v21  ;;  %v2310_v21 = vsel %vm2226_vm8, %v6923_v30, 0.0  ;;  %v2316_v30 = vsel %vm2226_vm8, %v7063_v29, 0.0 }
 0x348   : > { %v3427_v45 = vperm.slane %v3423_v5, %v6443_v25  ;;  %v3791_v44 = vunpack.c.l.b16 %v3441_v9 }
 0x34a   : > { %v3446_v37 = vshrl.u32 %v3427_v45, 16  ;;  %v5603_v20 = vpop.eup %5602 }
 0x353   : > { %v2368_v17 = vpop.f32.mrf.mxu1 }
 0x354   : > { %v7113_v26 = vadd.f32 %v2368_v17, %v7099_v36  ;;  %v3397_v17 = vrot.slane %v3327_v57, 4 }
 0x356   : > { %v3398_v49 = vsel %vm1413_vm2, %v3397_v17, %v3325_v10  ;;  %v3428_v10 = vrot.slane %v3427_v45, 4 }
 0x357   : > { %v3402_v0 = vperm.slane %v3398_v49, %v6438_v11 }
 0x358   : > { %v3429_v49 = vsel %vm1413_vm2, 0, %v3428_v10 }
 0x359   : > { %v3403_v63 = vrot.slane %v3402_v0, 4  ;;  %v3452_v51 = vshrl.u32 %v3429_v49, 16 }
 0x35b   : > { %v2370_v2 = vpop.f32.mrf.mxu1  ;;  %v3404_v50 = vsel %vm1413_vm2, %v3403_v63, %v3396_v59  ;;  %v2256_v63 = vsub.f32 -inf, %v6957_v31  ;;  %v2258_v31 = vsub.f32 -inf, %v6990_v8  ;;  %v1071_v8 = vld [vmem:[%s7822_s11 + $0x1] sm:$0x1] }
 0x35c   : > { %v7137_v55 = vadd.f32 %v2370_v2, %v7130_v18  ;;  %v3408_v32 = vperm.slane %v3404_v50, %v6443_v25  ;;  %v7166_v50 = vmul.f32 0.0, %v5603_v20  ;;  %vm3456_vm13 = vcmp.gt.f32.partialorder %v1071_v8, 0.5 }
 0x35d   : > { %v2269_v3 = vmul.f32 1.442695, %v2256_v63  ;;  %v2273_v6 = vmul.f32 1.442695, %v2258_v31  ;;  %v3467_v10 = vsel %vm3456_vm13, 1, %v5982_v56  ;;  %v2319_v31 = vsel %vm2226_vm8, %v6972_v28, 0.0 }
 0x35e   : > { %v3445_v2 = vshrl.u32 %v3408_v32, 16  ;;  %v3409_v27 = vrot.slane %v3408_v32, 4  ;;  %v3444_v57 = vpack.i.b16 %v3427_v45, %v3408_v32  ;;  %v3468_v9 = vperm.slane %v3467_v10, 0 }
 0x35f   : > { %5604 = vpow2.f32 %v2269_v3  ;;  %v2307_v28 = vsel %vm2226_vm8, %v6912_v34, 0.0 }
 0x360   : > { %v3410_v40 = vsel %vm1413_vm2, 0, %v3409_v27  ;;  %v3714_v19 = vunpack.c.l.b16 %v3444_v57  ;;  %v3447_v46 = vpack.i.b16 %v3446_v37, %v3445_v2  ;;  %5606 = vpow2.f32 %v2271_v42 }
 0x361   : > { %v3451_v17 = vshrl.u32 %v3410_v40, 16  ;;  %v3450_v7 = vpack.i.b16 %v3429_v49, %v3410_v40  ;;  %5608 = vpow2.f32 %v2273_v6  ;;  %vm3469_vm14 = vcmp.eq.s32.totalorder %v3468_v9, 1 }
 0x362   : > { %v3715_v59 = vpack.c.b16 %v3714_v19, %v3713_v39  ;;  %v3740_v14 = vunpack.c.l.b16 %v3447_v46  ;;  %5610 = vpow2.f32 %v2263_v13  ;;  %vm7198_vm0 = vmand %vm3465_vm15, %vm3469_vm14  ;;  %v2313_v13 = vsel %vm2226_vm8, %v7071_v35, 0.0 }
 0x363   : > { %v3766_v0 = vunpack.c.l.b16 %v3450_v7  ;;  %v3453_v52 = vpack.i.b16 %v3452_v51, %v3451_v17  ;;  %vm7211_vm4 = vmand %vm3466_vm1, %vm3469_vm14 }
 0x364   : > { %3727 = vmatpush.bf16.msra.mxu0 %v3715_v59  ;;  %v3741_v62 = vpack.c.b16 %v3740_v14, %v3739_v53 }
 0x365   : > { %v3767_v15 = vpack.c.b16 %v3766_v0, %v3765_v48  ;;  %v3792_v43 = vunpack.c.l.b16 %v3453_v52  ;;  %v5605_v33 = vpop.eup %5604 }
 0x366   : > { %3753 = vmatpush.bf16.msra.mxu1 %v3741_v62  ;;  %v7172_v5 = vmul.f32 0.0, %v5605_v33  ;;  %v5607_v47 = vpop.eup %5606 }
 0x367   : > { %3779 = vmatpush.bf16.msrb.mxu2 %v3767_v15  ;;  %v3793_v38 = vpack.c.b16 %v3792_v43, %v3791_v44  ;;  %v7178_v2 = vmul.f32 0.0, %v5607_v47  ;;  %v5609_v54 = vpop.eup %5608  ;;  %v2322_v47 = vsel %vm2226_vm8, %v6982_v60, 0.0  ;;  %v2328_v60 = vsel %vm2226_vm8, %v7015_v4, 0.0 }
 0x368   : > { %v7186_v57 = vmul.f32 0.0, %v5609_v54  ;;  %v5611_v40 = vpop.eup %5610 }
 0x369   : > { %3805 = vmatpush.bf16.msra.mxu3 %v3793_v38  ;;  %v7192_v17 = vmul.f32 0.0, %v5611_v40 }
 0x379   : > { %v2420_v61 = vpop.f32.mrf.mxu2 }
 0x37a   : > { %v7169_v32 = vadd.f32 %v2420_v61, %v7166_v50 }
 0x381   : > { %v2422_v1 = vpop.f32.mrf.mxu2 }
 0x382   : > { %v7175_v45 = vadd.f32 %v2422_v1, %v7172_v5 }
 0x389   : > { %v2446_v27 = vpop.f32.mrf.mxu3 }
 0x38a   : > { %v7181_v39 = vadd.f32 %v2446_v27, %v7178_v2  ;;  %v2325_v27 = vsel %vm2226_vm8, %v7003_v23, 0.0 }
 0x391   : > { %v2448_v37 = vpop.f32.mrf.mxu3 }
 0x392   : > { %v7189_v16 = vadd.f32 %v2448_v37, %v7186_v57 }
 0x396   : > { %v3493_v53 = vpop.f32.mrf.mxu0 }
 0x397   : > { %v2394_v19 = vpop.f32.mrf.mxu1  ;;  %v3580_v20 = vsel %vm7198_vm0, %v3493_v53, -10000.0 }
 0x398   : > { %v7195_v46 = vadd.f32 %v2394_v19, %v7192_v17  ;;  %v3588_v61 = vsel %vm2226_vm8, %v3580_v20, -inf }
 0x39e   : > { %v3495_v0 = vpop.f32.mrf.mxu0 }
 0x39f   : > { %v3545_v41 = vpop.f32.mrf.mxu2  ;;  %v7204_v56 = vpop.f32.mrf.mxu1  ;;  %v3581_v44 = vsel %vm7211_vm4, %v3495_v0, -10000.0 }
 0x3a0   : > { %v3584_v7 = vsel %vm7198_vm0, %v3545_v41, -10000.0  ;;  %v3591_v3 = vsel %vm2226_vm8, %v3581_v44, -inf }
 0x3a1   : > { %v3571_v48 = vpop.f32.mrf.mxu3  ;;  %v3600_v51 = vsel %vm2226_vm8, %v3584_v7, -inf }
 0x3a2   : > { %v3586_v59 = vsel %vm7198_vm0, %v3571_v48, -10000.0  ;;  %3601 = vmax.xlane.f32.xlu2 %v3600_v51 }
 0x3a3   : > { %v3606_v22 = vsel %vm2226_vm8, %v3586_v59, -inf }
 0x3a4   : > { %3607 = vmax.xlane.f32.xlu1 %v3606_v22 }
 0x3a7   : > { %v3547_v52 = vpop.f32.mrf.mxu2  ;;  %v3519_v58 = vpop.f32.mrf.mxu1 }
 0x3a8   : > { %v3585_v62 = vsel %vm7211_vm4, %v3547_v52, -10000.0  ;;  %v3582_v24 = vsel %vm7198_vm0, %v3519_v58, -10000.0 }
 0x3a9   : > { %v3573_v63 = vpop.f32.mrf.mxu3  ;;  %v3603_v15 = vsel %vm2226_vm8, %v3585_v62, -inf  ;;  %v3594_v33 = vsel %vm2226_vm8, %v3582_v24, -inf }
 0x3aa   : > { %v3587_v43 = vsel %vm7211_vm4, %v3573_v63, -10000.0  ;;  %3604 = vmax.xlane.f32.xlu0 %v3603_v15 }
 0x3ab   : > { %v3609_v38 = vsel %vm2226_vm8, %v3587_v43, -inf }
 0x3ac   : > { %3610 = vmax.xlane.f32.xlu2 %v3609_v38  ;;  %3592 = vmax.xlane.f32.xlu1 %v3591_v3 }
 0x3af   : > { %v3521_v42 = vpop.f32.mrf.mxu1 }
 0x3b0   : > { %v7234_v1 = vsel %vm7211_vm4, %v3521_v42, -10000.0 }
 0x3b1   : > { %v3597_v6 = vsel %vm2226_vm8, %v7234_v1, -inf }
 0x3b2   : > { %3589 = vmax.xlane.f32.xlu0 %v3588_v61 }
 0x3b4   : > { %3595 = vmax.xlane.f32.xlu2 %v3594_v33  ;;  %2320 = vadd.xlane.f32.xlu1 %v2319_v31 }
 0x3ba   : > { %3598 = vmax.xlane.f32.xlu0 %v3597_v6 }
 0x3bc   : > { %2323 = vadd.xlane.f32.xlu2 %v2322_v47  ;;  %2311 = vadd.xlane.f32.xlu1 %v2310_v21 }
 0x3c2   : > { %2308 = vadd.xlane.f32.xlu0 %v2307_v28 }
 0x3c4   : > { %2326 = vadd.xlane.f32.xlu2 %v2325_v27  ;;  %2314 = vadd.xlane.f32.xlu1 %v2313_v13 }
 0x3ca   : > { %2329 = vadd.xlane.f32.xlu0 %v2328_v60 }
 0x3cc   : > { %2317 = vadd.xlane.f32.xlu2 %v2316_v30 }
 0x415   : > { %v7252_v54 = vpop.xlane.xlu2 %3601 }
 0x416   : > { %v3640_v8 = vsub.f32 %v3584_v7, %v7252_v54 }
 0x417   : > { %v7254_v34 = vpop.xlane.xlu1 %3607 }
 0x418   : > { %v3642_v23 = vsub.f32 %v3586_v59, %v7254_v34  ;;  %v3652_v37 = vmul.f32 1.442695, %v3640_v8 }
 0x41a   : > { %v3656_v40 = vmul.f32 1.442695, %v3642_v23  ;;  %5612 = vpow2.f32 %v3652_v37 }
 0x41c   : > { %5614 = vpow2.f32 %v3656_v40 }
 0x41d   : > { %v7258_v35 = vpop.xlane.xlu0 %3604 }
 0x41e   : > { %v3641_v10 = vsub.f32 %v3585_v62, %v7258_v35  ;;  %v2254_v62 = vsub.f32 -inf, %v7012_v12 }
 0x41f   : > { %v7261_v4 = vpop.xlane.xlu1 %3592  ;;  %v7263_v9 = vpop.xlane.xlu2 %3610 }
 0x420   : > { %v3654_v29 = vmul.f32 1.442695, %v3641_v10  ;;  %v3637_v19 = vsub.f32 %v3581_v44, %v7261_v4  ;;  %v3643_v53 = vsub.f32 %v3587_v43, %v7263_v9  ;;  %v5613_v48 = vpop.eup %5612 }
 0x421   : > { %v3704_v58 = vpack.c.bf16 %v5613_v48, %v5613_v48 }
 0x422   : > { %v3646_v49 = vmul.f32 1.442695, %v3637_v19  ;;  %5616 = vpow2.f32 %v3654_v29  ;;  %v3658_v41 = vmul.f32 1.442695, %v3643_v53  ;;  %v5615_v14 = vpop.eup %5614 }
 0x423   : > { %v3762_v31 = vunpack.c.l.b16 %v3704_v58  ;;  %v3686_v19 = vsel %vm2226_vm8, %v5615_v14, 0.0 }
 0x424   : > { %5618 = vpow2.f32 %v3646_v49 }
 0x425   : > { %v7267_v7 = vpop.xlane.xlu0 %3589  ;;  %5620 = vpow2.f32 %v3658_v41  ;;  %v3680_v41 = vsel %vm2226_vm8, %v5613_v48, 0.0 }
 0x426   : > { %v3636_v51 = vsub.f32 %v3580_v20, %v7267_v7  ;;  %v3706_v20 = vpack.c.bf16 %v5615_v14, %v5615_v14 }
 0x427   : > { %v2321_v59 = vpop.xlane.xlu1 %2320  ;;  %v7270_v22 = vpop.xlane.xlu2 %3595 }
 0x428   : > { %v3644_v0 = vmul.f32 1.442695, %v3636_v51  ;;  %v2335_v52 = vadd.f32 %v2321_v59, %v7166_v50  ;;  %v5617_v44 = vpop.eup %5616  ;;  %v3638_v63 = vsub.f32 %v3582_v24, %v7270_v22  ;;  %v2265_v50 = vmul.f32 1.442695, %v2254_v62 }
 0x429   : > { %v3705_v15 = vpack.c.bf16 %v5617_v44, %v5617_v44  ;;  %v3683_v43 = vsel %vm2226_vm8, %v5617_v44, 0.0  ;;  %v3788_v27 = vunpack.c.l.b16 %v3706_v20 }
 0x42a   : > { %v5619_v38 = vpop.eup %5618  ;;  %5622 = vpow2.f32 %v3644_v0  ;;  %v3648_v3 = vmul.f32 1.442695, %v3638_v63  ;;  %3684 = vadd.xlane.f32.xlu1 %v3683_v43 }
 0x42b   : > { %v3763_v61 = vunpack.c.l.b16 %v3705_v15  ;;  %5624 = vrcp.f32 %v2335_v52  ;;  %v3671_v42 = vsel %vm2226_vm8, %v5619_v38, 0.0  ;;  %v5621_v33 = vpop.eup %5620  ;;  %v3701_v13 = vpack.c.bf16 %v5619_v38, %v5619_v38 }
 0x42c   : > { %3672 = vadd.xlane.f32.xlu0 %v3671_v42  ;;  %v3707_v6 = vpack.c.bf16 %v5621_v33, %v5621_v33  ;;  %5626 = vpow2.f32 %v3648_v3 }
 0x42d   : > { %v7277_v12 = vpop.xlane.xlu0 %3598  ;;  %v3764_v21 = vpack.c.b16 %v3763_v61, %v3762_v31  ;;  %5628 = vpow2.f32 %v2265_v50 }
 0x42e   : > { %v3639_v24 = vsub.f32 %v7234_v1, %v7277_v12  ;;  %v3789_v60 = vunpack.c.l.b16 %v3707_v6 }
 0x42f   : > { %v2312_v47 = vpop.xlane.xlu1 %2311  ;;  %v2324_v28 = vpop.xlane.xlu2 %2323  ;;  %5185 = vmatmul.msk.bf16.vlgmr.msrb.gmra.mxu2 %vm2226_vm8, %v3764_v21 }
 0x430   : > { %v2332_v30 = vadd.f32 %v2312_v47, %v7130_v18  ;;  %v5623_v8 = vpop.eup %5622  ;;  %v3650_v23 = vmul.f32 1.442695, %v3639_v24  ;;  %v2336_v37 = vadd.f32 %v2324_v28, %v7172_v5  ;;  %v3790_v29 = vpack.c.b16 %v3789_v60, %v3788_v27 }
 0x431   : > { %v5625_v40 = vpop.eup %5624  ;;  %v3700_v10 = vpack.c.bf16 %v5623_v8, %v5623_v8  ;;  %v3668_v1 = vsel %vm2226_vm8, %v5623_v8, 0.0  ;;  %v3711_v18 = vunpack.c.l.b16 %v3701_v13 }
 0x432   : > { %v2471_v53 = vmul.f32 %v5625_v40, %v7169_v32  ;;  %5630 = vpow2.f32 %v3650_v23  ;;  %3669 = vadd.xlane.f32.xlu2 %v3668_v1  ;;  %3687 = vadd.xlane.f32.xlu1 %v3686_v19  ;;  %v5627_v5 = vpop.eup %5626 }
 0x433   : > { %v3710_v49 = vunpack.c.l.b16 %v3700_v10  ;;  %5632 = vrcp.f32 %v2332_v30  ;;  %5186 = vmatmul.msk.bf16.vlgmr.msra.gmra.mxu3 %vm2226_vm8, %v3790_v29  ;;  %v5629_v14 = vpop.eup %5628  ;;  %v3702_v44 = vpack.c.bf16 %v5627_v5, %v5627_v5 }
 0x434   : > { %5634 = vrcp.f32 %v2336_v37  ;;  %3681 = vadd.xlane.f32.xlu0 %v3680_v41  ;;  %v2302_v6 = vmul.f32 0.0, %v5629_v14  ;;  %v2475_v21 = vrot.slane %v2471_v53, 4 }
 0x435   : > { %v2309_v51 = vpop.xlane.xlu0 %2308  ;;  %v3712_v0 = vpack.c.b16 %v3711_v18, %v3710_v49  ;;  %v3736_v20 = vunpack.c.l.b16 %v3702_v44 }
 0x436   : > { %v2331_v59 = vadd.f32 %v2309_v51, %v7099_v36  ;;  %v3689_v36 = vsel %vm2226_vm8, %v5621_v33, 0.0  ;;  %v2454_v14 = vadd.f32 %v7204_v56, %v2302_v6 }
 0x437   : > { %v2315_v52 = vpop.xlane.xlu1 %2314  ;;  %v2327_v32 = vpop.xlane.xlu2 %2326  ;;  %5183 = vmatmul.msk.bf16.vlgmr.msra.gmra.mxu0 %vm2226_vm8, %v3712_v0 }
 0x438   : > { %5636 = vrcp.f32 %v2331_v59  ;;  %v2333_v62 = vadd.f32 %v2315_v52, %v7192_v17  ;;  %v2337_v58 = vadd.f32 %v2327_v32, %v7178_v2  ;;  %v5631_v63 = vpop.eup %5630  ;;  %v3674_v2 = vsel %vm2226_vm8, %v5627_v5, 0.0 }
 0x439   : > { %v5633_v48 = vpop.eup %5632  ;;  %v3703_v15 = vpack.c.bf16 %v5631_v63, %v5631_v63  ;;  %v3677_v43 = vsel %vm2226_vm8, %v5631_v63, 0.0 }
 0x43a   : > { %5638 = vrcp.f32 %v2333_v62  ;;  %v5635_v38 = vpop.eup %5634  ;;  %v2468_v3 = vmul.f32 %v5633_v48, %v7137_v55  ;;  %3678 = vadd.xlane.f32.xlu1 %v3677_v43  ;;  %3690 = vadd.xlane.f32.xlu2 %v3689_v36 }
 0x43b   : > { %5640 = vrcp.f32 %v2337_v58  ;;  %v3737_v17 = vunpack.c.l.b16 %v3703_v15  ;;  %v2472_v61 = vmul.f32 %v5635_v38, %v7175_v45 }
 0x43c   : > { %v2534_v42 = vrot.slane %v2468_v3, 4  ;;  %3675 = vadd.xlane.f32.xlu0 %v3674_v2 }
 0x43d   : > { %v2330_v50 = vpop.xlane.xlu0 %2329  ;;  %v2532_v24 = vrot.slane %v2472_v61, 4  ;;  %v3738_v47 = vpack.c.b16 %v3737_v17, %v3736_v20 }
 0x43e   : > { %v5637_v31 = vpop.eup %5636  ;;  %v2338_v33 = vadd.f32 %v2330_v50, %v7186_v57  ;;  %v2535_v55 = vsel %vm1413_vm2, %v2472_v61, %v2534_v42 }
 0x43f   : > { %v2467_v28 = vmul.f32 %v5637_v31, %v7113_v26  ;;  %v2318_v27 = vpop.xlane.xlu2 %2317  ;;  %v2533_v45 = vsel %vm1413_vm2, %v2532_v24, %v2468_v3  ;;  %5184 = vmatmul.msk.bf16.vlgmr.msra.gmra.mxu1 %vm2226_vm8, %v3738_v47  ;;  %v2543_v49 = vperm.slane %v2535_v55, %v6438_v11 }
 0x440   : > { %v5639_v13 = vpop.eup %5638  ;;  %5642 = vrcp.f32 %v2338_v33  ;;  %v2334_v60 = vadd.f32 %v2318_v27, %v2302_v6 }
 0x441   : > { %v5641_v30 = vpop.eup %5640  ;;  %v2477_v8 = vsel %vm1413_vm2, %v2475_v21, %v2467_v28  ;;  %v2478_v23 = vrot.slane %v2467_v28, 4  ;;  %v2469_v57 = vmul.f32 %v5639_v13, %v7195_v46  ;;  %v2570_v48 = vrot.slane %v2543_v49, 4 }
 0x442   : > { %v2473_v37 = vmul.f32 %v5641_v30, %v7181_v39  ;;  %5644 = vrcp.f32 %v2334_v60  ;;  %v2483_v26 = vperm.slane %v2477_v8, %v6438_v11  ;;  %v2539_v39 = vperm.slane %v2533_v45, %v6438_v11 }
 0x443   : > { %v2479_v40 = vsel %vm1413_vm2, %v2471_v53, %v2478_v23  ;;  %v2490_v10 = vrot.slane %v2469_v57, 4 }
 0x444   : > { %v2487_v29 = vperm.slane %v2479_v40, %v6438_v11  ;;  %v2488_v1 = vrot.slane %v2473_v37, 4  ;;  %v2502_v51 = vrot.slane %v2483_v26, 4  ;;  %v2558_v38 = vrot.slane %v2539_v39, 4 }
 0x445   : > { %v2491_v19 = vsel %vm1413_vm2, %v2473_v37, %v2490_v10 }
 0x446   : > { %v5643_v18 = vpop.eup %5642  ;;  %v2514_v41 = vrot.slane %v2487_v29, 4  ;;  %v2489_v5 = vsel %vm1413_vm2, %v2488_v1, %v2469_v57  ;;  %v2499_v46 = vperm.slane %v2491_v19, %v6438_v11 }
 0x447   : > { %v2495_v53 = vperm.slane %v2489_v5, %v6438_v11  ;;  %v2474_v59 = vmul.f32 %v5643_v18, %v7189_v16 }
 0x448   : > { %v5645_v0 = vpop.eup %5644  ;;  %v2512_v52 = vrot.slane %v2499_v46, 4  ;;  %v2515_v32 = vsel %vm1413_vm2, %v2499_v46, %v2514_v41 }
 0x449   : > { %v2500_v44 = vrot.slane %v2495_v53, 4  ;;  %v2503_v62 = vsel %vm1413_vm2, %v2495_v53, %v2502_v51  ;;  %v2523_v58 = vperm.slane %v2515_v32, %v6443_v25  ;;  %v2544_v63 = vrot.slane %v2474_v59, 4 }
 0x44a   : > { %v2511_v15 = vperm.slane %v2503_v62, %v6443_v25  ;;  %v2513_v43 = vsel %vm1413_vm2, %v2512_v52, %v2487_v29  ;;  %v2470_v36 = vmul.f32 %v5645_v0, %v2454_v14 }
 0x44b   : > { %v2501_v16 = vsel %vm1413_vm2, %v2500_v44, %v2483_v26  ;;  %v2519_v56 = vperm.slane %v2513_v43, %v6443_v25  ;;  %v2530_v3 = vrot.slane %v2523_v58, 4 }
 0x44c   : > { %v2507_v20 = vperm.slane %v2501_v16, %v6443_v25  ;;  %v2526_v17 = vrot.slane %v2511_v15, 4  ;;  %v2545_v61 = vsel %vm1413_vm2, %v2544_v63, %v2470_v36  ;;  %v2546_v2 = vrot.slane %v2470_v36, 4 }
 0x44d   : > { %v2551_v42 = vperm.slane %v2545_v61, %v6438_v11  ;;  %v2528_v50 = vrot.slane %v2519_v56, 4  ;;  %v2531_v31 = vsel %vm1413_vm2, 0.0, %v2530_v3  ;;  %v2599_v6 = vsel %vm1413_vm2, %v2530_v3, %v2519_v56 }
 0x44e   : > { %v2547_v24 = vsel %vm1413_vm2, %v2474_v59, %v2546_v2  ;;  %v2524_v33 = vrot.slane %v2507_v20, 4  ;;  %v2527_v47 = vsel %vm1413_vm2, 0.0, %v2526_v17  ;;  %v2588_v21 = vsel %vm1413_vm2, %v2526_v17, %v2507_v20 }
 0x44f   : > { %v2555_v55 = vperm.slane %v2547_v24, %v6438_v11  ;;  %v2556_v28 = vrot.slane %v2551_v42, 4  ;;  %v2559_v27 = vsel %vm1413_vm2, %v2551_v42, %v2558_v38  ;;  %v2529_v13 = vsel %vm1413_vm2, 0.0, %v2528_v50 }
 0x450   : > { %v2567_v45 = vperm.slane %v2559_v27, %v6443_v25  ;;  %v2525_v60 = vsel %vm1413_vm2, 0.0, %v2524_v33  ;;  %v2592_v30 = vperm.slane %v2588_v21, %v6438_v11  ;;  %v2593_v8 = vrot.slane %v2527_v47, 4 }
 0x451   : > { %v2557_v23 = vsel %vm1413_vm2, %v2556_v28, %v2539_v39  ;;  %v2568_v57 = vrot.slane %v2555_v55, 4  ;;  %v2571_v37 = vsel %vm1413_vm2, %v2555_v55, %v2570_v48  ;;  %v2603_v40 = vperm.slane %v2599_v6, %v6438_v11 }
 0x452   : > { %v2563_v26 = vperm.slane %v2557_v23, %v6443_v25  ;;  %v2579_v10 = vperm.slane %v2571_v37, %v6443_v25  ;;  %v2582_v29 = vrot.slane %v2567_v45, 4  ;;  %v2594_v1 = vsel %vm1413_vm2, %v2593_v8, %v2525_v60 }
 0x453   : > { %v2569_v19 = vsel %vm1413_vm2, %v2568_v57, %v2543_v49  ;;  %v2598_v18 = vperm.slane %v2594_v1, %v6438_v11  ;;  %v2604_v41 = vrot.slane %v2531_v31, 4  ;;  %v2612_v5 = vrot.slane %v2592_v30, 4 }
 0x454   : > { %v2583_v46 = vsel %vm1413_vm2, 0.0, %v2582_v29  ;;  %v2586_v39 = vrot.slane %v2579_v10, 4  ;;  %v2575_v51 = vperm.slane %v2569_v19, %v6443_v25  ;;  %v2580_v53 = vrot.slane %v2563_v26, 4 }
 0x455   : > { %v2647_v59 = vrot.slane %v2583_v46, 4  ;;  %v2605_v0 = vsel %vm1413_vm2, %v2604_v41, %v2529_v13  ;;  %v2613_v14 = vsel %vm1413_vm2, %v2598_v18, %v2612_v5  ;;  %v2624_v52 = vrot.slane %v2603_v40, 4 }
 0x456   : > { %v2581_v32 = vsel %vm1413_vm2, 0.0, %v2580_v53  ;;  %v2584_v44 = vrot.slane %v2575_v51, 4  ;;  %v2587_v49 = vsel %vm1413_vm2, 0.0, %v2586_v39  ;;  %v2609_v62 = vperm.slane %v2605_v0, %v6438_v11 }
 0x457   : > { %v2621_v58 = vperm.slane %v2613_v14, %v6443_v25  ;;  %v2642_v63 = vsel %vm1413_vm2, %v2582_v29, %v2563_v26  ;;  %v2648_v48 = vsel %vm1413_vm2, %v2647_v59, %v2581_v32  ;;  %v2653_v15 = vsel %vm1413_vm2, %v2586_v39, %v2575_v51 }
 0x458   : > { %v2585_v43 = vsel %vm1413_vm2, 0.0, %v2584_v44  ;;  %v2625_v36 = vsel %vm1413_vm2, %v2609_v62, %v2624_v52  ;;  %v2646_v38 = vperm.slane %v2642_v63, %v6438_v11  ;;  %v2652_v16 = vperm.slane %v2648_v48, %v6438_v11 }
 0x459   : > { %v2633_v56 = vperm.slane %v2625_v36, %v6443_v25  ;;  %v2640_v3 = vrot.slane %v2621_v58, 4  ;;  %v2657_v20 = vperm.slane %v2653_v15, %v6438_v11  ;;  %v2658_v17 = vrot.slane %v2587_v49, 4 }
 0x45a   : > { %v2666_v61 = vrot.slane %v2646_v38, 4  ;;  %v2610_v2 = vrot.slane %v2598_v18, 4  ;;  %v2622_v42 = vrot.slane %v2609_v62, 4  ;;  %v2664_v50 = vrot.slane %v2652_v16, 4 }
 0x45b   : > { %v2641_v31 = vsel %vm1413_vm2, %v2633_v56, %v2640_v3  ;;  %v2659_v6 = vsel %vm1413_vm2, %v2658_v17, %v2585_v43  ;;  %v2678_v24 = vrot.slane %v2657_v20, 4  ;;  %v2638_v33 = vrot.slane %v2633_v56, 4 }
 0x45c   : > { %v2663_v47 = vperm.slane %v2659_v6, %v6438_v11  ;;  %v2667_v21 = vsel %vm1413_vm2, %v2652_v16, %v2666_v61  ;;  %v2611_v55 = vsel %vm1413_vm2, %v2610_v2, %v2592_v30  ;;  %v2623_v28 = vsel %vm1413_vm2, %v2622_v42, %v2603_v40 }
 0x45d   : > { %v2675_v27 = vperm.slane %v2667_v21, %v6443_v25  ;;  %v2639_v13 = vsel %vm1413_vm2, %v2638_v33, %v2621_v58  ;;  %v2617_v45 = vperm.slane %v2611_v55, %v6443_v25  ;;  %v2629_v60 = vperm.slane %v2623_v28, %v6443_v25  ;;  %v5388_v21 = vld [vmem:[%s6240_s9 + $0x30] sm:$0xff] }
 0x45e   : > { %v2679_v8 = vsel %vm1413_vm2, %v2663_v47, %v2678_v24  ;;  %v2665_v23 = vsel %vm1413_vm2, %v2664_v50, %v2646_v38  ;;  %v2676_v57 = vrot.slane %v2663_v47, 4  ;;  %v3616_v32 = vsub.f32 -inf, %v7252_v54  ;;  %v5389_v50 = vld [vmem:[%s6240_s9 + $0x38] sm:$0xff] }
 0x45f   : > { %v2687_v37 = vperm.slane %v2679_v8, %v6443_v25  ;;  %v2694_v26 = vrot.slane %v2675_v27, 4  ;;  %v2634_v10 = vrot.slane %v2629_v60, 4  ;;  %v2636_v30 = vrot.slane %v2617_v45, 4  ;;  %4139 = vmatpush.bf16.msrb.mxu0 %v5389_v50 }
 0x460   : > { %v2671_v40 = vperm.slane %v2665_v23, %v6443_v25  ;;  %v2677_v29 = vsel %vm1413_vm2, %v2676_v57, %v2657_v20  ;;  %v3612_v44 = vsub.f32 -inf, %v7267_v7  ;;  %v3628_v49 = vmul.f32 1.442695, %v3616_v32 }
 0x461   : > { %v2695_v1 = vsel %vm1413_vm2, %v2687_v37, %v2694_v26  ;;  %v2692_v19 = vrot.slane %v2687_v37, 4  ;;  %v2637_v18 = vsel %vm1413_vm2, %v2629_v60, %v2636_v30  ;;  %v2683_v41 = vperm.slane %v2677_v29, %v6443_v25 }
 0x462   : > { %v5553_v5 = vpack.i.bf16 %v2695_v1, %v2641_v31  ;;  %v2690_v46 = vrot.slane %v2671_v40, 4  ;;  %v7382_v39 = vsel %vm1413_vm2, %v2634_v10, %v2617_v45  ;;  %v3618_v62 = vsub.f32 -inf, %v7254_v34 }
 0x463   : > { %v2693_v51 = vsel %vm1413_vm2, %v2692_v19, %v2675_v27  ;;  %v2688_v53 = vrot.slane %v2683_v41, 4  ;;  %v3620_v58 = vmul.f32 1.442695, %v3612_v44  ;;  %v3617_v63 = vsub.f32 -inf, %v7258_v35  ;;  %4140 = vmatpush.bf16.msrb.mxu0 %v5388_v21  ;;  %v5386_v44 = vld [vmem:[%s6240_s9 + $0x20] sm:$0xff] }
 0x464   : > { %5554 = vrot.lane.b32.xlu1 %v5553_v5, %s5981_s27  ;;  %v5548_v59 = vpack.i.bf16 %v2693_v51, %v2639_v13  ;;  %v2691_v0 = vsel %vm1413_vm2, %v2683_v41, %v2690_v46  ;;  %5646 = vpow2.f32 %v3628_v49  ;;  %v3613_v15 = vsub.f32 -inf, %v7261_v4 }
 0x465   : > { %v5543_v14 = vpack.i.bf16 %v2691_v0, %v2637_v18  ;;  %v7388_v52 = vsel %vm1413_vm2, %v2688_v53, %v2671_v40  ;;  %v3632_v43 = vmul.f32 1.442695, %v3618_v62  ;;  %5648 = vpow2.f32 %v3620_v58 }
 0x466   : > { %5549 = vrot.lane.b32.xlu0 %v5548_v59, %s5980_s8  ;;  %v3614_v36 = vsub.f32 -inf, %v7270_v22  ;;  %v3630_v38 = vmul.f32 1.442695, %v3617_v63  ;;  %v3619_v16 = vsub.f32 -inf, %v7263_v9  ;;  %v3622_v56 = vmul.f32 1.442695, %v3613_v15 }
 0x467   : > { %5544 = vrot.lane.b32.xlu2 %v5543_v14, %s5979_s10  ;;  %5650 = vpow2.f32 %v3632_v43  ;;  %v3615_v4 = vsub.f32 -inf, %v7277_v12  ;;  %v5387_v59 = vld [vmem:[%s6240_s9 + $0x28] sm:$0xff] }
 0x468   : > { %v3624_v7 = vmul.f32 1.442695, %v3614_v36  ;;  %5652 = vpow2.f32 %v3630_v38  ;;  %v3634_v35 = vmul.f32 1.442695, %v3619_v16  ;;  %4141 = vmatpush.bf16.msrb.mxu0 %v5387_v59 }
 0x469   : > { %5654 = vpow2.f32 %v3622_v56  ;;  %v3626_v6 = vmul.f32 1.442695, %v3615_v4 }
 0x46a   : > { %v5647_v34 = vpop.eup %5646  ;;  %5656 = vpow2.f32 %v3624_v7 }
 0x46b   : > { %v5649_v3 = vpop.eup %5648  ;;  %v3664_v22 = vmul.f32 0.0, %v5647_v34  ;;  %5658 = vpow2.f32 %v3634_v35 }
 0x46c   : > { %v3660_v61 = vmul.f32 0.0, %v5649_v3  ;;  %4142 = vmatpush.bf16.msrb.mxu0 %v5386_v44  ;;  %v5385_v3 = vld [vmem:[%s6240_s9 + $0x18] sm:$0xff] }
 0x46d   : > { %v5651_v2 = vpop.eup %5650 }
 0x46e   : > { %v5653_v31 = vpop.eup %5652  ;;  %v3666_v47 = vmul.f32 0.0, %v5651_v2 }
 0x46f   : > { %v5655_v33 = vpop.eup %5654  ;;  %v3665_v28 = vmul.f32 0.0, %v5653_v31 }
 0x470   : > { %v5657_v55 = vpop.eup %5656  ;;  %v3661_v13 = vmul.f32 0.0, %v5655_v33  ;;  %4143 = vmatpush.bf16.msrb.mxu0 %v5385_v3 }
 0x471   : > { %v5659_v12 = vpop.eup %5658  ;;  %v3662_v8 = vmul.f32 0.0, %v5657_v55  ;;  %v5384_v55 = vld [vmem:[%s6240_s9 + $0x10] sm:$0xff] }
 0x472   : > { %v3667_v26 = vmul.f32 0.0, %v5659_v12 }
 0x474   : > { %4144 = vmatpush.bf16.msrb.mxu0 %v5384_v55 }
 0x49d   : > { %v3685_v54 = vpop.xlane.xlu1 %3684 }
 0x49e   : > { %v3697_v60 = vadd.f32 %v3685_v54, %v3665_v28 }
 0x49f   : > { %v3673_v48 = vpop.xlane.xlu0 %3672 }
 0x4a0   : > { %v3693_v23 = vadd.f32 %v3673_v48, %v3661_v13 }
 0x4a5   : > { %v3670_v17 = vpop.xlane.xlu2 %3669  ;;  %v3688_v24 = vpop.xlane.xlu1 %3687 }
 0x4a6   : > { %v3692_v42 = vadd.f32 %v3670_v17, %v3660_v61  ;;  %v3698_v27 = vadd.f32 %v3688_v24, %v3666_v47 }
 0x4a7   : > { %v3682_v20 = vpop.xlane.xlu0 %3681 }
 0x4a8   : > { %v3696_v9 = vadd.f32 %v3682_v20, %v3664_v22 }
 0x4aa   : > { %5660 = vrcp.f32 %v3696_v9 }
 0x4ab   : > { %5662 = vrcp.f32 %v3692_v42 }
 0x4ac   : > { %5664 = vpow2.f32 %v3626_v6 }
 0x4ad   : > { %v3691_v57 = vpop.xlane.xlu2 %3690  ;;  %5666 = vrcp.f32 %v3698_v27  ;;  %v3679_v14 = vpop.xlane.xlu1 %3678 }
 0x4ae   : > { %5668 = vrcp.f32 %v3697_v60  ;;  %v3699_v18 = vadd.f32 %v3691_v57, %v3667_v26 }
 0x4af   : > { %v3676_v45 = vpop.xlane.xlu0 %3675  ;;  %5670 = vrcp.f32 %v3693_v23 }
 0x4b0   : > { %v3694_v10 = vadd.f32 %v3676_v45, %v3662_v8  ;;  %v5661_v29 = vpop.eup %5660 }
 0x4b1   : > { %v5663_v19 = vpop.eup %5662 }
 0x4b2   : > { %v3781_v37 = vpop.f32.mrf.mxu2  ;;  %v5665_v46 = vpop.eup %5664  ;;  %5672 = vrcp.f32 %v3694_v10 }
 0x4b3   : > { %v3816_v30 = vadd.f32 %v3781_v37, %v3664_v22  ;;  %v5667_v49 = vpop.eup %5666  ;;  %v3663_v62 = vmul.f32 0.0, %v5665_v46  ;;  %5674 = vrcp.f32 %v3699_v18 }
 0x4b4   : > { %v3729_v40 = vpop.f32.mrf.mxu0  ;;  %v5669_v43 = vpop.eup %5668 }
 0x4b5   : > { %v3812_v1 = vadd.f32 %v3729_v40, %v3660_v61  ;;  %v3832_v41 = vmul.f32 %v5661_v29, %v3816_v30  ;;  %v3695_v36 = vadd.f32 %v3679_v14, %v3663_v62  ;;  %v5671_v56 = vpop.eup %5670 }
 0x4b6   : > { %v3807_v5 = vpop.f32.mrf.mxu3 }
 0x4b7   : > { %v3828_v51 = vmul.f32 %v5663_v19, %v3812_v1  ;;  %v3818_v53 = vadd.f32 %v3807_v5, %v3666_v47  ;;  %v3836_v0 = vrot.slane %v3832_v41, 4  ;;  %5676 = vrcp.f32 %v3695_v36  ;;  %v5383_v1 = vld [vmem:[%s6240_s9 + $0x8] sm:$0xff] }
 0x4b8   : > { %v5673_v35 = vpop.eup %5672  ;;  %4145 = vmatpush.bf16.msrb.mxu0 %v5383_v1 }
 0x4b9   : > { %v3838_v32 = vrot.slane %v3828_v51, 4  ;;  %v3837_v58 = vsel %vm1413_vm2, %v3836_v0, %v3828_v51  ;;  %v3834_v48 = vmul.f32 %v5667_v49, %v3818_v53  ;;  %v5675_v50 = vpop.eup %5674 }
 0x4ba   : > { %v3783_v15 = vpop.f32.mrf.mxu2  ;;  %v3843_v20 = vperm.slane %v3837_v58, %v6438_v11 }
 0x4bb   : > { %v3839_v63 = vsel %vm1413_vm2, %v3832_v41, %v3838_v32  ;;  %v3817_v38 = vadd.f32 %v3783_v15, %v3665_v28  ;;  %v3848_v61 = vrot.slane %v3834_v48, 4 }
 0x4bc   : > { %v3731_v16 = vpop.f32.mrf.mxu0  ;;  %v3755_v54 = vpop.f32.mrf.mxu1  ;;  %v3847_v4 = vperm.slane %v3839_v63, %v6438_v11  ;;  %v3862_v28 = vrot.slane %v3843_v20, 4 }
 0x4bd   : > { %v3813_v7 = vadd.f32 %v3731_v16, %v3661_v13  ;;  %v3814_v34 = vadd.f32 %v3755_v54, %v3662_v8  ;;  %v3833_v17 = vmul.f32 %v5669_v43, %v3817_v38  ;;  %v5677_v19 = vpop.eup %5676  ;;  %v5382_v43 = vld [vmem:[%s6240_s9] sm:$0xff] }
 0x4be   : > { %v3809_v22 = vpop.f32.mrf.mxu3  ;;  %v3874_v27 = vrot.slane %v3847_v4, 4  ;;  %4146 = vmatpush.bf16.msrb.mxu0 %v5382_v43 }
 0x4bf   : > { %v3829_v2 = vmul.f32 %v5671_v56, %v3813_v7  ;;  %v3830_v9 = vmul.f32 %v5673_v35, %v3814_v34  ;;  %v3819_v42 = vadd.f32 %v3809_v22, %v3667_v26  ;;  %v3892_v31 = vrot.slane %v3833_v17, 4 }
 0x4c1   : > { %v5545_v6 = vpop.permute.xlu2 %5544  ;;  %v3894_v24 = vrot.slane %v3829_v2, 4  ;;  %v3849_v33 = vsel %vm1413_vm2, %v3848_v61, %v3830_v9  ;;  %v3850_v47 = vrot.slane %v3830_v9, 4  ;;  %v3835_v21 = vmul.f32 %v5675_v50, %v3819_v42 }
 0x4c2   : > { %v3893_v12 = vsel %vm1413_vm2, %v3892_v31, %v3829_v2  ;;  %v3855_v13 = vperm.slane %v3849_v33, %v6438_v11  ;;  %v5547_v8 = vunpack.i.h.bf16 %v5545_v6  ;;  %v5546_v23 = vunpack.i.l.bf16 %v5545_v6 }
 0x4c3   : > { %v3895_v45 = vsel %vm1413_vm2, %v3833_v17, %v3894_v24  ;;  %v3851_v60 = vsel %vm1413_vm2, %v3834_v48, %v3850_v47  ;;  %v3899_v57 = vperm.slane %v3893_v12, %v6438_v11  ;;  %v3904_v29 = vrot.slane %v3835_v21, 4 }
 0x4c4   : > { %v3859_v37 = vperm.slane %v3851_v60, %v6438_v11  ;;  %v3860_v26 = vrot.slane %v3855_v13, 4  ;;  %v3863_v10 = vsel %vm1413_vm2, %v3855_v13, %v3862_v28  ;;  %v3757_v30 = vpop.f32.mrf.mxu1  ;;  %v3903_v18 = vperm.slane %v3895_v45, %v6438_v11 }
 0x4c5   : > { %v3871_v40 = vperm.slane %v3863_v10, %v6443_v25  ;;  %v3815_v0 = vadd.f32 %v3757_v30, %v3663_v62  ;;  %v3918_v14 = vrot.slane %v3899_v57, 4  ;;  %v7428_v44 = vsel %vm2115_vm3, %v7388_v52, %v5547_v8 }
 0x4c6   : > { %v3861_v41 = vsel %vm1413_vm2, %v3860_v26, %v3843_v20  ;;  %v3872_v5 = vrot.slane %v3859_v37, 4  ;;  %v3875_v46 = vsel %vm1413_vm2, %v3859_v37, %v3874_v27  ;;  %v7432_v49 = vsel %vm2115_vm3, %v7382_v39, %v5546_v23 }
 0x4c7   : > { %v3867_v51 = vperm.slane %v3861_v41, %v6443_v25  ;;  %v3883_v53 = vperm.slane %v3875_v46, %v6443_v25  ;;  %v3886_v59 = vrot.slane %v3871_v40, 4  ;;  %v3930_v62 = vrot.slane %v3903_v18, 4 }
 0x4c8   : > { %v3873_v32 = vsel %vm1413_vm2, %v3872_v5, %v3847_v4  ;;  %v3831_v16 = vmul.f32 %v5677_v19, %v3815_v0 }
 0x4c9   : > { %v3879_v58 = vperm.slane %v3873_v32, %v6443_v25  ;;  %v3884_v63 = vrot.slane %v3867_v51, 4  ;;  %v3887_v48 = vsel %vm1413_vm2, 0.0, %v3886_v59  ;;  %v3890_v15 = vrot.slane %v3883_v53, 4 }
 0x4ca   : > { %v3948_v36 = vsel %vm1413_vm2, %v3886_v59, %v3867_v51  ;;  %v3953_v38 = vrot.slane %v3887_v48, 4  ;;  %v3905_v34 = vsel %vm1413_vm2, %v3904_v29, %v3831_v16  ;;  %v3906_v3 = vrot.slane %v3831_v16, 4 }
 0x4cb   : > { %v3885_v52 = vsel %vm1413_vm2, 0.0, %v3884_v63  ;;  %v3888_v54 = vrot.slane %v3879_v58, 4  ;;  %v3891_v56 = vsel %vm1413_vm2, 0.0, %v3890_v15  ;;  %v3952_v39 = vperm.slane %v3948_v36, %v6438_v11 }
 0x4cc   : > { %v3964_v7 = vrot.slane %v3891_v56, 4  ;;  %v3954_v35 = vsel %vm1413_vm2, %v3953_v38, %v3885_v52  ;;  %v3911_v20 = vperm.slane %v3905_v34, %v6438_v11  ;;  %v3959_v22 = vsel %vm1413_vm2, %v3890_v15, %v3879_v58 }
 0x4cd   : > { %v3889_v4 = vsel %vm1413_vm2, 0.0, %v3888_v54  ;;  %v3958_v17 = vperm.slane %v3954_v35, %v6438_v11  ;;  %v3907_v61 = vsel %vm1413_vm2, %v3835_v21, %v3906_v3  ;;  %v7449_v2 = vperm.slane %v3959_v22, %v6438_v11 }
 0x4ce   : > { %v3965_v9 = vsel %vm1413_vm2, %v3964_v7, %v3889_v4  ;;  %v3972_v42 = vrot.slane %v3952_v39, 4  ;;  %v3915_v50 = vperm.slane %v3907_v61, %v6438_v11  ;;  %v3916_v31 = vrot.slane %v3911_v20, 4 }
 0x4cf   : > { %v3919_v6 = vsel %vm1413_vm2, %v3911_v20, %v3918_v14  ;;  %v7455_v24 = vperm.slane %v3965_v9, %v6438_v11  ;;  %v3984_v21 = vrot.slane %v7449_v2, 4  ;;  %v3970_v55 = vrot.slane %v3958_v17, 4 }
 0x4d0   : > { %v3927_v33 = vperm.slane %v3919_v6, %v6443_v25  ;;  %v3973_v47 = vsel %vm1413_vm2, %v3958_v17, %v3972_v42  ;;  %v3917_v28 = vsel %vm1413_vm2, %v3916_v31, %v3899_v57  ;;  %v3928_v27 = vrot.slane %v3915_v50, 4 }
 0x4d1   : > { %v3931_v12 = vsel %vm1413_vm2, %v3915_v50, %v3930_v62  ;;  %v3981_v13 = vperm.slane %v3973_v47, %v6443_v25  ;;  %v3923_v45 = vperm.slane %v3917_v28, %v6443_v25  ;;  %v3985_v23 = vsel %vm1413_vm2, %v7455_v24, %v3984_v21 }
 0x4d2   : > { %v3939_v60 = vperm.slane %v3931_v12, %v6443_v25  ;;  %v3942_v8 = vrot.slane %v3927_v33, 4  ;;  %v3929_v37 = vsel %vm1413_vm2, %v3928_v27, %v3903_v18  ;;  %v3993_v26 = vperm.slane %v3985_v23, %v6443_v25 }
 0x4d3   : > { %v4000_v10 = vrot.slane %v3981_v13, 4  ;;  %v3971_v57 = vsel %vm1413_vm2, %v3970_v55, %v3952_v39  ;;  %v3935_v30 = vperm.slane %v3929_v37, %v6443_v25  ;;  %v3940_v40 = vrot.slane %v3923_v45, 4 }
 0x4d4   : > { %v3943_v29 = vsel %vm1413_vm2, 0.0, %v3942_v8  ;;  %v3946_v1 = vrot.slane %v3939_v60, 4  ;;  %v4002_v19 = vsel %vm1413_vm2, %v3942_v8, %v3923_v45  ;;  %v3998_v51 = vrot.slane %v3993_v26, 4 }
 0x4d5   : > { %v4007_v41 = vrot.slane %v3943_v29, 4  ;;  %v4001_v46 = vsel %vm1413_vm2, %v3993_v26, %v4000_v10  ;;  %v3941_v18 = vsel %vm1413_vm2, 0.0, %v3940_v40  ;;  %v3944_v53 = vrot.slane %v3935_v30, 4  ;;  %v7518_v40 = vld [vmem:[%s7832_s24] ss:$0 sm:$0xff] }
 0x4d6   : > { %v5555_v5 = vpop.permute.xlu1 %5554  ;;  %v3947_v59 = vsel %vm1413_vm2, 0.0, %v3946_v1  ;;  %v4006_v63 = vperm.slane %v4002_v19, %v6438_v11  ;;  %v4013_v38 = vsel %vm1413_vm2, %v3946_v1, %v3935_v30  ;;  %v3999_v54 = vsel %vm1413_vm2, %v3998_v51, %v3981_v13 }
 0x4d7   : > { %v5557_v0 = vunpack.i.h.bf16 %v5555_v5  ;;  %v4018_v14 = vrot.slane %v3947_v59, 4  ;;  %v5556_v32 = vunpack.i.l.bf16 %v5555_v5  ;;  %v4008_v48 = vsel %vm1413_vm2, %v4007_v41, %v3941_v18 }
 0x4d8   : > { %v5550_v58 = vpop.permute.xlu0 %5549  ;;  %v3945_v62 = vsel %vm1413_vm2, 0.0, %v3944_v53  ;;  %v4012_v36 = vperm.slane %v4008_v48, %v6438_v11  ;;  %v4026_v52 = vrot.slane %v4006_v63, 4  ;;  %v4017_v7 = vperm.slane %v4013_v38, %v6438_v11 }
 0x4d9   : > { %v5552_v15 = vunpack.i.h.bf16 %v5550_v58  ;;  %v5551_v43 = vunpack.i.l.bf16 %v5550_v58  ;;  %v4019_v16 = vsel %vm1413_vm2, %v4018_v14, %v3945_v62  ;;  %v3977_v4 = vperm.slane %v3971_v57, %v6443_v25  ;;  %v5695_v58 = vld [vmem:[#allocation2 + $0x10] sm:$0xff] }
 0x4da   : > { %v4023_v34 = vperm.slane %v4019_v16, %v6438_v11  ;;  %v4027_v20 = vsel %vm1413_vm2, %v4012_v36, %v4026_v52  ;;  %v4038_v61 = vrot.slane %v4017_v7, 4  ;;  %v5696_v16 = vld [vmem:[#allocation2] sm:$0xff] }
 0x4db   : > { %v2723_v56 = vsel %vm2722_vm5, %v7432_v49, %v5551_v43  ;;  %v2724_v39 = vsel %vm2722_vm5, %v7428_v44, %v5552_v15  ;;  %v4035_v22 = vperm.slane %v4027_v20, %v6443_v25  ;;  %v3982_v49 = vrot.slane %v7455_v24, 4  ;;  %v5277_v20 = vld [vmem:[%s6246_s12 + $0x70] sm:$0xf] }
 0x4dc   : > { %v2726_v3 = vsel %vm2725_vm6, %v2723_v56, %v5556_v32  ;;  %v2727_v35 = vsel %vm2725_vm6, %v2724_v39, %v5557_v0  ;;  %v3996_v9 = vrot.slane %v3977_v4, 4  ;;  %v4024_v44 = vrot.slane %v4012_v36, 4 }
 0x4dd   : > { %v4086_v17 = vpack.c.bf16 %v2727_v35, %v2726_v3  ;;  %v4036_v42 = vrot.slane %v4023_v34, 4  ;;  %v4039_v11 = vsel %vm1413_vm2, %v4023_v34, %v4038_v61  ;;  %v4054_v50 = vrot.slane %v4035_v22, 4  ;;  %v5279_v61 = vld [vmem:[%s6246_s12 + $0x78] sm:$0xf0] }
 0x4de   : > { %v3983_v31 = vsel %vm1413_vm2, %v3982_v49, %v7449_v2  ;;  %v4047_v6 = vperm.slane %v4039_v11, %v6443_v25  ;;  %v4025_v47 = vsel %vm1413_vm2, %v4024_v44, %v4006_v63  ;;  %v5269_v11 = vld [vmem:[%s6246_s12 + $0x60] sm:$0xf] }
 0x4df   : > { %4147 = vmatmul.bf16.vlgmr.msrb.gmra.mxu0 %v4086_v17  ;;  %v3989_v33 = vperm.slane %v3983_v31, %v6443_v25  ;;  %v4037_v21 = vsel %vm1413_vm2, %v4036_v42, %v4017_v7  ;;  %v4031_v24 = vperm.slane %v4025_v47, %v6443_v25  ;;  %v5404_v17 = vld [vmem:[%s6246_s12 + $0x74] sm:$0xf]  ;;  %v5402_v31 = vld [vmem:[%s6246_s12 + $0x64] sm:$0xf]  ;;  %v5261_v47 = vld [vmem:[%s6246_s12 + $0x50] sm:$0xf] }
 0x4e0   : > { %v4043_v55 = vperm.slane %v4037_v21, %v6443_v25  ;;  %v4055_v28 = vsel %vm1413_vm2, %v4047_v6, %v4054_v50  ;;  %v4052_v27 = vrot.slane %v4047_v6, 4  ;;  %v5403_v50 = vld [vmem:[%s6246_s12 + $0x64] sm:$0xf0]  ;;  %v5271_v6 = vld [vmem:[%s6246_s12 + $0x68] sm:$0xf0] }
 0x4e1   : > { %v3994_v12 = vrot.slane %v3989_v33, 4  ;;  %v3997_v13 = vsel %vm1413_vm2, %v3989_v33, %v3996_v9  ;;  %v5568_v2 = vpack.i.bf16 %v4055_v28, %v4001_v46  ;;  %v4050_v60 = vrot.slane %v4031_v24, 4  ;;  %v5401_v21 = vld [vmem:[%s6246_s12 + $0x54] sm:$0xf0] }
 0x4e2   : > { %v4048_v45 = vrot.slane %v4043_v55, 4  ;;  %v4053_v8 = vsel %vm1413_vm2, %v4052_v27, %v4035_v22  ;;  %v5282_v9 = vor.u32 %v5404_v17, %v5279_v61  ;;  %v5274_v28 = vor.u32 %v5402_v31, %v5271_v6  ;;  %v5400_v27 = vld [vmem:[%s6246_s12 + $0x54] sm:$0xf]  ;;  %v5390_v6 = vld [vmem:[%s6246_s12 + $0x4] sm:$0xf] }
 0x4e3   : > { %v3995_v23 = vsel %vm1413_vm2, %v3994_v12, %v3977_v4  ;;  %5569 = vrot.lane.b32.xlu1 %v5568_v2, %s5981_s27  ;;  %v5563_v37 = vpack.i.bf16 %v4053_v8, %v3999_v54  ;;  %v4051_v26 = vsel %vm1413_vm2, %v4043_v55, %v4050_v60  ;;  %v5405_v4 = vld [vmem:[%s6246_s12 + $0x74] sm:$0xf0]  ;;  %v5270_v55 = vor.u32 %v5403_v50, %v5269_v11  ;;  %v5263_v12 = vld [vmem:[%s6246_s12 + $0x58] sm:$0xf0]  ;;  %v5392_v17 = vld [vmem:[%s6246_s12 + $0x14] sm:$0xf] }
 0x4e4   : > { %v4049_v25 = vsel %vm1413_vm2, %v4048_v45, %v4031_v24  ;;  %v5558_v10 = vpack.i.bf16 %v4051_v26, %v3997_v13  ;;  %v5278_v22 = vor.u32 %v5405_v4, %v5277_v20  ;;  %4426 = vmatpush.bf16.msra.mxu2 %v5282_v9  ;;  %v5697_v2 = vld [vmem:[#allocation2 + $0x18] sm:$0xff]  ;;  %v5262_v60 = vor.u32 %v5401_v21, %v5261_v47  ;;  %v5391_v11 = vld [vmem:[%s6246_s12 + $0x4] sm:$0xf0]  ;;  %s7833_s27 = sld [smem:[#allocation37_spill]] }
 0x4e5   : > { %5564 = vrot.lane.b32.xlu2 %v5563_v37, %s5980_s8  ;;  %v5266_v8 = vor.u32 %v5400_v27, %v5263_v12  ;;  %v5399_v37 = vld [vmem:[%s6246_s12 + $0x44] sm:$0xf0]  ;;  %v5393_v20 = vld [vmem:[%s6246_s12 + $0x14] sm:$0xf0] }
 0x4e6   : > { %5559 = vrot.lane.b32.xlu0 %v5558_v10, %s5979_s10  ;;  %4407 = vmatpush.bf16.msrb.mxu1 %v5278_v22  ;;  %v5398_v10 = vld [vmem:[%s6246_s12 + $0x44] sm:$0xf]  ;;  %v5231_v22 = vld [vmem:[%s6246_s12 + $0x18] sm:$0xf0] }
 0x4e7   : > { %v5234_v9 = vor.u32 %v5392_v17, %v5231_v22  ;;  %v5407_v22 = vld [vmem:[%s7835_s17 + $0x8] sm:$0xff] }
 0x4e8   : > { %4427 = vmatpush.bf16.msra.mxu2 %v5274_v28 }
 0x4ea   : > { %4408 = vmatpush.bf16.msrb.mxu1 %v5270_v55  ;;  %s7834_s18 = scalar_lea.vmem %s7833_s27, %s6256_s5 }
 0x4ec   : > { %4428 = vmatpush.bf16.msra.mxu2 %v5266_v8 }
 0x4ee   : > { %4409 = vmatpush.bf16.msrb.mxu1 %v5262_v60 }
 0x53f   : > { %v5565_v57 = vpop.permute.xlu2 %5564 }
 0x540   : > { %v5567_v41 = vunpack.i.h.bf16 %v5565_v57  ;;  %v5566_v5 = vunpack.i.l.bf16 %v5565_v57  ;;  %v5255_v57 = vld [vmem:[%s6246_s12 + $0x48] sm:$0xf0] }
 0x555   : > { %v5570_v30 = vpop.permute.xlu1 %5569 }
 0x556   : > { %v5572_v46 = vunpack.i.h.bf16 %v5570_v30  ;;  %v5571_v18 = vunpack.i.l.bf16 %v5570_v30 }
 0x558   : > { %v5560_v29 = vpop.permute.xlu0 %5559 }
 0x559   : > { %v5562_v1 = vunpack.i.h.bf16 %v5560_v29  ;;  %v5561_v19 = vunpack.i.l.bf16 %v5560_v29 }
 0x55b   : > { %v4080_v53 = vsel %vm2115_vm3, %v3995_v23, %v5561_v19  ;;  %v4081_v59 = vsel %vm2115_vm3, %v4049_v25, %v5562_v1  ;;  %v5253_v23 = vld [vmem:[%s6246_s12 + $0x40] sm:$0xf] }
 0x55c   : > { %v4148_v51 = vpop.f32.mrf.mxu0  ;;  %v4082_v14 = vsel %vm2722_vm5, %v4080_v53, %v5566_v5  ;;  %v4083_v32 = vsel %vm2722_vm5, %v4081_v59, %v5567_v41  ;;  %v5254_v41 = vor.u32 %v5399_v37, %v5253_v23  ;;  %v5397_v53 = vld [vmem:[%s6246_s12 + $0x34] sm:$0xf0]  ;;  %v7619_v37 = vld [vmem:[%s1030_s1] ss:$0 sm:$0xff] }
 0x55d   : > { %v4149_v0 = vadd.f32 %v7518_v40, %v4148_v51  ;;  %v4084_v48 = vsel %vm2725_vm6, %v4082_v14, %v5571_v18  ;;  %v4085_v15 = vsel %vm2725_vm6, %v4083_v32, %v5572_v46  ;;  %v5258_v51 = vor.u32 %v5398_v10, %v5255_v57  ;;  %v5245_v18 = vld [vmem:[%s6246_s12 + $0x30] sm:$0xf]  ;;  %v5396_v14 = vld [vmem:[%s6246_s12 + $0x34] sm:$0xf]  ;;  %v5247_v32 = vld [vmem:[%s6246_s12 + $0x38] sm:$0xf0] }
 0x55e   : > { %v4087_v43 = vpack.c.bf16 %v4085_v15, %v4084_v48  ;;  %v5698_v48 = vld [vmem:[#allocation2 + $0x8] sm:$0xff]  ;;  %4410 = vmatpush.bf16.msrb.mxu1 %v5254_v41 }
 0x55f   : > { %v7525_v63 = vadd.f32 %v5695_v58, %v4149_v0  ;;  %4429 = vmatpush.bf16.msra.mxu2 %v5258_v51 }
 0x560   : > { %4152 = vmatmul.bf16.gmra.mxu0 %v4087_v43  ;;  %v5246_v43 = vor.u32 %v5397_v53, %v5245_v18  ;;  %v5411_v53 = vld [vmem:[%s7835_s17 + $0x28] sm:$0xff] }
 0x561   : > { %4164 = vadd.xlane.f32.xlu0 %v7525_v63  ;;  %v4176_v62 = vmul.f32 %v7525_v63, %v7525_v63 }
 0x562   : > { %4411 = vmatpush.bf16.msrb.mxu1 %v5246_v43 }
 0x563   : > { %4180 = vadd.xlane.f32.xlu1 %v4176_v62 }
 0x564   : > { %v4150_v36 = vpop.f32.mrf.mxu0 }
 0x565   : > { %v4151_v38 = vadd.f32 %v7518_v40, %v4150_v36  ;;  %v5250_v36 = vor.u32 %v5396_v14, %v5247_v32 }
 0x567   : > { %v7533_v52 = vadd.f32 %v5696_v16, %v4151_v38  ;;  %v5237_v38 = vld [vmem:[%s6246_s12 + $0x20] sm:$0xf]  ;;  %v5395_v16 = vld [vmem:[%s6246_s12 + $0x24] sm:$0xf0]  ;;  %4430 = vmatpush.bf16.msra.mxu2 %v5250_v36 }
 0x568   : > { %v5419_v36 = vld [vmem:[%s7835_s17 + $0x68] sm:$0xff] }
 0x569   : > { %4166 = vadd.xlane.f32.xlu2 %v7533_v52  ;;  %v4177_v54 = vmul.f32 %v7533_v52, %v7533_v52 }
 0x571   : > { %4182 = vadd.xlane.f32.xlu2 %v4177_v54 }
 0x5d4   : > { %v4165_v56 = vpop.xlane.xlu0 %4164 }
 0x5d5   : > { %v7538_v39 = vmul.f32 0.0078125, %v4165_v56  ;;  %v5394_v56 = vld [vmem:[%s6246_s12 + $0x24] sm:$0xf] }
 0x5d6   : > { %v4181_v7 = vpop.xlane.xlu1 %4180 }
 0x5d7   : > { %v4192_v34 = vmul.f32 %v7538_v39, %v7538_v39  ;;  %v4188_v3 = vmul.f32 0.0078125, %v4181_v7  ;;  %v5239_v7 = vld [vmem:[%s6246_s12 + $0x28] sm:$0xf0]  ;;  %v4204_v27 = vsub.f32 %v7525_v63, %v7538_v39 }
 0x5d9   : > { %v4196_v35 = vsub.f32 %v4188_v3, %v4192_v34  ;;  %v5238_v34 = vor.u32 %v5395_v16, %v5237_v38  ;;  %v5242_v3 = vor.u32 %v5394_v56, %v5239_v7  ;;  %v5409_v16 = vld [vmem:[%s7835_s17 + $0x18] sm:$0xff] }
 0x5db   : > { %v4200_v49 = vmax.f32 %v4196_v35, 0.0  ;;  %v5229_v35 = vld [vmem:[%s6246_s12 + $0x10] sm:$0xf]  ;;  %4412 = vmatpush.bf16.msrb.mxu1 %v5238_v34  ;;  %4431 = vmatpush.bf16.msra.mxu2 %v5242_v3 }
 0x5dc   : > { %v4167_v44 = vpop.xlane.xlu2 %4166  ;;  %v5230_v61 = vor.u32 %v5393_v20, %v5229_v35  ;;  %v5408_v3 = vld [vmem:[%s7835_s17 + $0x10] sm:$0xff]  ;;  %v5417_v20 = vld [vmem:[%s7835_s17 + $0x58] sm:$0xff] }
 0x5dd   : > { %v7546_v42 = vadd.f32 1e-12, %v4200_v49  ;;  %v4153_v33 = vpop.f32.mrf.mxu0  ;;  %v7558_v13 = vmul.f32 0.0078125, %v4167_v44  ;;  %v5221_v44 = vld [vmem:[%s6246_s12] sm:$0xf] }
 0x5de   : > { %v4154_v24 = vadd.f32 %v7518_v40, %v4153_v33  ;;  %v5223_v33 = vld [vmem:[%s6246_s12 + $0x8] sm:$0xf0]  ;;  %v5222_v21 = vor.u32 %v5391_v11, %v5221_v44  ;;  %v5406_v44 = vld [vmem:[%s7835_s17] sm:$0xff] }
 0x5df   : > { %5678 = vrsqrt.f32 %v7546_v42  ;;  %v4193_v29 = vmul.f32 %v7558_v13, %v7558_v13  ;;  %vm4218_vm3 = vweird.f32 %v7546_v42  ;;  %4413 = vmatpush.bf16.msrb.mxu1 %v5230_v61  ;;  %4432 = vmatpush.bf16.msra.mxu2 %v5234_v9  ;;  %v4205_v8 = vsub.f32 %v7533_v52, %v7558_v13  ;;  %v5416_v61 = vld [vmem:[%s7835_s17 + $0x50] sm:$0xff] }
 0x5e0   : > { %v7560_v45 = vadd.f32 %v5697_v2, %v4154_v24  ;;  %v5226_v24 = vor.u32 %v5390_v6, %v5223_v33  ;;  %v5415_v33 = vld [vmem:[%s7835_s17 + $0x48] sm:$0xff] }
 0x5e2   : > { %4168 = vadd.xlane.f32.xlu0 %v7560_v45  ;;  %v4178_v26 = vmul.f32 %v7560_v45, %v7560_v45 }
 0x5e3   : > { %4414 = vmatpush.bf16.msrb.mxu1 %v5222_v21  ;;  %4433 = vmatpush.bf16.msra.mxu2 %v5226_v24  ;;  %v5414_v24 = vld [vmem:[%s7835_s17 + $0x40] sm:$0xff] }
 0x5e4   : > { %v4183_v25 = vpop.xlane.xlu2 %4182  ;;  %4184 = vadd.xlane.f32.xlu2 %v4178_v26 }
 0x5e5   : > { %v7569_v30 = vpop.eup %5678  ;;  %v4189_v1 = vmul.f32 0.0078125, %v4183_v25  ;;  %v4155_v5 = vpop.f32.mrf.mxu0 }
 0x5e6   : > { %v4213_v19 = vmul.f32 %v7569_v30, %v7546_v42  ;;  %v4156_v0 = vadd.f32 %v7518_v40, %v4155_v5  ;;  %vm4219_vm2 = vweird.f32 %v7569_v30  ;;  %v7609_v42 = vld [vmem:[%s7834_s18] ss:$0 sm:$0xff]  ;;  %v5412_v5 = vld [vmem:[%s7835_s17 + $0x30] sm:$0xff] }
 0x5e7   : > { %v4197_v46 = vsub.f32 %v4189_v1, %v4193_v29  ;;  %vm4220_vm7 = vmor %vm4218_vm3, %vm4219_vm2  ;;  %v5421_v29 = vld [vmem:[%s7835_s17 + $0x78] sm:$0xff] }
 0x5e8   : > { %v4214_v59 = vmul.f32 %v7569_v30, %v4213_v19  ;;  %v7581_v15 = vadd.f32 %v5698_v48, %v4156_v0  ;;  %4575 = vmatpush.bf16.msra.mxu0 %v5421_v29 }
 0x5e9   : > { %v4201_v58 = vmax.f32 %v4197_v46, 0.0  ;;  %v5420_v46 = vld [vmem:[%s7835_s17 + $0x70] sm:$0xff] }
 0x5ea   : > { %v4215_v40 = vmul.f32 0.5, %v4214_v59  ;;  %4170 = vadd.xlane.f32.xlu1 %v7581_v15  ;;  %v4179_v54 = vmul.f32 %v7581_v15, %v7581_v15 }
 0x5eb   : > { %v4209_v62 = vadd.f32 1e-12, %v4201_v58 }
 0x5ec   : > { %4186 = vadd.xlane.f32.xlu0 %v4179_v54  ;;  %v4216_v4 = vsub.f32 1.5, %v4215_v40  ;;  %4576 = vmatpush.bf16.msra.mxu0 %v5420_v46  ;;  %v5418_v40 = vld [vmem:[%s7835_s17 + $0x60] sm:$0xff] }
 0x5ed   : > { %5680 = vrsqrt.f32 %v4209_v62  ;;  %vm4228_vm9 = vweird.f32 %v4209_v62 }
 0x5ee   : > { %v4217_v50 = vmul.f32 %v7569_v30, %v4216_v4 }
 0x5f0   : > { %v4221_v55 = vsel %vm4220_vm7, %v7569_v30, %v4217_v50  ;;  %v5413_v30 = vld [vmem:[%s7835_s17 + $0x38] sm:$0xff]  ;;  %4577 = vmatpush.bf16.msra.mxu0 %v5419_v36 }
 0x5f1   : > { %v4252_v2 = vmul.f32 %v4221_v55, %v4204_v27  ;;  %4556 = vmatpush.bf16.msrb.mxu3 %v5413_v30 }
 0x5f3   : > { %v5681_v49 = vpop.eup %5680  ;;  %v4259_v23 = vmul.f32 %v7609_v42, %v4252_v2 }
 0x5f4   : > { %v4223_v31 = vmul.f32 %v5681_v49, %v4209_v62  ;;  %vm4229_vm8 = vweird.f32 %v5681_v49  ;;  %v5410_v62 = vld [vmem:[%s7835_s17 + $0x20] sm:$0xff]  ;;  %4578 = vmatpush.bf16.msra.mxu0 %v5418_v40 }
 0x5f5   : > { %vm4230_vm10 = vmor %vm4228_vm9, %vm4229_vm8  ;;  %v7623_v25 = vadd.f32 %v7619_v37, %v4259_v23  ;;  %4557 = vmatpush.bf16.msrb.mxu3 %v5412_v5  ;;  %v5579_v40 = vld [vmem:[%s1037_s2] ss:$0 sm:$0xff] }
 0x5f6   : > { %v4224_v47 = vmul.f32 %v5681_v49, %v4223_v31 }
 0x5f8   : > { %v4225_v28 = vmul.f32 0.5, %v4224_v47  ;;  %4579 = vmatpush.bf16.msra.mxu0 %v5417_v20 }
 0x5f9   : > { %4558 = vmatpush.bf16.msrb.mxu3 %v5411_v53 }
 0x5fa   : > { %v4226_v12 = vsub.f32 1.5, %v4225_v28 }
 0x5fc   : > { %v4227_v60 = vmul.f32 %v5681_v49, %v4226_v12  ;;  %4580 = vmatpush.bf16.msra.mxu0 %v5416_v61 }
 0x5fd   : > { %4559 = vmatpush.bf16.msrb.mxu3 %v5410_v62 }
 0x5fe   : > { %v4231_v63 = vsel %vm4230_vm10, %v5681_v49, %v4227_v60 }
 0x5ff   : > { %v4253_v39 = vmul.f32 %v4231_v63, %v4205_v8 }
 0x600   : > { %4581 = vmatpush.bf16.msra.mxu0 %v5415_v33 }
 0x601   : > { %v4260_v26 = vmul.f32 %v7609_v42, %v4253_v39  ;;  %4560 = vmatpush.bf16.msrb.mxu3 %v5409_v16  ;;  %v4286_v39 = vld [vmem:[%s6292_s25] sm:$0x3] }
 0x603   : > { %v7626_v52 = vadd.f32 %v7619_v37, %v4260_v26 }
 0x604   : > { %4582 = vmatpush.bf16.msra.mxu0 %v5414_v24 }
 0x605   : > { %v4320_v13 = vpack.c.bf16 %v7626_v52, %v7623_v25  ;;  %4561 = vmatpush.bf16.msrb.mxu3 %v5408_v3 }
 0x607   : > { %4415 = vmatmul.bf16.vlgmr.msrb.gmra.mxu1 %v4320_v13  ;;  %4434 = vmatmul.bf16.vlgmr.msra.gmra.mxu2 %v4320_v13 }
 0x609   : > { %4562 = vmatpush.bf16.msrb.mxu3 %v5407_v22 }
 0x60d   : > { %4563 = vmatpush.bf16.msrb.mxu3 %v5406_v44 }
 0x655   : > { %v4169_v10 = vpop.xlane.xlu0 %4168 }
 0x656   : > { %v7630_v57 = vmul.f32 0.0078125, %v4169_v10 }
 0x657   : > { %v4185_v1 = vpop.xlane.xlu2 %4184 }
 0x658   : > { %v4194_v19 = vmul.f32 %v7630_v57, %v7630_v57  ;;  %v4190_v41 = vmul.f32 0.0078125, %v4185_v1  ;;  %v4206_v6 = vsub.f32 %v7560_v45, %v7630_v57  ;;  %v4324_v57 = vperm.slane %v4286_v39, 1 }
 0x65a   : > { %v4198_v51 = vsub.f32 %v4190_v41, %v4194_v19 }
 0x65c   : > { %v4202_v18 = vmax.f32 %v4198_v51, 0.0 }
 0x65d   : > { %v4171_v59 = vpop.xlane.xlu1 %4170 }
 0x65e   : > { %v4210_v0 = vadd.f32 1e-12, %v4202_v18  ;;  %v4175_v14 = vmul.f32 0.0078125, %v4171_v59 }
 0x65f   : > { %v4187_v32 = vpop.xlane.xlu0 %4186 }
 0x660   : > { %5682 = vrsqrt.f32 %v4210_v0  ;;  %v4195_v58 = vmul.f32 %v4175_v14, %v4175_v14  ;;  %v4191_v48 = vmul.f32 0.0078125, %v4187_v32  ;;  %vm4238_vm12 = vweird.f32 %v4210_v0 }
 0x661   : > { %v4207_v28 = vsub.f32 %v7581_v15, %v4175_v14  ;;  %v4323_v15 = vperm.slane %v4286_v39, 0 }
 0x662   : > { %v4199_v43 = vsub.f32 %v4191_v48, %v4195_v58 }
 0x664   : > { %v4203_v38 = vmax.f32 %v4199_v43, 0.0 }
 0x666   : > { %v5683_v54 = vpop.eup %5682  ;;  %v4211_v7 = vadd.f32 1e-12, %v4203_v38 }
 0x667   : > { %v4233_v56 = vmul.f32 %v5683_v54, %v4210_v0  ;;  %vm4239_vm11 = vweird.f32 %v5683_v54 }
 0x668   : > { %5684 = vrsqrt.f32 %v4211_v7  ;;  %vm4240_vm13 = vmor %vm4238_vm12, %vm4239_vm11  ;;  %vm4248_vm15 = vweird.f32 %v4211_v7 }
 0x669   : > { %v4234_v34 = vmul.f32 %v5683_v54, %v4233_v56 }
 0x66b   : > { %v4235_v35 = vmul.f32 0.5, %v4234_v34 }
 0x66d   : > { %v4236_v4 = vsub.f32 1.5, %v4235_v35 }
 0x66e   : > { %v5685_v17 = vpop.eup %5684 }
 0x66f   : > { %v4243_v49 = vmul.f32 %v5685_v17, %v4211_v7  ;;  %v4237_v9 = vmul.f32 %v5683_v54, %v4236_v4  ;;  %vm4249_vm14 = vweird.f32 %v5685_v17 }
 0x670   : > { %vm4250_vm0 = vmor %vm4248_vm15, %vm4249_vm14 }
 0x671   : > { %v4244_v11 = vmul.f32 %v5685_v17, %v4243_v49  ;;  %v4241_v31 = vsel %vm4240_vm13, %v5683_v54, %v4237_v9 }
 0x672   : > { %v4254_v21 = vmul.f32 %v4241_v31, %v4206_v6 }
 0x673   : > { %v4245_v50 = vmul.f32 0.5, %v4244_v11 }
 0x674   : > { %v4261_v2 = vmul.f32 %v7609_v42, %v4254_v21 }
 0x675   : > { %v4246_v47 = vsub.f32 1.5, %v4245_v50 }
 0x676   : > { %v7656_v60 = vadd.f32 %v7619_v37, %v4261_v2 }
 0x677   : > { %v4247_v55 = vmul.f32 %v5685_v17, %v4246_v47 }
 0x679   : > { %v4251_v27 = vsel %vm4250_vm0, %v5685_v17, %v4247_v55 }
 0x67a   : > { %v4255_v12 = vmul.f32 %v4251_v27, %v4207_v28 }
 0x67c   : > { %v4262_v45 = vmul.f32 %v7609_v42, %v4255_v12 }
 0x67e   : > { %v7659_v8 = vadd.f32 %v7619_v37, %v4262_v45 }
 0x680   : > { %v4321_v63 = vpack.c.bf16 %v7659_v8, %v7656_v60 }
 0x682   : > { %4420 = vmatmul.bf16.gmra.mxu1 %v4321_v63  ;;  %4439 = vmatmul.bf16.gmra.mxu2 %v4321_v63 }
 0x684   : > { %v4416_v23 = vpop.f32.mrf.mxu1 }
 0x685   : > { %v4417_v13 = vadd.f32 %v4416_v23, %v4323_v15 }
 0x687   : > { %v4445_v42 = vmax.f32 %v4417_v13, 0.0 }
 0x68a   : > { %v4435_v26 = vpop.f32.mrf.mxu2 }
 0x68b   : > { %v4436_v1 = vadd.f32 %v4435_v26, %v4324_v57 }
 0x68c   : > { %v4418_v10 = vpop.f32.mrf.mxu1 }
 0x68d   : > { %v4419_v30 = vadd.f32 %v4418_v10, %v4323_v15  ;;  %v4446_v5 = vmax.f32 %v4436_v1, 0.0 }
 0x68f   : > { %v4447_v29 = vmax.f32 %v4419_v30, 0.0  ;;  %v7693_v30 = vld [vmem:[%s1040_s28] ss:$0 sm:$0xff] }
 0x691   : > { %v4453_v19 = vpack.c.bf16 %v4447_v29, %v4445_v42  ;;  %v7700_v29 = vld [vmem:[%s1043_s7] ss:$0 sm:$0xff] }
 0x692   : > { %v4437_v41 = vpop.f32.mrf.mxu2 }
 0x693   : > { %v4438_v37 = vadd.f32 %v4437_v41, %v4324_v57  ;;  %4564 = vmatmul.bf16.vlgmr.msrb.gmra.mxu3 %v4453_v19 }
 0x695   : > { %v4448_v46 = vmax.f32 %v4438_v37, 0.0 }
 0x697   : > { %v4454_v51 = vpack.c.bf16 %v4448_v46, %v4446_v5 }
 0x699   : > { %4583 = vmatmul.bf16.vlgmr.msra.gmra.mxu0 %v4454_v51 }
 0x6ff   : > { %v4421_v18 = vpop.f32.mrf.mxu1 }
 0x700   : > { %v4422_v59 = vadd.f32 %v4421_v18, %v4323_v15 }
 0x702   : > { %v4449_v32 = vmax.f32 %v4422_v59, 0.0 }
 0x705   : > { %v4440_v53 = vpop.f32.mrf.mxu2 }
 0x706   : > { %v4441_v48 = vadd.f32 %v4440_v53, %v4324_v57 }
 0x707   : > { %v4423_v0 = vpop.f32.mrf.mxu1 }
 0x708   : > { %v4424_v14 = vadd.f32 %v4423_v0, %v4323_v15  ;;  %v4450_v38 = vmax.f32 %v4441_v48, 0.0 }
 0x70a   : > { %v4451_v58 = vmax.f32 %v4424_v14, 0.0 }
 0x70c   : > { %v4455_v43 = vpack.c.bf16 %v4451_v58, %v4449_v32 }
 0x70d   : > { %v4442_v62 = vpop.f32.mrf.mxu2 }
 0x70e   : > { %v4443_v36 = vadd.f32 %v4442_v62, %v4324_v57  ;;  %4569 = vmatmul.bf16.gmra.mxu3 %v4455_v43 }
 0x710   : > { %v4452_v16 = vmax.f32 %v4443_v36, 0.0 }
 0x712   : > { %v4456_v54 = vpack.c.bf16 %v4452_v16, %v4450_v38 }
 0x714   : > { %4588 = vmatmul.bf16.gmra.mxu0 %v4456_v54 }
 0x716   : > { %v4565_v56 = vpop.f32.mrf.mxu3  ;;  %v4584_v7 = vpop.f32.mrf.mxu0 }
 0x717   : > { %v4566_v34 = vadd.f32 %v5579_v40, %v4565_v56 }
 0x719   : > { %v4585_v3 = vadd.f32 %v4584_v7, %v4566_v34 }
 0x71b   : > { %v4594_v35 = vadd.f32 %v4585_v3, %v7623_v25 }
 0x71d   : > { %4600 = vadd.xlane.f32.xlu1 %v4594_v35  ;;  %v4612_v20 = vmul.f32 %v4594_v35, %v4594_v35 }
 0x71e   : > { %v4567_v4 = vpop.f32.mrf.mxu3  ;;  %v4586_v22 = vpop.f32.mrf.mxu0 }
 0x71f   : > { %v4568_v17 = vadd.f32 %v5579_v40, %v4567_v4  ;;  %4616 = vadd.xlane.f32.xlu2 %v4612_v20 }
 0x721   : > { %v4587_v61 = vadd.f32 %v4586_v22, %v4568_v17 }
 0x723   : > { %v7671_v49 = vadd.f32 %v4587_v61, %v7626_v52 }
 0x725   : > { %v4613_v39 = vmul.f32 %v7671_v49, %v7671_v49 }
 0x727   : > { %4602 = vadd.xlane.f32.xlu2 %v7671_v49 }
 0x790   : > { %v4601_v9 = vpop.xlane.xlu1 %4600 }
 0x791   : > { %v4608_v44 = vmul.f32 0.0078125, %v4601_v9  ;;  %v4570_v6 = vpop.f32.mrf.mxu3  ;;  %v4589_v33 = vpop.f32.mrf.mxu0 }
 0x792   : > { %v4617_v11 = vpop.xlane.xlu2 %4616  ;;  %v4571_v25 = vadd.f32 %v5579_v40, %v4570_v6 }
 0x793   : > { %v4628_v50 = vmul.f32 %v4608_v44, %v4608_v44  ;;  %v4624_v31 = vmul.f32 0.0078125, %v4617_v11  ;;  %v4640_v57 = vsub.f32 %v4594_v35, %v4608_v44 }
 0x794   : > { %v4590_v21 = vadd.f32 %v4589_v33, %v4571_v25 }
 0x795   : > { %v4632_v47 = vsub.f32 %v4624_v31, %v4628_v50 }
 0x796   : > { %v7675_v55 = vadd.f32 %v4590_v21, %v7656_v60 }
 0x797   : > { %v4636_v24 = vmax.f32 %v4632_v47, 0.0 }
 0x798   : > { %4604 = vadd.xlane.f32.xlu0 %v7675_v55 }
 0x799   : > { %v4644_v28 = vadd.f32 1e-12, %v4636_v24  ;;  %v4572_v52 = vpop.f32.mrf.mxu3  ;;  %v4591_v12 = vpop.f32.mrf.mxu0 }
 0x79a   : > { %v4573_v27 = vadd.f32 %v5579_v40, %v4572_v52  ;;  %v4603_v5 = vpop.xlane.xlu2 %4602 }
 0x79b   : > { %5686 = vrsqrt.f32 %v4644_v28  ;;  %vm4654_vm4 = vweird.f32 %v4644_v28  ;;  %v4609_v46 = vmul.f32 0.0078125, %v4603_v5 }
 0x79c   : > { %v4592_v2 = vadd.f32 %v4591_v12, %v4573_v27 }
 0x79d   : > { %v4629_v53 = vmul.f32 %v4609_v46, %v4609_v46  ;;  %v4641_v47 = vsub.f32 %v7671_v49, %v4609_v46 }
 0x79e   : > { %v7679_v63 = vadd.f32 %v4592_v2, %v7659_v8  ;;  %v4614_v8 = vmul.f32 %v7675_v55, %v7675_v55 }
 0x7a0   : > { %4606 = vadd.xlane.f32.xlu1 %v7679_v63  ;;  %4618 = vadd.xlane.f32.xlu0 %v4613_v39  ;;  %v4615_v60 = vmul.f32 %v7679_v63, %v7679_v63 }
 0x7a1   : > { %v5687_v45 = vpop.eup %5686 }
 0x7a2   : > { %v4649_v23 = vmul.f32 %v5687_v45, %v4644_v28  ;;  %4622 = vadd.xlane.f32.xlu2 %v4615_v60  ;;  %vm4655_vm1 = vweird.f32 %v5687_v45 }
 0x7a3   : > { %vm4656_vm5 = vmor %vm4654_vm4, %vm4655_vm1 }
 0x7a4   : > { %v4650_v15 = vmul.f32 %v5687_v45, %v4649_v23 }
 0x7a6   : > { %v4651_v26 = vmul.f32 0.5, %v4650_v15 }
 0x7a8   : > { %v4652_v13 = vsub.f32 1.5, %v4651_v26  ;;  %4620 = vadd.xlane.f32.xlu1 %v4614_v8 }
 0x7aa   : > { %v4653_v10 = vmul.f32 %v5687_v45, %v4652_v13 }
 0x7ac   : > { %v4657_v42 = vsel %vm4656_vm5, %v5687_v45, %v4653_v10 }
 0x7ad   : > { %v4688_v1 = vmul.f32 %v4657_v42, %v4640_v57 }
 0x7af   : > { %v4695_v19 = vmul.f32 %v7693_v30, %v4688_v1 }
 0x7b1   : > { %v7704_v41 = vadd.f32 %v7700_v29, %v4695_v19 }
 0x7b3   : > { %4706 = vst [vmem:[#allocation2 + $0x10] sm:$0xff] %v7704_v41 }
 0x80b   : > { %v4605_v37 = vpop.xlane.xlu0 %4604 }
 0x80c   : > { %v4610_v43 = vmul.f32 0.0078125, %v4605_v37 }
 0x80e   : > { %v4630_v54 = vmul.f32 %v4610_v43, %v4610_v43  ;;  %v4642_v26 = vsub.f32 %v7675_v55, %v4610_v43 }
 0x813   : > { %v4619_v51 = vpop.xlane.xlu0 %4618  ;;  %v4607_v18 = vpop.xlane.xlu1 %4606 }
 0x814   : > { %v4625_v59 = vmul.f32 0.0078125, %v4619_v51  ;;  %v4611_v0 = vmul.f32 0.0078125, %v4607_v18 }
 0x815   : > { %v4623_v14 = vpop.xlane.xlu2 %4622 }
 0x816   : > { %v4633_v32 = vsub.f32 %v4625_v59, %v4629_v53  ;;  %v4631_v58 = vmul.f32 %v4611_v0, %v4611_v0  ;;  %v4627_v48 = vmul.f32 0.0078125, %v4623_v14  ;;  %v4643_v27 = vsub.f32 %v7679_v63, %v4611_v0 }
 0x818   : > { %v4637_v62 = vmax.f32 %v4633_v32, 0.0  ;;  %v4635_v36 = vsub.f32 %v4627_v48, %v4631_v58 }
 0x81a   : > { %v4645_v38 = vadd.f32 1e-12, %v4637_v62  ;;  %v4639_v16 = vmax.f32 %v4635_v36, 0.0 }
 0x81b   : > { %v4621_v40 = vpop.xlane.xlu1 %4620 }
 0x81c   : > { %5688 = vrsqrt.f32 %v4645_v38  ;;  %v4647_v56 = vadd.f32 1e-12, %v4639_v16  ;;  %v4626_v7 = vmul.f32 0.0078125, %v4621_v40  ;;  %vm4664_vm2 = vweird.f32 %v4645_v38 }
 0x81e   : > { %5690 = vrsqrt.f32 %v4647_v56  ;;  %v4634_v34 = vsub.f32 %v4626_v7, %v4630_v54  ;;  %vm4684_vm8 = vweird.f32 %v4647_v56 }
 0x820   : > { %v4638_v3 = vmax.f32 %v4634_v34, 0.0 }
 0x822   : > { %v5689_v35 = vpop.eup %5688  ;;  %v4646_v20 = vadd.f32 1e-12, %v4638_v3 }
 0x823   : > { %v4659_v4 = vmul.f32 %v5689_v35, %v4645_v38  ;;  %vm4665_vm6 = vweird.f32 %v5689_v35 }
 0x824   : > { %v5691_v17 = vpop.eup %5690  ;;  %5692 = vrsqrt.f32 %v4646_v20  ;;  %vm4666_vm7 = vmor %vm4664_vm2, %vm4665_vm6  ;;  %vm4674_vm11 = vweird.f32 %v4646_v20 }
 0x825   : > { %v4660_v22 = vmul.f32 %v5689_v35, %v4659_v4  ;;  %v4679_v61 = vmul.f32 %v5691_v17, %v4647_v56  ;;  %vm4685_vm3 = vweird.f32 %v5691_v17 }
 0x826   : > { %vm4686_vm9 = vmor %vm4684_vm8, %vm4685_vm3 }
 0x827   : > { %v4661_v9 = vmul.f32 0.5, %v4660_v22  ;;  %v4680_v44 = vmul.f32 %v5691_v17, %v4679_v61 }
 0x829   : > { %v4662_v11 = vsub.f32 1.5, %v4661_v9  ;;  %v4681_v50 = vmul.f32 0.5, %v4680_v44 }
 0x82a   : > { %v5693_v31 = vpop.eup %5692 }
 0x82b   : > { %v4663_v6 = vmul.f32 %v5689_v35, %v4662_v11  ;;  %v4682_v33 = vsub.f32 1.5, %v4681_v50  ;;  %v4669_v25 = vmul.f32 %v5693_v31, %v4646_v20  ;;  %vm4675_vm10 = vweird.f32 %v5693_v31 }
 0x82c   : > { %vm4676_vm12 = vmor %vm4674_vm11, %vm4675_vm10 }
 0x82d   : > { %v4667_v21 = vsel %vm4666_vm7, %v5689_v35, %v4663_v6  ;;  %v4683_v24 = vmul.f32 %v5691_v17, %v4682_v33  ;;  %v4670_v28 = vmul.f32 %v5693_v31, %v4669_v25 }
 0x82e   : > { %v4689_v52 = vmul.f32 %v4667_v21, %v4641_v47 }
 0x82f   : > { %v4687_v12 = vsel %vm4686_vm9, %v5691_v17, %v4683_v24  ;;  %v4671_v2 = vmul.f32 0.5, %v4670_v28 }
 0x830   : > { %v4696_v45 = vmul.f32 %v7693_v30, %v4689_v52  ;;  %v4691_v39 = vmul.f32 %v4687_v12, %v4643_v27 }
 0x831   : > { %v4672_v23 = vsub.f32 1.5, %v4671_v2 }
 0x832   : > { %v4703_v60 = vadd.f32 %v7700_v29, %v4696_v45  ;;  %v4698_v49 = vmul.f32 %v7693_v30, %v4691_v39 }
 0x833   : > { %v4673_v15 = vmul.f32 %v5693_v31, %v4672_v23 }
 0x834   : > { %4707 = vst [vmem:[#allocation2] sm:$0xff] %v4703_v60  ;;  %v4705_v13 = vadd.f32 %v7700_v29, %v4698_v49 }
 0x835   : > { %v4677_v63 = vsel %vm4676_vm12, %v5693_v31, %v4673_v15 }
 0x836   : > { %4709 = vst [vmem:[#allocation2 + $0x8] sm:$0xff] %v4705_v13  ;;  %v4690_v8 = vmul.f32 %v4677_v63, %v4642_v26 }
 0x838   : > { %v4697_v10 = vmul.f32 %v7693_v30, %v4690_v8  ;;  %4713 = sbr.rel (%p5347_p1) target bundleno = 2113 (0x841), region = 128 }
 0x83a   : > { %v4704_v57 = vadd.f32 %v7700_v29, %v4697_v10 }
 0x83c   : > { %4708 = vst [vmem:[#allocation2 + $0x18] sm:$0xff] %v4704_v57 }
 0x83d   : > { %v5433_v42 = vpack.c.bf16 %v4703_v60, %v7704_v41  ;;  %v5438_v1 = vpack.c.bf16 %v4705_v13, %v4704_v57 }
 0x83f   : > { %5434 = vst [vmem:[#allocation14] sm:$0xff] %v5433_v42  }
 0x840   : > { %5441 = vst [vmem:[#allocation14 + $0x8] sm:$0xff] %v5438_v1  }
 0x841 PF: > { %s7840_s7 = sld [smem:[#allocation24_spill]]  ;;  %s5985_s0 = smov [#allocation14]  }
 0x842   : > { %s7841_s9 = sld [smem:[#allocation45_spill]]  ;;  %s4731_s24 = sshll.u32 %s5985_s0, 4  ;;  %s4732_s24 = int_to_ptr.vmem [resolvable:$true] %s4731_s24 }
 0x843   : > { %s5986_s12 = smov 4  }
 0x847   : > { %p5478_p2 = scmp.eq.s32.totalorder %s7840_s7, 1 }
 0x848   : > { %s4733_s16 = sshll.u32 %s7841_s9, 4  ;;  %s4734_s16 = int_to_ptr.hbm [resolvable:$true] %s4733_s16 }
 0x849   : > { %5455 = dma.vmem_to_hbm [thread:$0]  (%p5478_p2), %s4732_s24, 256, %s4734_s16, [#allocation5], %s5980_s8, %s5980_s8, %s5986_s12  }
 0x84a   : > { %5948 = dma.done.wait (%p5478_p2), [#allocation5], 256  }
 0x84b   : > { %5950 = vsyncadd (%p5478_p2), [#allocation5], 4294967040 }
 0x84c PF: > { %s7842_s21 = sld [smem:[#allocation23_spill]] }
 0x84d   : > { %s7843_s0 = sld [smem:[#allocation20_spill]] }
 0x84e   : > { %s7844_s30 = sld [smem:[#allocation21_spill]] }
 0x84f   : > { %s7845_s20 = sld [smem:[#allocation26_spill]] }
 0x850   : > { %s7847_s1 = sld [smem:[#allocation25_spill]] }
 0x852   : > { %s42_s22 = sadd.s32 1, %s7842_s21   ;;  %s7846_s21 = sld [smem:[#allocation22_spill]] }
 0x853   : > { %p39_p3 = scmp.ge.s32.totalorder %s42_s22, 4  }
 0x855   :  { %41 = sbr.rel (!%p39_p3) target bundleno = 30 (0x1e), region = 242 }
 0x85a   :  { %4750 = vsyncpa [#allocation4], 1 }
 0x85b   :  { %4752 = vsyncpa [#allocation4 + $0x1], 1 }
 0x85c   :  { %4753 = vsyncpa [#allocation7], 1 }
 0x85d   :  { %4755 = vsyncpa [#allocation7 + $0x1], 1 }
 0x85e   :  { %4756 = vsyncpa [#allocation10], 1 }
 0x85f   :  { %4758 = vsyncpa [#allocation10 + $0x1], 1 }
 0x860   :  { %4759 = vsyncpa [#allocation13], 1 }
 0x861   :  { %4761 = vsyncpa [#allocation13 + $0x1], 1 }
 0x862   :  { %4762 = vsyncpa [#allocation5], 1 }
 0x863   :  { %4764 = vsyncpa [#allocation5 + $0x1], 1 }

</bundles_post_ra>
